<compile_context>
chip_gen: v7x
topology: tpu7x:2x2x1
jax: 0.10.0
libtpu: 0.0.40
codegen_flags: <defaults>
</compile_context>

<pallas_src>
import functools

import jax
import jax.numpy as jnp
from jax.experimental import pallas as pl
from jax.experimental.pallas import tpu as pltpu


# Raised scoped VMEM limit: v5e default is 16 MiB (too small for large-mode
# blocks), and 48 MiB still leaves headroom inside v7x's 64 MiB physical VMEM.
_VMEM_LIMIT_BYTES = 48 * 1024 * 1024
# Budget used when sizing the double-buffered per-row blocks.
_VMEM_BLOCK_BUDGET = 32 * 1024 * 1024


def _round_up(x, m):
    return ((x + m - 1) // m) * m


def _choose_row_tile(n_rows, row_bytes, *, max_tile=512, min_steps=8,
                     budget=_VMEM_BLOCK_BUDGET):
    """Generation-aware row-tile selection:
      * double-buffered (input + output) row blocks must fit `budget` bytes
        (keeps the kernel inside v7x's 64 MiB VMEM / raised scoped limit),
      * when there are enough rows, produce >= `min_steps` grid steps so both
        v7x TensorCores get work and DMA/compute overlap has a real pipeline,
      * tile is a multiple of 8 (f32 sublane granularity)."""
    tile = min(max_tile, _round_up(n_rows, 8))
    vmem_cap = max(8, (budget // max(1, 2 * row_bytes)) // 8 * 8)
    tile = min(tile, vmem_cap)
    if n_rows >= min_steps * 8:
        steps_cap = max(8, (n_rows // min_steps) // 8 * 8)
        tile = min(tile, steps_cap)
    return max(8, int(tile))


# ----------------------------------------------------------------------------
# Pallas kernels
# ----------------------------------------------------------------------------

def _spectral_mix_kernel(x_ref, w_ref, o_ref, *, n_modes):
    """Packed-complex channel mixing, one real MXU matmul per Fourier mode.

    x_ref : (tile, n_modes, 2*in_dim)      per mode [xr_0..xr_I, xi_0..xi_I]
    w_ref : (n_modes, 2*in_dim, 2*out_dim) packed real [[wr, wi], [-wi, wr]]
    o_ref : (tile, n_modes, 2*out_dim)     per mode [re_0..re_O, im_0..im_O]

    Mode axis is a genuine (sublane) dimension, so per-mode slices start at
    lane 0 — no mid-vreg lane re-layouts or masked partial stores.
    """
    # TODO(synk): for n_modes >= ~16 move the mode axis into the grid
    # (per-mode weight block, 'parallel') to cap code size / vreg pressure.
    for m in range(n_modes):                       # n_modes is small & static
        o_ref[:, m, :] = jnp.dot(x_ref[:, m, :], w_ref[m],
                                 preferred_element_type=jnp.float32)


def _make_ffn_kernel(n_in, n_sets, compute_dtype):
    """Fused pointwise MLP heads.  The n_in input tensors are summed in-kernel
    (fuses the `xx + xy` add of forward_fourier — saves one full HBM write +
    read of the mem-bound pointwise stage) and the summed activation is read
    ONCE and reused by every head (backcast + forecast)."""
    def kernel(*refs):
        x_refs = refs[:n_in]
        p_refs = refs[n_in:n_in + 4 * n_sets]
        out_refs = refs[n_in + 4 * n_sets:]
        x = x_refs[0][...]
        for r in x_refs[1:]:
            x = x + r[...]                         # f32 add (fused xx + xy)
        x = x.astype(compute_dtype)                # bf16 operands -> MXU rate
        for s in range(n_sets):
            w1, b1, w2, b2 = p_refs[4 * s:4 * s + 4]
            h = jnp.dot(x, w1[...], preferred_element_type=jnp.float32) + b1[...]
            h = jnp.maximum(h, 0.0).astype(compute_dtype)
            y = jnp.dot(h, w2[...], preferred_element_type=jnp.float32) + b2[...]
            out_refs[s][...] = y.astype(out_refs[s].dtype)
    return kernel


# ----------------------------------------------------------------------------
# Pallas wrappers
# ----------------------------------------------------------------------------

def _pack_complex_weight(weights):
    """weights: list of (I, O, nm, 2) arrays -> (nm_total, 2I, 2O) packed real
    matrices W_m = [[wr_m, wi_m], [-wi_m, wr_m]] so that
    [xr | xi] @ W_m = [real | imag] of the complex product."""
    w = jnp.concatenate(
        [jnp.transpose(wk.astype(jnp.float32), (2, 0, 1, 3)) for wk in weights],
        axis=0)                                    # (nm_tot, I, O, 2)
    wr, wi = w[..., 0], w[..., 1]                  # (nm_tot, I, O)
    top = jnp.concatenate([wr, wi], axis=-1)       # (nm_tot, I, 2O)
    bot = jnp.concatenate([-wi, wr], axis=-1)      # (nm_tot, I, 2O)
    return jnp.concatenate([top, bot], axis=1)     # (nm_tot, 2I, 2O)


def spectral_mix(x_modes, w_packed, *, compute_dtype=jnp.bfloat16,
                 max_row_tile=512):
    """x_modes: (R, nm, I) complex64;  w_packed: (nm, 2I, 2O) float32.
    Returns (R, nm, O) complex64 with out[r, m] = x[r, m] @ W_complex[m]."""
    R, nm, I = x_modes.shape
    ci2 = 2 * I
    co2 = w_packed.shape[-1]
    O = co2 // 2

    xp = jnp.concatenate([jnp.real(x_modes), jnp.imag(x_modes)],
                         axis=-1).astype(compute_dtype)        # (R, nm, 2I)
    wp = w_packed.astype(compute_dtype)

    itm = jnp.dtype(compute_dtype).itemsize
    row_bytes = nm * ci2 * itm + nm * co2 * 4
    tile = _choose_row_tile(R, row_bytes, max_tile=max_row_tile)
    Rp = _round_up(R, tile)
    if Rp != R:
        xp = jnp.pad(xp, ((0, Rp - R), (0, 0), (0, 0)))

    flops = 2 * Rp * nm * ci2 * co2
    bytes_accessed = (Rp * nm * ci2 * itm + nm * ci2 * co2 * itm
                      + Rp * nm * co2 * 4)

    out = pl.pallas_call(
        functools.partial(_spectral_mix_kernel, n_modes=nm),
        out_shape=jax.ShapeDtypeStruct((Rp, nm, co2), jnp.float32),
        grid=(Rp // tile,),
        in_specs=[
            pl.BlockSpec((tile, nm, ci2), lambda i: (i, 0, 0)),
            pl.BlockSpec((nm, ci2, co2), lambda i: (0, 0, 0)),   # resident
        ],
        out_specs=pl.BlockSpec((tile, nm, co2), lambda i: (i, 0, 0)),
        compiler_params=pltpu.CompilerParams(
            dimension_semantics=("parallel",),
            vmem_limit_bytes=_VMEM_LIMIT_BYTES),
        cost_estimate=pl.CostEstimate(flops=flops, transcendentals=0,
                                      bytes_accessed=bytes_accessed),
    )(xp, wp)

    out = out[:R]                                  # drop padded rows
    return (out[..., :O] + 1j * out[..., O:]).astype(jnp.complex64)


def fused_feed_forward(xs, param_sets, *, compute_dtype=jnp.bfloat16,
                       max_row_tile=512):
    """xs: tuple of tensors (..., D) that are SUMMED in-kernel.  param_sets:
    tuple of (w1, b1, w2, b2).  Returns one output (..., Dout) per param set,
    computed from a single streamed read of the summed activation.
    WNFeedForward equivalent (2 layers, no weight-norm, no layer-norm, eval)."""
    # TODO(synk): weight-norm reparam (g * V/||V||), LayerNorm and Dropout of
    # WNFeedForward are not modeled (ff_weight_norm=False, layer_norm=False,
    # dropout=0 configuration).
    D = xs[0].shape[-1]
    H = param_sets[0][0].shape[1]
    Dout = param_sets[0][2].shape[1]
    n_in = len(xs)
    n_sets = len(param_sets)
    orig_shape = xs[0].shape

    flat = [x.reshape(-1, D).astype(jnp.float32) for x in xs]
    R = flat[0].shape[0]
    itm = jnp.dtype(compute_dtype).itemsize
    row_bytes = n_in * D * 4 + n_sets * Dout * 4 + H * itm
    tile = _choose_row_tile(R, row_bytes, max_tile=max_row_tile)
    Rp = _round_up(R, tile)
    if Rp != R:
        flat = [jnp.pad(f, ((0, Rp - R), (0, 0))) for f in flat]

    in_specs = [pl.BlockSpec((tile, D), lambda i: (i, 0)) for _ in range(n_in)]
    flat_params = []
    for (w1, b1, w2, b2) in param_sets:
        flat_params += [w1.astype(compute_dtype), b1.astype(jnp.float32),
                        w2.astype(compute_dtype), b2.astype(jnp.float32)]
        in_specs += [pl.BlockSpec((D, H), lambda i: (0, 0)),
                     pl.BlockSpec((1, H), lambda i: (0, 0)),
                     pl.BlockSpec((H, Dout), lambda i: (0, 0)),
                     pl.BlockSpec((1, Dout), lambda i: (0, 0))]

    out_shape = tuple(jax.ShapeDtypeStruct((Rp, Dout), jnp.float32)
                      for _ in range(n_sets))
    out_specs = tuple(pl.BlockSpec((tile, Dout), lambda i: (i, 0))
                      for _ in range(n_sets))

    flops = n_sets * (2 * Rp * D * H + 2 * Rp * H * Dout)
    bytes_accessed = (n_in * Rp * D * 4
                      + n_sets * (D * H + H * Dout) * itm
                      + n_sets * (H + Dout) * 4
                      + n_sets * Rp * Dout * 4)

    outs = pl.pallas_call(
        _make_ffn_kernel(n_in, n_sets, compute_dtype),
        out_shape=out_shape,
        grid=(Rp // tile,),
        in_specs=in_specs,
        out_specs=out_specs,
        compiler_params=pltpu.CompilerParams(
            dimension_semantics=("parallel",),
            vmem_limit_bytes=_VMEM_LIMIT_BYTES),
        cost_estimate=pl.CostEstimate(flops=flops, transcendentals=0,
                                      bytes_accessed=bytes_accessed),
    )(*flat, *flat_params)

    return tuple(o[:R].reshape(orig_shape[:-1] + (Dout,)) for o in outs)


# ----------------------------------------------------------------------------
# Module glue (FFTs + mode slicing stay in XLA; layout kept channels-last so
# the only explicit transposes touch the small sliced-mode tensors)
# ----------------------------------------------------------------------------

def forward_fourier(x, fourier_weight, n_modes, mode, *,
                    compute_dtype=jnp.bfloat16):
    """Returns the two branches (xx, xy) UN-summed; the add is fused into the
    downstream feed-forward kernel to save one full HBM round-trip."""
    B, M, N, I = x.shape
    O = fourier_weight[0].shape[1]
    Nf = N // 2 + 1
    Mf = M // 2 + 1

    if mode == 'full' and (Nf < 2 * n_modes or Mf < 2 * n_modes):
        raise ValueError(
            f"'full' mode needs N//2+1 >= 2*n_modes and M//2+1 >= 2*n_modes "
            f"(got Nf={Nf}, Mf={Mf}, n_modes={n_modes})")
    if mode == 'low-pass' and (Nf < n_modes or Mf < n_modes):
        raise ValueError("'low-pass' mode needs n_modes <= N//2+1 and M//2+1")

    # TODO(synk): when M == N the two FFT directions could share one
    # pallas_call (stack along the mode axis) to halve ramp/launch overhead.

    # ---- FFT along the y / N dimension (axis=2, channels stay last) ----
    x_fty = jnp.fft.rfft(x, axis=2, norm='ortho')             # (B, M, Nf, I)
    if mode == 'full':
        x_sel = jnp.concatenate(
            [x_fty[:, :, :n_modes, :], x_fty[:, :, Nf - n_modes:, :]],
            axis=2)                                            # (B, M, 2nm, I)
        wp = _pack_complex_weight([fourier_weight[0], fourier_weight[2]])
        out = spectral_mix(x_sel.reshape(B * M, 2 * n_modes, I), wp,
                           compute_dtype=compute_dtype)        # (B*M, 2nm, O)
        out = out.reshape(B, M, 2 * n_modes, O)
        out_fty = jnp.concatenate(
            [out[:, :, :n_modes],
             jnp.zeros((B, M, Nf - 2 * n_modes, O), out.dtype),
             out[:, :, n_modes:]], axis=2)                     # (B, M, Nf, O)
    elif mode == 'low-pass':
        out_fty = jnp.concatenate(
            [x_fty[:, :, :n_modes, :],
             jnp.zeros((B, M, Nf - n_modes, I), x_fty.dtype)], axis=2)
    else:
        raise ValueError(mode)
    xy = jnp.fft.irfft(out_fty, n=N, axis=2, norm='ortho')     # (B, M, N, O)

    # ---- FFT along the x / M dimension (axis=1) ----
    x_ftx = jnp.fft.rfft(x, axis=1, norm='ortho')              # (B, Mf, N, I)
    if mode == 'full':
        x_sel = jnp.concatenate(
            [x_ftx[:, :n_modes], x_ftx[:, Mf - n_modes:]], axis=1)  # (B,2nm,N,I)
        x_sel = jnp.transpose(x_sel, (0, 2, 1, 3))             # (B, N, 2nm, I)
        wp = _pack_complex_weight([fourier_weight[1], fourier_weight[3]])
        out = spectral_mix(x_sel.reshape(B * N, 2 * n_modes, I), wp,
                           compute_dtype=compute_dtype)        # (B*N, 2nm, O)
        out = jnp.transpose(out.reshape(B, N, 2 * n_modes, O),
                            (0, 2, 1, 3))                      # (B, 2nm, N, O)
        out_ftx = jnp.concatenate(
            [out[:, :n_modes],
             jnp.zeros((B, Mf - 2 * n_modes, N, O), out.dtype),
             out[:, n_modes:]], axis=1)                        # (B, Mf, N, O)
    else:  # low-pass
        out_ftx = jnp.concatenate(
            [x_ftx[:, :n_modes],
             jnp.zeros((B, Mf - n_modes, N, I), x_ftx.dtype)], axis=1)
    xx = jnp.fft.irfft(out_ftx, n=M, axis=1, norm='ortho')     # (B, M, N, O)

    return xx, xy


def decom_spectral_conv2d(x, params, n_modes, mode='full', use_fork=True,
                          compute_dtype=jnp.bfloat16):
    """Forward pass of DecomSpectralConv2d. Returns (backcast, forecast)."""
    if mode != 'no-fourier':
        xs = forward_fourier(x, params['fourier_weight'], n_modes, mode,
                             compute_dtype=compute_dtype)      # (xx, xy)
    else:
        xs = (x,)
    sets = ((params['backcast_ff'], params['forecast_ff']) if use_fork
            else (params['backcast_ff'],))
    outs = fused_feed_forward(xs, sets, compute_dtype=compute_dtype)
    if use_fork:
        return outs[0], outs[1]
    return outs[0], None


def init_params(key, in_dim, out_dim, n_modes, factor):
    keys = jax.random.split(key, 8)
    # Xavier-normal init for the 4 complex Fourier weights (in, out, n_modes, 2)
    fan_in = in_dim * n_modes * 2
    fan_out = out_dim * n_modes * 2
    std = (2.0 / (fan_in + fan_out)) ** 0.5
    fourier = [std * jax.random.normal(keys[k], (in_dim, out_dim, n_modes, 2),
                                       jnp.float32) for k in range(4)]

    def ffn(k1, k2):
        hidden = out_dim * factor
        w1 = jax.random.normal(k1, (out_dim, hidden), jnp.float32) / jnp.sqrt(
            jnp.float32(out_dim))
        b1 = jnp.zeros((1, hidden), jnp.float32)
        w2 = jax.random.normal(k2, (hidden, out_dim), jnp.float32) / jnp.sqrt(
            jnp.float32(hidden))
        b2 = jnp.zeros((1, out_dim), jnp.float32)
        return (w1, b1, w2, b2)

    return {'fourier_weight': fourier,
            'backcast_ff': ffn(keys[4], keys[5]),
            'forecast_ff': ffn(keys[6], keys[7])}


# ----------------------------------------------------------------------------
# Pure-JAX reference (follows the PyTorch layout exactly)
# ----------------------------------------------------------------------------

def reference(x, params, n_modes):
    w = [p[..., 0] + 1j * p[..., 1] for p in params['fourier_weight']]
    xt = jnp.transpose(x, (0, 3, 1, 2))
    B, I, M, N = xt.shape
    x_fty = jnp.fft.rfft(xt, axis=-1, norm='ortho')
    out_ft = jnp.zeros((B, I, M, N // 2 + 1), dtype=jnp.complex64)
    out_ft = out_ft.at[..., :n_modes].set(
        jnp.einsum('bixy,ioy->boxy', x_fty[..., :n_modes], w[0]))
    out_ft = out_ft.at[..., -n_modes:].set(
        jnp.einsum('bixy,ioy->boxy', x_fty[..., -n_modes:], w[2]))
    xy = jnp.fft.irfft(out_ft, n=N, axis=-1, norm='ortho')
    x_ftx = jnp.fft.rfft(xt, axis=-2, norm='ortho')
    out_ft = jnp.zeros((B, I, M // 2 + 1, N), dtype=jnp.complex64)
    out_ft = out_ft.at[:, :, :n_modes, :].set(
        jnp.einsum('bixy,iox->boxy', x_ftx[:, :, :n_modes, :], w[1]))
    out_ft = out_ft.at[:, :, -n_modes:, :].set(
        jnp.einsum('bixy,iox->boxy', x_ftx[:, :, -n_modes:, :], w[3]))
    xx = jnp.fft.irfft(out_ft, n=M, axis=-2, norm='ortho')
    xf = jnp.transpose(xx + xy, (0, 2, 3, 1))

    def ffn_ref(z, p):
        w1, b1, w2, b2 = p
        h = jnp.maximum(z @ w1 + b1[0], 0.0)
        return h @ w2 + b2[0]

    return ffn_ref(xf, params['backcast_ff']), ffn_ref(xf, params['forecast_ff'])


# ----------------------------------------------------------------------------

if __name__ == "__main__":
    B, M, N, C = 2, 16, 16, 4          # batch, spatial M, spatial N, channels
    n_modes, factor = 4, 2

    key = jax.random.PRNGKey(0)
    kx, kp = jax.random.split(key)
    x = jax.random.normal(kx, (B, M, N, C), jnp.float32)
    params = init_params(kp, C, C, n_modes, factor)

    b_ref, f_ref = reference(x, params, n_modes)

    # --- f32-operand path: validates the kernel math against the reference ---
    fwd_f32 = jax.jit(functools.partial(decom_spectral_conv2d, n_modes=n_modes,
                                        mode='full', use_fork=True,
                                        compute_dtype=jnp.float32))
    b0, f0 = fwd_f32(x, params)
    jax.block_until_ready((b0, f0))
    assert b0.shape == (B, M, N, C) and f0.shape == (B, M, N, C)
    assert jnp.allclose(b0, b_ref, atol=1e-2, rtol=1e-2), \
        float(jnp.max(jnp.abs(b0 - b_ref)))
    assert jnp.allclose(f0, f_ref, atol=1e-2, rtol=1e-2), \
        float(jnp.max(jnp.abs(f0 - f_ref)))

    # --- default bf16 fast path: MXU at bf16 rate, f32 accumulation ---
    fwd_bf16 = jax.jit(functools.partial(decom_spectral_conv2d, n_modes=n_modes,
                                         mode='full', use_fork=True))
    b1, f1 = fwd_bf16(x, params)
    jax.block_until_ready((b1, f1))
    assert b1.shape == (B, M, N, C) and f1.shape == (B, M, N, C)
    assert jnp.allclose(b1, b_ref, atol=5e-2, rtol=5e-2), \
        float(jnp.max(jnp.abs(b1 - b_ref)))
    assert jnp.allclose(f1, f_ref, atol=5e-2, rtol=5e-2), \
        float(jnp.max(jnp.abs(f1 - f_ref)))

    print("KERNEL_OK")
</pallas_src>

<mosaic_0001>
module attributes {stable_mosaic.version = 11 : i64} {
  func.func @_spectral_mix_kernel(%arg0: i32, %arg1: memref<32x8x8xf32, #tpu.memory_space<vmem>>, %arg2: memref<8x8x8xf32, #tpu.memory_space<vmem>>, %arg3: memref<32x8x8xf32, #tpu.memory_space<vmem>>) attributes {dimension_semantics = [#tpu.dimension_semantics<parallel>], iteration_bounds = array<i64: 1>, scalar_prefetch = 0 : i64, scratch_operands = 0 : i64, tpu.core_type = #tpu.core_type<tc>, window_params = [{transform_indices = @transform_0, window_bounds = array<i64: 32, 8, 8>}, {pipeline_mode = #tpu.pipeline_mode<synchronous>, transform_indices = @transform_1, window_bounds = array<i64: 8, 8, 8>}, {transform_indices = @transform_2, window_bounds = array<i64: 32, 8, 8>}]} {
    %c0 = arith.constant 0 : index
    %c0_0 = arith.constant 0 : index
    %c0_1 = arith.constant 0 : index
    %0 = vector.load %arg1[%c0, %c0_0, %c0_1] : memref<32x8x8xf32, #tpu.memory_space<vmem>>, vector<32x1x8xf32>
    %1 = vector.shape_cast %0 : vector<32x1x8xf32> to vector<32x8xf32>
    %c0_2 = arith.constant 0 : index
    %c0_3 = arith.constant 0 : index
    %c0_4 = arith.constant 0 : index
    %2 = vector.load %arg2[%c0_2, %c0_3, %c0_4] : memref<8x8x8xf32, #tpu.memory_space<vmem>>, vector<1x8x8xf32>
    %3 = vector.shape_cast %2 : vector<1x8x8xf32> to vector<8x8xf32>
    %cst = arith.constant dense<0.000000e+00> : vector<32x8xf32>
    %4 = tpu.matmul %1, %3, %cst {dimension_numbers = #tpu.dot_dimension_numbers<[1], [0], [0], [1], [0, 0, 1, 1], [], []>} : vector<32x8xf32>, vector<8x8xf32>, vector<32x8xf32> -> vector<32x8xf32>
    %c0_5 = arith.constant 0 : index
    %c0_6 = arith.constant 0 : index
    %c0_7 = arith.constant 0 : index
    %5 = vector.load %arg3[%c0_5, %c0_6, %c0_7] : memref<32x8x8xf32, #tpu.memory_space<vmem>>, vector<32x1x8xf32>
    %6 = vector.shape_cast %5 : vector<32x1x8xf32> to vector<32x8xf32>
    %7 = vector.shape_cast %4 : vector<32x8xf32> to vector<32x1x8xf32>
    tpu.vector_store %arg3[%c0_5, %c0_6, %c0_7], %7 {strides = array<i32>} : memref<32x8x8xf32, #tpu.memory_space<vmem>>, vector<32x1x8xf32>,
    %c0_8 = arith.constant 0 : index
    %c1 = arith.constant 1 : index
    %c0_9 = arith.constant 0 : index
    %8 = vector.load %arg1[%c0_8, %c1, %c0_9] : memref<32x8x8xf32, #tpu.memory_space<vmem>>, vector<32x1x8xf32>
    %9 = vector.shape_cast %8 : vector<32x1x8xf32> to vector<32x8xf32>
    %c1_10 = arith.constant 1 : index
    %c0_11 = arith.constant 0 : index
    %c0_12 = arith.constant 0 : index
    %10 = vector.load %arg2[%c1_10, %c0_11, %c0_12] : memref<8x8x8xf32, #tpu.memory_space<vmem>>, vector<1x8x8xf32>
    %11 = vector.shape_cast %10 : vector<1x8x8xf32> to vector<8x8xf32>
    %cst_13 = arith.constant dense<0.000000e+00> : vector<32x8xf32>
    %12 = tpu.matmul %9, %11, %cst_13 {dimension_numbers = #tpu.dot_dimension_numbers<[1], [0], [0], [1], [0, 0, 1, 1], [], []>} : vector<32x8xf32>, vector<8x8xf32>, vector<32x8xf32> -> vector<32x8xf32>
    %c0_14 = arith.constant 0 : index
    %c1_15 = arith.constant 1 : index
    %c0_16 = arith.constant 0 : index
    %13 = vector.load %arg3[%c0_14, %c1_15, %c0_16] : memref<32x8x8xf32, #tpu.memory_space<vmem>>, vector<32x1x8xf32>
    %14 = vector.shape_cast %13 : vector<32x1x8xf32> to vector<32x8xf32>
    %15 = vector.shape_cast %12 : vector<32x8xf32> to vector<32x1x8xf32>
    tpu.vector_store %arg3[%c0_14, %c1_15, %c0_16], %15 {strides = array<i32>} : memref<32x8x8xf32, #tpu.memory_space<vmem>>, vector<32x1x8xf32>,
    %c0_17 = arith.constant 0 : index
    %c2 = arith.constant 2 : index
    %c0_18 = arith.constant 0 : index
    %16 = vector.load %arg1[%c0_17, %c2, %c0_18] : memref<32x8x8xf32, #tpu.memory_space<vmem>>, vector<32x1x8xf32>
    %17 = vector.shape_cast %16 : vector<32x1x8xf32> to vector<32x8xf32>
    %c2_19 = arith.constant 2 : index
    %c0_20 = arith.constant 0 : index
    %c0_21 = arith.constant 0 : index
    %18 = vector.load %arg2[%c2_19, %c0_20, %c0_21] : memref<8x8x8xf32, #tpu.memory_space<vmem>>, vector<1x8x8xf32>
    %19 = vector.shape_cast %18 : vector<1x8x8xf32> to vector<8x8xf32>
    %cst_22 = arith.constant dense<0.000000e+00> : vector<32x8xf32>
    %20 = tpu.matmul %17, %19, %cst_22 {dimension_numbers = #tpu.dot_dimension_numbers<[1], [0], [0], [1], [0, 0, 1, 1], [], []>} : vector<32x8xf32>, vector<8x8xf32>, vector<32x8xf32> -> vector<32x8xf32>
    %c0_23 = arith.constant 0 : index
    %c2_24 = arith.constant 2 : index
    %c0_25 = arith.constant 0 : index
    %21 = vector.load %arg3[%c0_23, %c2_24, %c0_25] : memref<32x8x8xf32, #tpu.memory_space<vmem>>, vector<32x1x8xf32>
    %22 = vector.shape_cast %21 : vector<32x1x8xf32> to vector<32x8xf32>
    %23 = vector.shape_cast %20 : vector<32x8xf32> to vector<32x1x8xf32>
    tpu.vector_store %arg3[%c0_23, %c2_24, %c0_25], %23 {strides = array<i32>} : memref<32x8x8xf32, #tpu.memory_space<vmem>>, vector<32x1x8xf32>,
    %c0_26 = arith.constant 0 : index
    %c3 = arith.constant 3 : index
    %c0_27 = arith.constant 0 : index
    %24 = vector.load %arg1[%c0_26, %c3, %c0_27] : memref<32x8x8xf32, #tpu.memory_space<vmem>>, vector<32x1x8xf32>
    %25 = vector.shape_cast %24 : vector<32x1x8xf32> to vector<32x8xf32>
    %c3_28 = arith.constant 3 : index
    %c0_29 = arith.constant 0 : index
    %c0_30 = arith.constant 0 : index
    %26 = vector.load %arg2[%c3_28, %c0_29, %c0_30] : memref<8x8x8xf32, #tpu.memory_space<vmem>>, vector<1x8x8xf32>
    %27 = vector.shape_cast %26 : vector<1x8x8xf32> to vector<8x8xf32>
    %cst_31 = arith.constant dense<0.000000e+00> : vector<32x8xf32>
    %28 = tpu.matmul %25, %27, %cst_31 {dimension_numbers = #tpu.dot_dimension_numbers<[1], [0], [0], [1], [0, 0, 1, 1], [], []>} : vector<32x8xf32>, vector<8x8xf32>, vector<32x8xf32> -> vector<32x8xf32>
    %c0_32 = arith.constant 0 : index
    %c3_33 = arith.constant 3 : index
    %c0_34 = arith.constant 0 : index
    %29 = vector.load %arg3[%c0_32, %c3_33, %c0_34] : memref<32x8x8xf32, #tpu.memory_space<vmem>>, vector<32x1x8xf32>
    %30 = vector.shape_cast %29 : vector<32x1x8xf32> to vector<32x8xf32>
    %31 = vector.shape_cast %28 : vector<32x8xf32> to vector<32x1x8xf32>
    tpu.vector_store %arg3[%c0_32, %c3_33, %c0_34], %31 {strides = array<i32>} : memref<32x8x8xf32, #tpu.memory_space<vmem>>, vector<32x1x8xf32>,
    %c0_35 = arith.constant 0 : index
    %c4 = arith.constant 4 : index
    %c0_36 = arith.constant 0 : index
    %32 = vector.load %arg1[%c0_35, %c4, %c0_36] : memref<32x8x8xf32, #tpu.memory_space<vmem>>, vector<32x1x8xf32>
    %33 = vector.shape_cast %32 : vector<32x1x8xf32> to vector<32x8xf32>
    %c4_37 = arith.constant 4 : index
    %c0_38 = arith.constant 0 : index
    %c0_39 = arith.constant 0 : index
    %34 = vector.load %arg2[%c4_37, %c0_38, %c0_39] : memref<8x8x8xf32, #tpu.memory_space<vmem>>, vector<1x8x8xf32>
    %35 = vector.shape_cast %34 : vector<1x8x8xf32> to vector<8x8xf32>
    %cst_40 = arith.constant dense<0.000000e+00> : vector<32x8xf32>
    %36 = tpu.matmul %33, %35, %cst_40 {dimension_numbers = #tpu.dot_dimension_numbers<[1], [0], [0], [1], [0, 0, 1, 1], [], []>} : vector<32x8xf32>, vector<8x8xf32>, vector<32x8xf32> -> vector<32x8xf32>
    %c0_41 = arith.constant 0 : index
    %c4_42 = arith.constant 4 : index
    %c0_43 = arith.constant 0 : index
    %37 = vector.load %arg3[%c0_41, %c4_42, %c0_43] : memref<32x8x8xf32, #tpu.memory_space<vmem>>, vector<32x1x8xf32>
    %38 = vector.shape_cast %37 : vector<32x1x8xf32> to vector<32x8xf32>
    %39 = vector.shape_cast %36 : vector<32x8xf32> to vector<32x1x8xf32>
    tpu.vector_store %arg3[%c0_41, %c4_42, %c0_43], %39 {strides = array<i32>} : memref<32x8x8xf32, #tpu.memory_space<vmem>>, vector<32x1x8xf32>,
    %c0_44 = arith.constant 0 : index
    %c5 = arith.constant 5 : index
    %c0_45 = arith.constant 0 : index
    %40 = vector.load %arg1[%c0_44, %c5, %c0_45] : memref<32x8x8xf32, #tpu.memory_space<vmem>>, vector<32x1x8xf32>
    %41 = vector.shape_cast %40 : vector<32x1x8xf32> to vector<32x8xf32>
    %c5_46 = arith.constant 5 : index
    %c0_47 = arith.constant 0 : index
    %c0_48 = arith.constant 0 : index
    %42 = vector.load %arg2[%c5_46, %c0_47, %c0_48] : memref<8x8x8xf32, #tpu.memory_space<vmem>>, vector<1x8x8xf32>
    %43 = vector.shape_cast %42 : vector<1x8x8xf32> to vector<8x8xf32>
    %cst_49 = arith.constant dense<0.000000e+00> : vector<32x8xf32>
    %44 = tpu.matmul %41, %43, %cst_49 {dimension_numbers = #tpu.dot_dimension_numbers<[1], [0], [0], [1], [0, 0, 1, 1], [], []>} : vector<32x8xf32>, vector<8x8xf32>, vector<32x8xf32> -> vector<32x8xf32>
    %c0_50 = arith.constant 0 : index
    %c5_51 = arith.constant 5 : index
    %c0_52 = arith.constant 0 : index
    %45 = vector.load %arg3[%c0_50, %c5_51, %c0_52] : memref<32x8x8xf32, #tpu.memory_space<vmem>>, vector<32x1x8xf32>
    %46 = vector.shape_cast %45 : vector<32x1x8xf32> to vector<32x8xf32>
    %47 = vector.shape_cast %44 : vector<32x8xf32> to vector<32x1x8xf32>
    tpu.vector_store %arg3[%c0_50, %c5_51, %c0_52], %47 {strides = array<i32>} : memref<32x8x8xf32, #tpu.memory_space<vmem>>, vector<32x1x8xf32>,
    %c0_53 = arith.constant 0 : index
    %c6 = arith.constant 6 : index
    %c0_54 = arith.constant 0 : index
    %48 = vector.load %arg1[%c0_53, %c6, %c0_54] : memref<32x8x8xf32, #tpu.memory_space<vmem>>, vector<32x1x8xf32>
    %49 = vector.shape_cast %48 : vector<32x1x8xf32> to vector<32x8xf32>
    %c6_55 = arith.constant 6 : index
    %c0_56 = arith.constant 0 : index
    %c0_57 = arith.constant 0 : index
    %50 = vector.load %arg2[%c6_55, %c0_56, %c0_57] : memref<8x8x8xf32, #tpu.memory_space<vmem>>, vector<1x8x8xf32>
    %51 = vector.shape_cast %50 : vector<1x8x8xf32> to vector<8x8xf32>
    %cst_58 = arith.constant dense<0.000000e+00> : vector<32x8xf32>
    %52 = tpu.matmul %49, %51, %cst_58 {dimension_numbers = #tpu.dot_dimension_numbers<[1], [0], [0], [1], [0, 0, 1, 1], [], []>} : vector<32x8xf32>, vector<8x8xf32>, vector<32x8xf32> -> vector<32x8xf32>
    %c0_59 = arith.constant 0 : index
    %c6_60 = arith.constant 6 : index
    %c0_61 = arith.constant 0 : index
    %53 = vector.load %arg3[%c0_59, %c6_60, %c0_61] : memref<32x8x8xf32, #tpu.memory_space<vmem>>, vector<32x1x8xf32>
    %54 = vector.shape_cast %53 : vector<32x1x8xf32> to vector<32x8xf32>
    %55 = vector.shape_cast %52 : vector<32x8xf32> to vector<32x1x8xf32>
    tpu.vector_store %arg3[%c0_59, %c6_60, %c0_61], %55 {strides = array<i32>} : memref<32x8x8xf32, #tpu.memory_space<vmem>>, vector<32x1x8xf32>,
    %c0_62 = arith.constant 0 : index
    %c7 = arith.constant 7 : index
    %c0_63 = arith.constant 0 : index
    %56 = vector.load %arg1[%c0_62, %c7, %c0_63] : memref<32x8x8xf32, #tpu.memory_space<vmem>>, vector<32x1x8xf32>
    %57 = vector.shape_cast %56 : vector<32x1x8xf32> to vector<32x8xf32>
    %c7_64 = arith.constant 7 : index
    %c0_65 = arith.constant 0 : index
    %c0_66 = arith.constant 0 : index
    %58 = vector.load %arg2[%c7_64, %c0_65, %c0_66] : memref<8x8x8xf32, #tpu.memory_space<vmem>>, vector<1x8x8xf32>
    %59 = vector.shape_cast %58 : vector<1x8x8xf32> to vector<8x8xf32>
    %cst_67 = arith.constant dense<0.000000e+00> : vector<32x8xf32>
    %60 = tpu.matmul %57, %59, %cst_67 {dimension_numbers = #tpu.dot_dimension_numbers<[1], [0], [0], [1], [0, 0, 1, 1], [], []>} : vector<32x8xf32>, vector<8x8xf32>, vector<32x8xf32> -> vector<32x8xf32>
    %c0_68 = arith.constant 0 : index
    %c7_69 = arith.constant 7 : index
    %c0_70 = arith.constant 0 : index
    %61 = vector.load %arg3[%c0_68, %c7_69, %c0_70] : memref<32x8x8xf32, #tpu.memory_space<vmem>>, vector<32x1x8xf32>
    %62 = vector.shape_cast %61 : vector<32x1x8xf32> to vector<32x8xf32>
    %63 = vector.shape_cast %60 : vector<32x8xf32> to vector<32x1x8xf32>
    tpu.vector_store %arg3[%c0_68, %c7_69, %c0_70], %63 {strides = array<i32>} : memref<32x8x8xf32, #tpu.memory_space<vmem>>, vector<32x1x8xf32>,
    return
  }
  func.func @transform_0(%arg0: i32) -> (i32, i32, i32) {
    %c0_i32 = arith.constant 0 : i32
    %c0_i32_0 = arith.constant 0 : i32
    %c0_i32_1 = arith.constant 0 : i32
    return %arg0, %c0_i32, %c0_i32_0 : i32, i32, i32
  }
  func.func @transform_1(%arg0: i32) -> (i32, i32, i32) {
    %c0_i32 = arith.constant 0 : i32
    %c0_i32_0 = arith.constant 0 : i32
    %c0_i32_1 = arith.constant 0 : i32
    %c0_i32_2 = arith.constant 0 : i32
    return %c0_i32, %c0_i32_0, %c0_i32_1 : i32, i32, i32
  }
  func.func @transform_2(%arg0: i32) -> (i32, i32, i32) {
    %c0_i32 = arith.constant 0 : i32
    %c0_i32_0 = arith.constant 0 : i32
    %c0_i32_1 = arith.constant 0 : i32
    return %arg0, %c0_i32, %c0_i32_0 : i32, i32, i32
  }
}

module attributes {stable_mosaic.version = 11 : i64} {
  func.func @kernel(%arg0: i32, %arg1: memref<64x4xf32, #tpu.memory_space<vmem>>, %arg2: memref<64x4xf32, #tpu.memory_space<vmem>>, %arg3: memref<4x8xf32, #tpu.memory_space<vmem>>, %arg4: memref<1x8xf32, #tpu.memory_space<vmem>>, %arg5: memref<8x4xf32, #tpu.memory_space<vmem>>, %arg6: memref<1x4xf32, #tpu.memory_space<vmem>>, %arg7: memref<4x8xf32, #tpu.memory_space<vmem>>, %arg8: memref<1x8xf32, #tpu.memory_space<vmem>>, %arg9: memref<8x4xf32, #tpu.memory_space<vmem>>, %arg10: memref<1x4xf32, #tpu.memory_space<vmem>>, %arg11: memref<64x4xf32, #tpu.memory_space<vmem>>, %arg12: memref<64x4xf32, #tpu.memory_space<vmem>>) attributes {dimension_semantics = [#tpu.dimension_semantics<parallel>], iteration_bounds = array<i64: 8>, scalar_prefetch = 0 : i64, scratch_operands = 0 : i64, tpu.core_type = #tpu.core_type<tc>, window_params = [{transform_indices = @transform_0, window_bounds = array<i64: 64, 4>}, {transform_indices = @transform_1, window_bounds = array<i64: 64, 4>}, {pipeline_mode = #tpu.pipeline_mode<synchronous>, transform_indices = @transform_2, window_bounds = array<i64: 4, 8>}, {pipeline_mode = #tpu.pipeline_mode<synchronous>, transform_indices = @transform_3, window_bounds = array<i64: 1, 8>}, {pipeline_mode = #tpu.pipeline_mode<synchronous>, transform_indices = @transform_4, window_bounds = array<i64: 8, 4>}, {pipeline_mode = #tpu.pipeline_mode<synchronous>, transform_indices = @transform_5, window_bounds = array<i64: 1, 4>}, {pipeline_mode = #tpu.pipeline_mode<synchronous>, transform_indices = @transform_6, window_bounds = array<i64: 4, 8>}, {pipeline_mode = #tpu.pipeline_mode<synchronous>, transform_indices = @transform_7, window_bounds = array<i64: 1, 8>}, {pipeline_mode = #tpu.pipeline_mode<synchronous>, transform_indices = @transform_8, window_bounds = array<i64: 8, 4>}, {pipeline_mode = #tpu.pipeline_mode<synchronous>, transform_indices = @transform_9, window_bounds = array<i64: 1, 4>}, {transform_indices = @transform_10, window_bounds = array<i64: 64, 4>}, {transform_indices = @transform_11, window_bounds = array<i64: 64, 4>}]} {
    %c0 = arith.constant 0 : index
    %c0_0 = arith.constant 0 : index
    %0 = vector.load %arg1[%c0, %c0_0] : memref<64x4xf32, #tpu.memory_space<vmem>>, vector<64x4xf32>
    %c0_1 = arith.constant 0 : index
    %c0_2 = arith.constant 0 : index
    %1 = vector.load %arg2[%c0_1, %c0_2] : memref<64x4xf32, #tpu.memory_space<vmem>>, vector<64x4xf32>
    %2 = arith.addf %0, %1 : vector<64x4xf32>
    %c0_3 = arith.constant 0 : index
    %c0_4 = arith.constant 0 : index
    %3 = vector.load %arg3[%c0_3, %c0_4] : memref<4x8xf32, #tpu.memory_space<vmem>>, vector<4x8xf32>
    %cst = arith.constant dense<0.000000e+00> : vector<64x8xf32>
    %4 = tpu.matmul %2, %3, %cst {dimension_numbers = #tpu.dot_dimension_numbers<[1], [0], [0], [1], [0, 0, 1, 1], [], []>} : vector<64x4xf32>, vector<4x8xf32>, vector<64x8xf32> -> vector<64x8xf32>
    %c0_5 = arith.constant 0 : index
    %c0_6 = arith.constant 0 : index
    %5 = vector.load %arg4[%c0_5, %c0_6] : memref<1x8xf32, #tpu.memory_space<vmem>>, vector<1x8xf32>
    %6 = vector.broadcast %5 : vector<1x8xf32> to vector<64x8xf32>
    %7 = arith.addf %4, %6 : vector<64x8xf32>
    %cst_7 = arith.constant 0.000000e+00 : f32
    %8 = vector.broadcast %cst_7 : f32 to vector<64x8xf32>
    %9 = arith.maximumf %7, %8 : vector<64x8xf32>
    %c0_8 = arith.constant 0 : index
    %c0_9 = arith.constant 0 : index
    %10 = vector.load %arg5[%c0_8, %c0_9] : memref<8x4xf32, #tpu.memory_space<vmem>>, vector<8x4xf32>
    %cst_10 = arith.constant dense<0.000000e+00> : vector<64x4xf32>
    %11 = tpu.matmul %9, %10, %cst_10 {dimension_numbers = #tpu.dot_dimension_numbers<[1], [0], [0], [1], [0, 0, 1, 1], [], []>} : vector<64x8xf32>, vector<8x4xf32>, vector<64x4xf32> -> vector<64x4xf32>
    %c0_11 = arith.constant 0 : index
    %c0_12 = arith.constant 0 : index
    %12 = vector.load %arg6[%c0_11, %c0_12] : memref<1x4xf32, #tpu.memory_space<vmem>>, vector<1x4xf32>
    %13 = vector.broadcast %12 : vector<1x4xf32> to vector<64x4xf32>
    %14 = arith.addf %11, %13 : vector<64x4xf32>
    %c0_13 = arith.constant 0 : index
    %c0_14 = arith.constant 0 : index
    %15 = vector.load %arg11[%c0_13, %c0_14] : memref<64x4xf32, #tpu.memory_space<vmem>>, vector<64x4xf32>
    tpu.vector_store %arg11[%c0_13, %c0_14], %14 {strides = array<i32>} : memref<64x4xf32, #tpu.memory_space<vmem>>, vector<64x4xf32>,
    %c0_15 = arith.constant 0 : index
    %c0_16 = arith.constant 0 : index
    %16 = vector.load %arg7[%c0_15, %c0_16] : memref<4x8xf32, #tpu.memory_space<vmem>>, vector<4x8xf32>
    %cst_17 = arith.constant dense<0.000000e+00> : vector<64x8xf32>
    %17 = tpu.matmul %2, %16, %cst_17 {dimension_numbers = #tpu.dot_dimension_numbers<[1], [0], [0], [1], [0, 0, 1, 1], [], []>} : vector<64x4xf32>, vector<4x8xf32>, vector<64x8xf32> -> vector<64x8xf32>
    %c0_18 = arith.constant 0 : index
    %c0_19 = arith.constant 0 : index
    %18 = vector.load %arg8[%c0_18, %c0_19] : memref<1x8xf32, #tpu.memory_space<vmem>>, vector<1x8xf32>
    %19 = vector.broadcast %18 : vector<1x8xf32> to vector<64x8xf32>
    %20 = arith.addf %17, %19 : vector<64x8xf32>
    %cst_20 = arith.constant 0.000000e+00 : f32
    %21 = vector.broadcast %cst_20 : f32 to vector<64x8xf32>
    %22 = arith.maximumf %20, %21 : vector<64x8xf32>
    %c0_21 = arith.constant 0 : index
    %c0_22 = arith.constant 0 : index
    %23 = vector.load %arg9[%c0_21, %c0_22] : memref<8x4xf32, #tpu.memory_space<vmem>>, vector<8x4xf32>
    %cst_23 = arith.constant dense<0.000000e+00> : vector<64x4xf32>
    %24 = tpu.matmul %22, %23, %cst_23 {dimension_numbers = #tpu.dot_dimension_numbers<[1], [0], [0], [1], [0, 0, 1, 1], [], []>} : vector<64x8xf32>, vector<8x4xf32>, vector<64x4xf32> -> vector<64x4xf32>
    %c0_24 = arith.constant 0 : index
    %c0_25 = arith.constant 0 : index
    %25 = vector.load %arg10[%c0_24, %c0_25] : memref<1x4xf32, #tpu.memory_space<vmem>>, vector<1x4xf32>
    %26 = vector.broadcast %25 : vector<1x4xf32> to vector<64x4xf32>
    %27 = arith.addf %24, %26 : vector<64x4xf32>
    %c0_26 = arith.constant 0 : index
    %c0_27 = arith.constant 0 : index
    %28 = vector.load %arg12[%c0_26, %c0_27] : memref<64x4xf32, #tpu.memory_space<vmem>>, vector<64x4xf32>
    tpu.vector_store %arg12[%c0_26, %c0_27], %27 {strides = array<i32>} : memref<64x4xf32, #tpu.memory_space<vmem>>, vector<64x4xf32>,
    return
  }
  func.func @transform_0(%arg0: i32) -> (i32, i32) {
    %c0_i32 = arith.constant 0 : i32
    %c0_i32_0 = arith.constant 0 : i32
    return %arg0, %c0_i32 : i32, i32
  }
  func.func @transform_1(%arg0: i32) -> (i32, i32) {
    %c0_i32 = arith.constant 0 : i32
    %c0_i32_0 = arith.constant 0 : i32
    return %arg0, %c0_i32 : i32, i32
  }
  func.func @transform_2(%arg0: i32) -> (i32, i32) {
    %c0_i32 = arith.constant 0 : i32
    %c0_i32_0 = arith.constant 0 : i32
    %c0_i32_1 = arith.constant 0 : i32
    return %c0_i32, %c0_i32_0 : i32, i32
  }
  func.func @transform_3(%arg0: i32) -> (i32, i32) {
    %c0_i32 = arith.constant 0 : i32
    %c0_i32_0 = arith.constant 0 : i32
    %c0_i32_1 = arith.constant 0 : i32
    return %c0_i32, %c0_i32_0 : i32, i32
  }
  func.func @transform_4(%arg0: i32) -> (i32, i32) {
    %c0_i32 = arith.constant 0 : i32
    %c0_i32_0 = arith.constant 0 : i32
    %c0_i32_1 = arith.constant 0 : i32
    return %c0_i32, %c0_i32_0 : i32, i32
  }
  func.func @transform_5(%arg0: i32) -> (i32, i32) {
    %c0_i32 = arith.constant 0 : i32
    %c0_i32_0 = arith.constant 0 : i32
    %c0_i32_1 = arith.constant 0 : i32
    return %c0_i32, %c0_i32_0 : i32, i32
  }
  func.func @transform_6(%arg0: i32) -> (i32, i32) {
    %c0_i32 = arith.constant 0 : i32
    %c0_i32_0 = arith.constant 0 : i32
    %c0_i32_1 = arith.constant 0 : i32
    return %c0_i32, %c0_i32_0 : i32, i32
  }
  func.func @transform_7(%arg0: i32) -> (i32, i32) {
    %c0_i32 = arith.constant 0 : i32
    %c0_i32_0 = arith.constant 0 : i32
    %c0_i32_1 = arith.constant 0 : i32
    return %c0_i32, %c0_i32_0 : i32, i32
  }
  func.func @transform_8(%arg0: i32) -> (i32, i32) {
    %c0_i32 = arith.constant 0 : i32
    %c0_i32_0 = arith.constant 0 : i32
    %c0_i32_1 = arith.constant 0 : i32
    return %c0_i32, %c0_i32_0 : i32, i32
  }
  func.func @transform_9(%arg0: i32) -> (i32, i32) {
    %c0_i32 = arith.constant 0 : i32
    %c0_i32_0 = arith.constant 0 : i32
    %c0_i32_1 = arith.constant 0 : i32
    return %c0_i32, %c0_i32_0 : i32, i32
  }
  func.func @transform_10(%arg0: i32) -> (i32, i32) {
    %c0_i32 = arith.constant 0 : i32
    %c0_i32_0 = arith.constant 0 : i32
    return %arg0, %c0_i32 : i32, i32
  }
  func.func @transform_11(%arg0: i32) -> (i32, i32) {
    %c0_i32 = arith.constant 0 : i32
    %c0_i32_0 = arith.constant 0 : i32
    return %arg0, %c0_i32 : i32, i32
  }
}

</mosaic_0001>

<bundles_post_ra>
// kernel: neg.3
= control target key start
LH: loop header
LB: loop body
LE: loop exit
PB: predicated region body
PF: predicated region fallthrough
CT: control target
= control target key end

     0   :  { %s72_s0 = inlined_call_operand.vmem [shape: f32[8,4,4], index: 0, kind: input, shape index: {}]   ;;  %s73_s1 = inlined_call_operand.vmem [shape: f32[8,4,4], index: 1, kind: output, shape index: {}]  }
   0x1   :  { %v2_v0 = vld [vmem:[%s72_s0] sm:$0xf]  ;;  %v32_v1 = vld [vmem:[%s72_s0 + $0x4] sm:$0xf]  ;;  %v34_v2 = vld [vmem:[%s72_s0 + $0x8] sm:$0xf] }
   0x2   :  { %v5_v3 = vxor.u32 2147483648, %v2_v0  ;;  %v12_v4 = vxor.u32 2147483648, %v32_v1  ;;  %v20_v5 = vxor.u32 2147483648, %v34_v2  ;;  %v36_v6 = vld [vmem:[%s72_s0 + $0xc] sm:$0xf] }
   0x3   :  { %v28_v7 = vxor.u32 2147483648, %v36_v6 }
   0x4   :  { %7 = vst [vmem:[%s73_s1] sm:$0xf] %v5_v3  ;;  %33 = vst [vmem:[%s73_s1 + $0x4] sm:$0xf] %v12_v4 }
   0x5   :  { %35 = vst [vmem:[%s73_s1 + $0x8] sm:$0xf] %v20_v5  ;;  %37 = vst [vmem:[%s73_s1 + $0xc] sm:$0xf] %v28_v7 }

// kernel: reverse.6
= control target key start
LH: loop header
LB: loop body
LE: loop exit
PB: predicated region body
PF: predicated region fallthrough
CT: control target
= control target key end

     0   :  { %v2_v0 = vlaneseq  ;;  %s412_s0 = inlined_call_operand.vmem [shape: f32[2,16,4,7], index: 0, kind: input, shape index: {}]   ;;  %s413_s1 = inlined_call_operand.vmem [shape: f32[2,16,4,7], index: 1, kind: output, shape index: {}]  }
   0x1   :  { %v66_v2 = vld [vmem:[%s412_s0 + $0x10] sm:$0xff]  ;;  %v62_v3 = vld [vmem:[%s412_s0] sm:$0xff]  ;;  %v68_v4 = vld [vmem:[%s412_s0 + $0x18] sm:$0xff] }
   0x2   :  { %v3_v1 = vsub.s32 6, %v2_v0  ;;  %v64_v5 = vld [vmem:[%s412_s0 + $0x8] sm:$0xff]  ;;  %v70_v7 = vld [vmem:[%s412_s0 + $0x20] sm:$0xff]  ;;  %v76_v8 = vld [vmem:[%s412_s0 + $0x38] sm:$0xff] }
   0x3   :  { %v72_v6 = vld [vmem:[%s412_s0 + $0x28] sm:$0xff]  ;;  %v74_v9 = vld [vmem:[%s412_s0 + $0x30] sm:$0xff]  ;;  %v78_v11 = vld [vmem:[%s412_s0 + $0x40] sm:$0xff] }
   0x4   :  { %4 = vset.pattern.permute.xlu0 %v3_v1  ;;  %305 = vset.pattern.permute.xlu1 %v3_v1  ;;  %v80_v10 = vld [vmem:[%s412_s0 + $0x48] sm:$0xff]  ;;  %v84_v12 = vld [vmem:[%s412_s0 + $0x58] sm:$0xff]  ;;  %v82_v13 = vld [vmem:[%s412_s0 + $0x50] sm:$0xff] }
   0x5   :  { %110 = vperm.xlu1 %305, %v66_v2   ;;  %98 = vperm.xlu0 %4, %v62_v3   ;;  %v88_v14 = vld [vmem:[%s412_s0 + $0x68] sm:$0xff]  ;;  %v86_v15 = vld [vmem:[%s412_s0 + $0x60] sm:$0xff]  ;;  %v92_v16 = vld [vmem:[%s412_s0 + $0x78] sm:$0xff] }
   0x6   :  { %v90_v17 = vld [vmem:[%s412_s0 + $0x70] sm:$0xff] }
   0x9   :  { %116 = vperm.xlu1 %305, %v68_v4   ;;  %104 = vperm.xlu0 %4, %v64_v5  }
   0xd   :  { %128 = vperm.xlu1 %305, %v72_v6   ;;  %122 = vperm.xlu0 %4, %v70_v7  }
  0x11   :  { %140 = vperm.xlu1 %305, %v76_v8   ;;  %134 = vperm.xlu0 %4, %v74_v9  }
  0x15   :  { %152 = vperm.xlu1 %305, %v80_v10   ;;  %146 = vperm.xlu0 %4, %v78_v11  }
  0x19   :  { %164 = vperm.xlu1 %305, %v84_v12   ;;  %158 = vperm.xlu0 %4, %v82_v13  }
  0x1d   :  { %176 = vperm.xlu1 %305, %v88_v14   ;;  %170 = vperm.xlu0 %4, %v86_v15  }
  0x21   :  { %188 = vperm.xlu1 %305, %v92_v16   ;;  %182 = vperm.xlu0 %4, %v90_v17  }
  0x84   :  { %v111_v18 = vpop.permute.xlu1 %110  ;;  %v99_v19 = vpop.permute.xlu0 %98 }
  0x85   :  { %253 = vst [vmem:[%s413_s1 + $0x10] sm:$0xff] %v111_v18  ;;  %249 = vst [vmem:[%s413_s1] sm:$0xff] %v99_v19 }
  0x88   :  { %v117_v20 = vpop.permute.xlu1 %116  ;;  %v105_v21 = vpop.permute.xlu0 %104 }
  0x89   :  { %255 = vst [vmem:[%s413_s1 + $0x18] sm:$0xff] %v117_v20  ;;  %251 = vst [vmem:[%s413_s1 + $0x8] sm:$0xff] %v105_v21 }
  0x8c   :  { %v129_v22 = vpop.permute.xlu1 %128  ;;  %v123_v23 = vpop.permute.xlu0 %122 }
  0x8d   :  { %259 = vst [vmem:[%s413_s1 + $0x28] sm:$0xff] %v129_v22  ;;  %257 = vst [vmem:[%s413_s1 + $0x20] sm:$0xff] %v123_v23 }
  0x90   :  { %v141_v24 = vpop.permute.xlu1 %140  ;;  %v135_v25 = vpop.permute.xlu0 %134 }
  0x91   :  { %263 = vst [vmem:[%s413_s1 + $0x38] sm:$0xff] %v141_v24  ;;  %261 = vst [vmem:[%s413_s1 + $0x30] sm:$0xff] %v135_v25 }
  0x94   :  { %v153_v26 = vpop.permute.xlu1 %152  ;;  %v147_v27 = vpop.permute.xlu0 %146 }
  0x95   :  { %267 = vst [vmem:[%s413_s1 + $0x48] sm:$0xff] %v153_v26  ;;  %265 = vst [vmem:[%s413_s1 + $0x40] sm:$0xff] %v147_v27 }
  0x98   :  { %v165_v28 = vpop.permute.xlu1 %164  ;;  %v159_v29 = vpop.permute.xlu0 %158 }
  0x99   :  { %271 = vst [vmem:[%s413_s1 + $0x58] sm:$0xff] %v165_v28  ;;  %269 = vst [vmem:[%s413_s1 + $0x50] sm:$0xff] %v159_v29 }
  0x9c   :  { %v177_v30 = vpop.permute.xlu1 %176  ;;  %v171_v31 = vpop.permute.xlu0 %170 }
  0x9d   :  { %275 = vst [vmem:[%s413_s1 + $0x68] sm:$0xff] %v177_v30  ;;  %273 = vst [vmem:[%s413_s1 + $0x60] sm:$0xff] %v171_v31 }
  0xa0   :  { %v189_v32 = vpop.permute.xlu1 %188  ;;  %v183_v33 = vpop.permute.xlu0 %182 }
  0xa1   :  { %279 = vst [vmem:[%s413_s1 + $0x78] sm:$0xff] %v189_v32  ;;  %277 = vst [vmem:[%s413_s1 + $0x70] sm:$0xff] %v183_v33 }

// kernel: decom_spectral_conv2d.5
= control target key start
LH: loop header
LB: loop body
LE: loop exit
PB: predicated region body
PF: predicated region fallthrough
CT: control target
= control target key end

     0   :  { %s1338_s17 = smov 0   ;;  %s1443_s0 = inlined_call_operand.vmem [shape: f32[512,4], index: 0, kind: input, shape index: {}]   ;;  %s1444_s1 = inlined_call_operand.vmem [shape: f32[512,4], index: 1, kind: input, shape index: {}]   ;;  %s1445_s2 = inlined_call_operand.vmem [shape: f32[4,8], index: 2, kind: input, shape index: {}]   ;;  %s1446_s3 = inlined_call_operand.vmem [shape: f32[1,8], index: 3, kind: input, shape index: {}]   ;;  %s1447_s4 = inlined_call_operand.vmem [shape: f32[8,4], index: 4, kind: input, shape index: {}]   ;;  %s1448_s5 = inlined_call_operand.vmem [shape: f32[1,4], index: 5, kind: input, shape index: {}]   ;;  %s1449_s6 = inlined_call_operand.vmem [shape: f32[4,8], index: 6, kind: input, shape index: {}]   ;;  %s1450_s7 = inlined_call_operand.vmem [shape: f32[1,8], index: 7, kind: input, shape index: {}]   ;;  %s1451_s8 = inlined_call_operand.vmem [shape: f32[8,4], index: 8, kind: input, shape index: {}]   ;;  %s1452_s9 = inlined_call_operand.vmem [shape: f32[1,4], index: 9, kind: input, shape index: {}]   ;;  %s1453_s10 = inlined_call_operand.vmem [shape: f32[512,4], index: 10, kind: output, shape index: {0}]   ;;  %s1454_s11 = inlined_call_operand.vmem [shape: f32[512,4], index: 11, kind: output, shape index: {1}]  }
   0x1 LB: > { %s1117_s18 = sadd.s32 4294967295, %s1276_s17   ;;  %p1121_p0 = scmp.ge.s32.totalorder %s1276_s17, 1  ;;  %s1276_s17 = sphi %s1338_s17, %s22_s17  }
   0x2   : > { %p352_p1 = scmp.lt.s32.totalorder %s1276_s17, 9 }
   0x4   : > { %p353_p2 = pnand %p1121_p0, %p352_p1 }
   0x5   : > { %v450_v0 = vld [vmem:[%s1445_s2] sm:$0xf] (!%p353_p2)  ;;  %vm483_vm0 = vcmask (!%p353_p2), 1043456   ;;  %s1122_s21 = sshll.u32 (!%p353_p2), %s1117_s18, 3  ;;  %vm458_vm1 = vcmask (!%p353_p2), 31744   ;;  %vm608_vm2 = vcmask (!%p353_p2), 64512  }
   0x6   : > { %356 = sbr.rel (%p353_p2) target bundleno = 483 (0x1e3), region = 60  ;;  %1206 = vmatprep.subr.msk.mxu0 (!%p353_p2), %vm483_vm0, %v450_v0  ;;  %p403_p3 = scmp.lt.s32.totalorder (!%p353_p2), %s1122_s21, 63  ;;  %v746_v1 = vld [vmem:[%s1449_s6] sm:$0xf] (!%p353_p2) }
   0x7   : > { %1207 = vmatpush3.msk.msra.mxu0 (!%p353_p2), %vm483_vm0, %v450_v0  ;;  %v600_v26 = vld [vmem:[%s1447_s4] sm:$0xff] (!%p353_p2) }
   0x8   : > { %1234 = vmatprep.subr.msk.mxu0 (!%p353_p2), %vm483_vm0, %v746_v1  ;;  %1220 = vmatprep.subr.mxu1 (!%p353_p2), %v600_v26  ;;  %v870_v27 = vld [vmem:[%s1451_s8] sm:$0xff] (!%p353_p2) }
   0x9   : > { %1221 = vmatpush3.msra.mxu1 (!%p353_p2), %v600_v26  ;;  %v1130_v28 = vld [vmem:[%s1446_s3] ss:$0 sm:$0xff] (!%p353_p2) }
   0xa   : > { %1248 = vmatprep.subr.mxu1 (!%p353_p2), %v870_v27  ;;  %v1149_v51 = vld [vmem:[%s1450_s7] ss:$0 sm:$0xff] (!%p353_p2) }
   0xd   : > { %s1456_s21 = smov (!%p403_p3, %s1122_s21), 63 }
   0xe   : > { %s1355_s24 = sshll.u32 %s1456_s21, 3 }
   0xf   : > { %s406_s27 = scalar_lea.vmem %s1443_s0, %s1355_s24  ;;  %s412_s30 = scalar_lea.vmem %s1444_s1, %s1355_s24 }
  0x10   : > { %v426_v2 = vld [vmem:[%s406_s27] sm:$0xff]  ;;  %v427_v4 = vld [vmem:[%s406_s27 + $0x8] sm:$0xff]  ;;  %v428_v7 = vld [vmem:[%s406_s27 + $0x10] sm:$0xff]  ;;  %s418_s26 = scalar_lea.vmem %s1453_s10, %s1355_s24  ;;  %s424_s12 = scalar_lea.vmem %s1454_s11, %s1355_s24 }
  0x11   : > { %v434_v3 = vld [vmem:[%s412_s30] sm:$0xff]  ;;  %v435_v6 = vld [vmem:[%s412_s30 + $0x8] sm:$0xff]  ;;  %v436_v8 = vld [vmem:[%s412_s30 + $0x10] sm:$0xff] }
  0x12   : > { %v442_v5 = vadd.f32 %v434_v3, %v426_v2  ;;  %v443_v9 = vadd.f32 %v435_v6, %v427_v4  ;;  %v444_v10 = vadd.f32 %v436_v8, %v428_v7  ;;  %v429_v11 = vld [vmem:[%s406_s27 + $0x18] sm:$0xff]  ;;  %v430_v13 = vld [vmem:[%s406_s27 + $0x20] sm:$0xff]  ;;  %v431_v17 = vld [vmem:[%s406_s27 + $0x28] sm:$0xff] }
  0x13   : > { %v437_v12 = vld [vmem:[%s412_s30 + $0x18] sm:$0xff]  ;;  %v438_v14 = vld [vmem:[%s412_s30 + $0x20] sm:$0xff]  ;;  %v439_v18 = vld [vmem:[%s412_s30 + $0x28] sm:$0xff] }
  0x14   : > { %1208 = vmatprep.mubr.msk.f32.mxu0 %vm458_vm1, %v442_v5  ;;  %v445_v15 = vadd.f32 %v437_v12, %v429_v11  ;;  %v446_v16 = vadd.f32 %v438_v14, %v430_v13  ;;  %v432_v19 = vld [vmem:[%s406_s27 + $0x30] sm:$0xff]  ;;  %v447_v21 = vadd.f32 %v439_v18, %v431_v17  ;;  %v433_v23 = vld [vmem:[%s406_s27 + $0x38] sm:$0xff]  ;;  %v1140_v14 = vld [vmem:[%s1448_s5] ss:$0 sm:$0xff] }
  0x15   : > { %1209 = vmatmul.mubr.msk.f32.vlgmr.msra.gmra.mrb[0].mxu0 %vm458_vm1, %v443_v9  ;;  %v440_v20 = vld [vmem:[%s412_s30 + $0x30] sm:$0xff]  ;;  %v441_v24 = vld [vmem:[%s412_s30 + $0x38] sm:$0xff] }
  0x16   : > { %1235 = vmatpush3.msk.msra.mxu0 %vm483_vm0, %v746_v1  ;;  %1211 = vmatprep.mubr.msk.f32.mxu0 %vm458_vm1, %v444_v10  ;;  %v448_v22 = vadd.f32 %v440_v20, %v432_v19  ;;  %v449_v25 = vadd.f32 %v441_v24, %v433_v23 }
  0x19   : > { %1212 = vmatmul.mubr.msk.f32.gmra.mrb[2].mxu0 %vm458_vm1, %v445_v15 }
  0x1a   : > { %1214 = vmatprep.mubr.msk.f32.mxu0 %vm458_vm1, %v446_v16 }
  0x1d   : > { %1215 = vmatmul.mubr.msk.f32.gmra.mrb[4].mxu0 %vm458_vm1, %v447_v21 }
  0x1e   : > { %1217 = vmatprep.mubr.msk.f32.mxu0 %vm458_vm1, %v448_v22 }
  0x21   : > { %1218 = vmatmul.mubr.msk.f32.gmra.mrb[6].mxu0 %vm458_vm1, %v449_v25 }
  0x22   : > { %1236 = vmatprep.mubr.msk.f32.mxu0 %vm458_vm1, %v442_v5 }
  0x25   : > { %1237 = vmatmul.mubr.msk.f32.vlgmr.msra.gmra.mrb[8].mxu0 %vm458_vm1, %v443_v9 }
  0x26   : > { %1239 = vmatprep.mubr.msk.f32.mxu0 %vm458_vm1, %v444_v10 }
  0x29   : > { %1240 = vmatmul.mubr.msk.f32.gmra.mrb[10].mxu0 %vm458_vm1, %v445_v15 }
  0x2a   : > { %1242 = vmatprep.mubr.msk.f32.mxu0 %vm458_vm1, %v446_v16 }
  0x2d   : > { %1243 = vmatmul.mubr.msk.f32.gmra.mrb[12].mxu0 %vm458_vm1, %v447_v21 }
  0x2e   : > { %1245 = vmatprep.mubr.msk.f32.mxu0 %vm458_vm1, %v448_v22 }
  0x31   : > { %1246 = vmatmul.mubr.msk.f32.gmra.mrb[14].mxu0 %vm458_vm1, %v449_v25 }
  0xe8   : > { %v1210_v29 = vpop.f32.mrb[0].mxu0 }
  0xe9   : > { %v559_v30 = vadd.f32 %v1210_v29, %v1130_v28  ;;  %v553_v31 = vpop.f32.mrb[1].mxu0 }
  0xea   : > { %v554_v32 = vadd.f32 %v1130_v28, %v553_v31  ;;  %v1159_v31 = vld [vmem:[%s1452_s9] ss:$0 sm:$0xff] }
  0xeb   : > { %v593_v35 = vmax.f32 %v559_v30, 0.0 }
  0xec   : > { %v592_v33 = vmax.f32 %v554_v32, 0.0  ;;  %v1213_v34 = vpop.f32.mrb[2].mxu0 }
  0xed   : > { %v569_v36 = vadd.f32 %v1213_v34, %v1130_v28  ;;  %v563_v37 = vpop.f32.mrb[3].mxu0 }
  0xee   : > { %v564_v38 = vadd.f32 %v1130_v28, %v563_v37  ;;  %1222 = vmatprep.mubr.msk.f32.mxu1 %vm608_vm2, %v592_v33 }
  0xef   : > { %1223 = vmatmul.mubr.msk.f32.vlgmr.msra.gmra.mrb[0].mxu1 %vm608_vm2, %v593_v35  ;;  %v595_v41 = vmax.f32 %v569_v36, 0.0 }
  0xf0   : > { %v594_v39 = vmax.f32 %v564_v38, 0.0  ;;  %1249 = vmatpush3.msra.mxu1 %v870_v27  ;;  %v1216_v40 = vpop.f32.mrb[4].mxu0 }
  0xf1   : > { %v579_v42 = vadd.f32 %v1216_v40, %v1130_v28  ;;  %v573_v43 = vpop.f32.mrb[5].mxu0 }
  0xf2   : > { %v574_v44 = vadd.f32 %v1130_v28, %v573_v43  ;;  %1225 = vmatprep.mubr.msk.f32.mxu1 %vm608_vm2, %v594_v39 }
  0xf3   : > { %1226 = vmatmul.mubr.msk.f32.gmra.mrb[2].mxu1 %vm608_vm2, %v595_v41  ;;  %v597_v47 = vmax.f32 %v579_v42, 0.0 }
  0xf4   : > { %v596_v45 = vmax.f32 %v574_v44, 0.0  ;;  %v1219_v46 = vpop.f32.mrb[6].mxu0 }
  0xf5   : > { %v589_v48 = vadd.f32 %v1219_v46, %v1130_v28  ;;  %v583_v49 = vpop.f32.mrb[7].mxu0 }
  0xf6   : > { %v584_v50 = vadd.f32 %v1130_v28, %v583_v49  ;;  %1228 = vmatprep.mubr.msk.f32.mxu1 %vm608_vm2, %v596_v45 }
  0xf7   : > { %1229 = vmatmul.mubr.msk.f32.gmra.mrb[4].mxu1 %vm608_vm2, %v597_v47  ;;  %v599_v54 = vmax.f32 %v589_v48, 0.0 }
  0xf8   : > { %v598_v52 = vmax.f32 %v584_v50, 0.0  ;;  %v1238_v53 = vpop.f32.mrb[8].mxu0 }
  0xf9   : > { %v829_v55 = vadd.f32 %v1238_v53, %v1149_v51  ;;  %v823_v56 = vpop.f32.mrb[9].mxu0 }
  0xfa   : > { %v824_v57 = vadd.f32 %v1149_v51, %v823_v56  ;;  %1231 = vmatprep.mubr.msk.f32.mxu1 %vm608_vm2, %v598_v52 }
  0xfb   : > { %1232 = vmatmul.mubr.msk.f32.gmra.mrb[6].mxu1 %vm608_vm2, %v599_v54  ;;  %v863_v60 = vmax.f32 %v829_v55, 0.0 }
  0xfc   : > { %v862_v58 = vmax.f32 %v824_v57, 0.0  ;;  %v1241_v59 = vpop.f32.mrb[10].mxu0 }
  0xfd   : > { %v839_v61 = vadd.f32 %v1241_v59, %v1149_v51  ;;  %v833_v62 = vpop.f32.mrb[11].mxu0 }
  0xfe   : > { %v834_v63 = vadd.f32 %v1149_v51, %v833_v62  ;;  %1250 = vmatprep.mubr.msk.f32.mxu1 %vm608_vm2, %v862_v58 }
  0xff   : > { %1251 = vmatmul.mubr.msk.f32.vlgmr.msra.gmra.mrb[8].mxu1 %vm608_vm2, %v863_v60  ;;  %v865_v2 = vmax.f32 %v839_v61, 0.0 }
 0x100   : > { %v864_v0 = vmax.f32 %v834_v63, 0.0  ;;  %v1244_v1 = vpop.f32.mrb[12].mxu0 }
 0x101   : > { %v849_v3 = vadd.f32 %v1244_v1, %v1149_v51  ;;  %v843_v4 = vpop.f32.mrb[13].mxu0 }
 0x102   : > { %v844_v5 = vadd.f32 %v1149_v51, %v843_v4  ;;  %1253 = vmatprep.mubr.msk.f32.mxu1 %vm608_vm2, %v864_v0 }
 0x103   : > { %1254 = vmatmul.mubr.msk.f32.gmra.mrb[10].mxu1 %vm608_vm2, %v865_v2  ;;  %v867_v8 = vmax.f32 %v849_v3, 0.0 }
 0x104   : > { %v866_v6 = vmax.f32 %v844_v5, 0.0  ;;  %v1247_v7 = vpop.f32.mrb[14].mxu0 }
 0x105   : > { %v859_v9 = vadd.f32 %v1247_v7, %v1149_v51  ;;  %v853_v10 = vpop.f32.mrb[15].mxu0 }
 0x106   : > { %v854_v11 = vadd.f32 %v1149_v51, %v853_v10  ;;  %1256 = vmatprep.mubr.msk.f32.mxu1 %vm608_vm2, %v866_v6 }
 0x107   : > { %1257 = vmatmul.mubr.msk.f32.gmra.mrb[12].mxu1 %vm608_vm2, %v867_v8  ;;  %v869_v13 = vmax.f32 %v859_v9, 0.0 }
 0x108   : > { %v868_v12 = vmax.f32 %v854_v11, 0.0 }
 0x10a   : > { %1259 = vmatprep.mubr.msk.f32.mxu1 %vm608_vm2, %v868_v12 }
 0x10b   : > { %1260 = vmatmul.mubr.msk.f32.gmra.mrb[14].mxu1 %vm608_vm2, %v869_v13 }
 0x1c2   : > { %v1224_v15 = vpop.f32.mrb[0].mxu1 }
 0x1c3   : > { %v705_v16 = vadd.f32 %v1224_v15, %v1140_v14  ;;  %v699_v17 = vpop.f32.mrb[1].mxu1 }
 0x1c4   : > { %v700_v18 = vadd.f32 %v1140_v14, %v699_v17 }
 0x1c5   : > { %739 = vst.msk [vmem:[%s418_s26 + $0x8] sm:$0xff] %vm458_vm1, %v705_v16 }
 0x1c6   : > { %738 = vst.msk [vmem:[%s418_s26] sm:$0xff] %vm458_vm1, %v700_v18  ;;  %v1227_v19 = vpop.f32.mrb[2].mxu1 }
 0x1c7   : > { %v715_v20 = vadd.f32 %v1227_v19, %v1140_v14  ;;  %v709_v21 = vpop.f32.mrb[3].mxu1 }
 0x1c8   : > { %v710_v22 = vadd.f32 %v1140_v14, %v709_v21 }
 0x1c9   : > { %741 = vst.msk [vmem:[%s418_s26 + $0x18] sm:$0xff] %vm458_vm1, %v715_v20 }
 0x1ca   : > { %740 = vst.msk [vmem:[%s418_s26 + $0x10] sm:$0xff] %vm458_vm1, %v710_v22  ;;  %v1230_v23 = vpop.f32.mrb[4].mxu1 }
 0x1cb   : > { %v725_v24 = vadd.f32 %v1230_v23, %v1140_v14  ;;  %v719_v25 = vpop.f32.mrb[5].mxu1 }
 0x1cc   : > { %v720_v26 = vadd.f32 %v1140_v14, %v719_v25 }
 0x1cd   : > { %743 = vst.msk [vmem:[%s418_s26 + $0x28] sm:$0xff] %vm458_vm1, %v725_v24 }
 0x1ce   : > { %742 = vst.msk [vmem:[%s418_s26 + $0x20] sm:$0xff] %vm458_vm1, %v720_v26  ;;  %v1233_v27 = vpop.f32.mrb[6].mxu1 }
 0x1cf   : > { %v735_v28 = vadd.f32 %v1233_v27, %v1140_v14  ;;  %v729_v29 = vpop.f32.mrb[7].mxu1 }
 0x1d0   : > { %v730_v30 = vadd.f32 %v1140_v14, %v729_v29 }
 0x1d1   : > { %745 = vst.msk [vmem:[%s418_s26 + $0x38] sm:$0xff] %vm458_vm1, %v735_v28 }
 0x1d2   : > { %744 = vst.msk [vmem:[%s418_s26 + $0x30] sm:$0xff] %vm458_vm1, %v730_v30  ;;  %v1252_v32 = vpop.f32.mrb[8].mxu1 }
 0x1d3   : > { %v974_v33 = vadd.f32 %v1252_v32, %v1159_v31  ;;  %v968_v34 = vpop.f32.mrb[9].mxu1 }
 0x1d4   : > { %v969_v35 = vadd.f32 %v1159_v31, %v968_v34 }
 0x1d5   : > { %1008 = vst.msk [vmem:[%s424_s12 + $0x8] sm:$0xff] %vm458_vm1, %v974_v33 }
 0x1d6   : > { %1007 = vst.msk [vmem:[%s424_s12] sm:$0xff] %vm458_vm1, %v969_v35  ;;  %v1255_v36 = vpop.f32.mrb[10].mxu1 }
 0x1d7   : > { %v984_v37 = vadd.f32 %v1255_v36, %v1159_v31  ;;  %v978_v38 = vpop.f32.mrb[11].mxu1 }
 0x1d8   : > { %v979_v39 = vadd.f32 %v1159_v31, %v978_v38 }
 0x1d9   : > { %1010 = vst.msk [vmem:[%s424_s12 + $0x18] sm:$0xff] %vm458_vm1, %v984_v37 }
 0x1da   : > { %1009 = vst.msk [vmem:[%s424_s12 + $0x10] sm:$0xff] %vm458_vm1, %v979_v39  ;;  %v1258_v40 = vpop.f32.mrb[12].mxu1 }
 0x1db   : > { %v994_v41 = vadd.f32 %v1258_v40, %v1159_v31  ;;  %v988_v42 = vpop.f32.mrb[13].mxu1 }
 0x1dc   : > { %v989_v43 = vadd.f32 %v1159_v31, %v988_v42 }
 0x1dd   : > { %1012 = vst.msk [vmem:[%s424_s12 + $0x28] sm:$0xff] %vm458_vm1, %v994_v41 }
 0x1de   : > { %1011 = vst.msk [vmem:[%s424_s12 + $0x20] sm:$0xff] %vm458_vm1, %v989_v43  ;;  %v1261_v44 = vpop.f32.mrb[14].mxu1 }
 0x1df   : > { %v1004_v45 = vadd.f32 %v1261_v44, %v1159_v31  ;;  %v998_v46 = vpop.f32.mrb[15].mxu1 }
 0x1e0   : > { %v999_v47 = vadd.f32 %v1159_v31, %v998_v46 }
 0x1e1   : > { %1014 = vst.msk [vmem:[%s424_s12 + $0x38] sm:$0xff] %vm458_vm1, %v1004_v45 }
 0x1e2   : > { %1013 = vst.msk [vmem:[%s424_s12 + $0x30] sm:$0xff] %vm458_vm1, %v999_v47 }
 0x1e3 PF: > { %s22_s17 = sadd.s32 1, %s1276_s17  }
 0x1e4   : > { %p19_p4 = scmp.ge.s32.totalorder %s22_s17, 10  }
 0x1e6   :  { %21 = sbr.rel (!%p19_p4) target bundleno = 1 (0x1), region = 105 }

// kernel: decom_spectral_conv2d.3
= control target key start
LH: loop header
LB: loop body
LE: loop exit
PB: predicated region body
PF: predicated region fallthrough
CT: control target
= control target key end

     0   :  { %vm77_vm0 = vcmask 1041409   ;;  %vm80_vm1 = vcmask 1042434   ;;  %vm83_vm2 = vcmask 1043459   ;;  %vm86_vm3 = vcmask 1044484   ;;  %s6305_s1 = inlined_call_operand.vmem [shape: f32[8,8,8], index: 1, kind: input, shape index: {}]   ;;  %s6306_s0 = inlined_call_operand.vmem [shape: f32[32,8,8], index: 0, kind: input, shape index: {}]   ;;  %s6307_s2 = inlined_call_operand.vmem [shape: f32[32,8,8], index: 2, kind: output, shape index: {}]  }
   0x1   :  { %v43_v0 = vld [vmem:[%s6305_s1] sm:$0xff]  ;;  %v3859_v1 = vld [vmem:[%s6305_s1 + $0x8] sm:$0xff]  ;;  %vm89_vm4 = vcmask 1045509   ;;  %vm92_vm5 = vcmask 1046534   ;;  %v13_v4 = vld [vmem:[%s6306_s0 + $0x10] sm:$0x1] }
   0x2   :  { %v11_v2 = vld [vmem:[%s6306_s0] sm:$0x1]  ;;  %3934 = vmatprep.subr.mxu0 %v43_v0  ;;  %3942 = vmatprep.subr.mxu1 %v3859_v1  ;;  %v12_v3 = vld [vmem:[%s6306_s0 + $0x8] sm:$0x1]  ;;  %v14_v5 = vld [vmem:[%s6306_s0 + $0x18] sm:$0x1] }
   0x3   :  { %3935 = vmatpush3.msra.mxu0 %v43_v0  ;;  %3943 = vmatpush3.msra.mxu1 %v3859_v1  ;;  %v15_v6 = vld [vmem:[%s6306_s0 + $0x20] sm:$0x1]  ;;  %v16_v7 = vld [vmem:[%s6306_s0 + $0x28] sm:$0x1]  ;;  %v17_v8 = vld [vmem:[%s6306_s0 + $0x30] sm:$0x1] }
   0x4   :  { %v18_v9 = vld [vmem:[%s6306_s0 + $0x38] sm:$0x1]  ;;  %v76_v10 = vrot.slane %v12_v3, 7  ;;  %v79_v11 = vrot.slane %v13_v4, 6  ;;  %v82_v12 = vrot.slane %v14_v5, 5  ;;  %v85_v13 = vrot.slane %v15_v6, 4 }
   0x5   :  { %v88_v14 = vrot.slane %v16_v7, 3  ;;  %v91_v15 = vrot.slane %v17_v8, 2  ;;  %v94_v16 = vrot.slane %v18_v9, 1  ;;  %vm95_vm6 = vcmask 1047559   ;;  %v498_v17 = vld [vmem:[%s6306_s0 + $0x1] sm:$0x1] }
   0x6   :  { %v78_v18 = vsel %vm77_vm0, %v76_v10, %v11_v2  ;;  %vm139_vm7 = vcmask 64512   ;;  %v499_v19 = vld [vmem:[%s6306_s0 + $0x9] sm:$0x1]  ;;  %v500_v20 = vld [vmem:[%s6306_s0 + $0x11] sm:$0x1]  ;;  %v4082_v35 = vld [vmem:[%s6305_s1 + $0x18] sm:$0xff] }
   0x7   :  { %v4058_v21 = vld [vmem:[%s6305_s1 + $0x10] sm:$0xff]  ;;  %v81_v22 = vsel %vm80_vm1, %v79_v11, %v78_v18  ;;  %v501_v23 = vld [vmem:[%s6306_s0 + $0x19] sm:$0x1]  ;;  %v502_v24 = vld [vmem:[%s6306_s0 + $0x21] sm:$0x1]  ;;  %v564_v29 = vrot.slane %v499_v19, 7  ;;  %3958 = vmatprep.subr.mxu1 %v4082_v35 }
   0x8   :  { %v503_v25 = vld [vmem:[%s6306_s0 + $0x29] sm:$0x1]  ;;  %3950 = vmatprep.subr.mxu0 %v4058_v21  ;;  %v84_v26 = vsel %vm83_vm2, %v82_v12, %v81_v22  ;;  %v504_v27 = vld [vmem:[%s6306_s0 + $0x31] sm:$0x1]  ;;  %v505_v28 = vld [vmem:[%s6306_s0 + $0x39] sm:$0x1] }
   0x9   :  { %v566_v30 = vrot.slane %v500_v20, 6  ;;  %v87_v31 = vsel %vm86_vm3, %v85_v13, %v84_v26  ;;  %v568_v32 = vrot.slane %v501_v23, 5  ;;  %v570_v33 = vrot.slane %v502_v24, 4  ;;  %v19_v36 = vld [vmem:[%s6306_s0 + $0x40] sm:$0x1] }
   0xa   :  { %v572_v34 = vrot.slane %v503_v25, 3  ;;  %v90_v37 = vsel %vm89_vm4, %v88_v14, %v87_v31  ;;  %v565_v38 = vsel %vm77_vm0, %v564_v29, %v498_v17  ;;  %v574_v39 = vrot.slane %v504_v27, 2  ;;  %v20_v41 = vld [vmem:[%s6306_s0 + $0x48] sm:$0x1]  ;;  %v21_v42 = vld [vmem:[%s6306_s0 + $0x50] sm:$0x1] }
   0xb   :  { %v576_v40 = vrot.slane %v505_v28, 1  ;;  %v93_v43 = vsel %vm92_vm5, %v91_v15, %v90_v37  ;;  %v567_v44 = vsel %vm80_vm1, %v566_v30, %v565_v38  ;;  %v22_v45 = vld [vmem:[%s6306_s0 + $0x58] sm:$0x1]  ;;  %v23_v46 = vld [vmem:[%s6306_s0 + $0x60] sm:$0x1]  ;;  %v97_v52 = vrot.slane %v20_v41, 7 }
   0xc   :  { %v24_v47 = vld [vmem:[%s6306_s0 + $0x68] sm:$0x1]  ;;  %v96_v48 = vsel %vm95_vm6, %v94_v16, %v93_v43  ;;  %v569_v49 = vsel %vm83_vm2, %v568_v32, %v567_v44  ;;  %v25_v50 = vld [vmem:[%s6306_s0 + $0x70] sm:$0x1]  ;;  %v26_v51 = vld [vmem:[%s6306_s0 + $0x78] sm:$0x1] }
   0xd   :  { %v99_v53 = vrot.slane %v21_v42, 6  ;;  %3936 = vmatprep.mubr.msk.f32.mxu0 %vm139_vm7, %v96_v48  ;;  %v571_v54 = vsel %vm86_vm3, %v570_v33, %v569_v49  ;;  %v101_v55 = vrot.slane %v22_v45, 5  ;;  %v103_v56 = vrot.slane %v23_v46, 4  ;;  %v506_v58 = vld [vmem:[%s6306_s0 + $0x41] sm:$0x1]  ;;  %v4201_v48 = vld [vmem:[%s6305_s1 + $0x28] sm:$0xff] }
   0xe   :  { %v105_v57 = vrot.slane %v24_v47, 3  ;;  %v573_v59 = vsel %vm89_vm4, %v572_v34, %v571_v54  ;;  %v98_v60 = vsel %vm77_vm0, %v97_v52, %v19_v36  ;;  %v107_v61 = vrot.slane %v25_v50, 2  ;;  %v507_v63 = vld [vmem:[%s6306_s0 + $0x49] sm:$0x1]  ;;  %v508_v0 = vld [vmem:[%s6306_s0 + $0x51] sm:$0x1] }
   0xf   :  { %v109_v62 = vrot.slane %v26_v51, 1  ;;  %v575_v1 = vsel %vm92_vm5, %v574_v39, %v573_v59  ;;  %v100_v2 = vsel %vm80_vm1, %v99_v53, %v98_v60  ;;  %v509_v3 = vld [vmem:[%s6306_s0 + $0x59] sm:$0x1]  ;;  %v510_v4 = vld [vmem:[%s6306_s0 + $0x61] sm:$0x1]  ;;  %v578_v10 = vrot.slane %v507_v63, 7 }
  0x10   :  { %v511_v5 = vld [vmem:[%s6306_s0 + $0x69] sm:$0x1]  ;;  %v577_v6 = vsel %vm95_vm6, %v576_v40, %v575_v1  ;;  %v102_v7 = vsel %vm83_vm2, %v101_v55, %v100_v2  ;;  %v512_v8 = vld [vmem:[%s6306_s0 + $0x71] sm:$0x1]  ;;  %v513_v9 = vld [vmem:[%s6306_s0 + $0x79] sm:$0x1] }
  0x11   :  { %v580_v11 = vrot.slane %v508_v0, 6  ;;  %3944 = vmatprep.mubr.msk.f32.mxu1 %vm139_vm7, %v577_v6  ;;  %v104_v12 = vsel %vm86_vm3, %v103_v56, %v102_v7  ;;  %v582_v13 = vrot.slane %v509_v3, 5  ;;  %v584_v14 = vrot.slane %v510_v4, 4  ;;  %v27_v16 = vld [vmem:[%s6306_s0 + $0x80] sm:$0x1] }
  0x12   :  { %v586_v15 = vrot.slane %v511_v5, 3  ;;  %v106_v17 = vsel %vm89_vm4, %v105_v57, %v104_v12  ;;  %v579_v18 = vsel %vm77_vm0, %v578_v10, %v506_v58  ;;  %v588_v19 = vrot.slane %v512_v8, 2  ;;  %v28_v22 = vld [vmem:[%s6306_s0 + $0x88] sm:$0x1]  ;;  %v29_v23 = vld [vmem:[%s6306_s0 + $0x90] sm:$0x1] }
  0x13   :  { %v590_v20 = vrot.slane %v513_v9, 1  ;;  %v4163_v24 = vld [vmem:[%s6305_s1 + $0x20] sm:$0xff]  ;;  %v108_v25 = vsel %vm92_vm5, %v107_v61, %v106_v17  ;;  %v581_v26 = vsel %vm80_vm1, %v580_v11, %v579_v18  ;;  %v30_v27 = vld [vmem:[%s6306_s0 + $0x98] sm:$0x1]  ;;  %v32_v29 = vld [vmem:[%s6306_s0 + $0xa8] sm:$0x1] }
  0x14   :  { %v31_v28 = vld [vmem:[%s6306_s0 + $0xa0] sm:$0x1]  ;;  %v110_v30 = vsel %vm95_vm6, %v109_v62, %v108_v25  ;;  %v583_v31 = vsel %vm83_vm2, %v582_v13, %v581_v26  ;;  %v33_v32 = vld [vmem:[%s6306_s0 + $0xb0] sm:$0x1]  ;;  %v34_v33 = vld [vmem:[%s6306_s0 + $0xb8] sm:$0x1] }
  0x15   :  { %v111_v34 = vrot.slane %v28_v22, 7  ;;  %v113_v36 = vrot.slane %v29_v23, 6  ;;  %3937 = vmatmul.mubr.msk.f32.vlgmr.msra.gmra.mrb[0].mxu0 %vm139_vm7, %v110_v30  ;;  %v585_v37 = vsel %vm86_vm3, %v584_v14, %v583_v31  ;;  %v115_v38 = vrot.slane %v30_v27, 5  ;;  %v514_v41 = vld [vmem:[%s6306_s0 + $0x81] sm:$0x1] }
  0x16   :  { %v117_v39 = vrot.slane %v31_v28, 4  ;;  %v119_v40 = vrot.slane %v32_v29, 3  ;;  %v587_v42 = vsel %vm89_vm4, %v586_v15, %v585_v37  ;;  %3951 = vmatpush3.msra.mxu0 %v4058_v21  ;;  %v121_v44 = vrot.slane %v33_v32, 2  ;;  %v515_v46 = vld [vmem:[%s6306_s0 + $0x89] sm:$0x1] }
  0x17   :  { %v112_v43 = vsel %vm77_vm0, %v111_v34, %v27_v16  ;;  %v123_v45 = vrot.slane %v34_v33, 1  ;;  %v516_v47 = vld [vmem:[%s6306_s0 + $0x91] sm:$0x1]  ;;  %v589_v49 = vsel %vm92_vm5, %v588_v19, %v587_v42  ;;  %v517_v50 = vld [vmem:[%s6306_s0 + $0x99] sm:$0x1]  ;;  %3966 = vmatprep.subr.mxu0 %v4163_v24  ;;  %v592_v57 = vrot.slane %v515_v46, 7 }
  0x18   :  { %v114_v21 = vsel %vm80_vm1, %v113_v36, %v112_v43  ;;  %v518_v51 = vld [vmem:[%s6306_s0 + $0xa1] sm:$0x1]  ;;  %v519_v52 = vld [vmem:[%s6306_s0 + $0xa9] sm:$0x1]  ;;  %v591_v53 = vsel %vm95_vm6, %v590_v20, %v589_v49  ;;  %v520_v55 = vld [vmem:[%s6306_s0 + $0xb1] sm:$0x1] }
  0x19   :  { %v116_v54 = vsel %vm83_vm2, %v115_v38, %v114_v21  ;;  %v521_v56 = vld [vmem:[%s6306_s0 + $0xb9] sm:$0x1]  ;;  %v594_v58 = vrot.slane %v516_v47, 6  ;;  %3945 = vmatmul.mubr.msk.f32.vlgmr.msra.gmra.mrb[0].mxu1 %vm139_vm7, %v591_v53  ;;  %v596_v60 = vrot.slane %v517_v50, 5  ;;  %v598_v61 = vrot.slane %v518_v51, 4 }
  0x1a   :  { %v118_v59 = vsel %vm86_vm3, %v117_v39, %v116_v54  ;;  %v600_v62 = vrot.slane %v519_v52, 3  ;;  %v35_v63 = vld [vmem:[%s6306_s0 + $0xc0] sm:$0x1]  ;;  %3959 = vmatpush3.msra.mxu1 %v4082_v35  ;;  %v593_v1 = vsel %vm77_vm0, %v592_v57, %v514_v41  ;;  %v602_v2 = vrot.slane %v520_v55, 2  ;;  %v36_v4 = vld [vmem:[%s6306_s0 + $0xc8] sm:$0x1] }
  0x1b   :  { %v120_v0 = vsel %vm89_vm4, %v119_v40, %v118_v59  ;;  %v604_v3 = vrot.slane %v521_v56, 1  ;;  %v37_v5 = vld [vmem:[%s6306_s0 + $0xd0] sm:$0x1]  ;;  %v595_v7 = vsel %vm80_vm1, %v594_v58, %v593_v1  ;;  %v38_v35 = vld [vmem:[%s6306_s0 + $0xd8] sm:$0x1]  ;;  %3974 = vmatprep.subr.mxu1 %v4201_v48  ;;  %v125_v14 = vrot.slane %v36_v4, 7 }
  0x1c   :  { %v122_v6 = vsel %vm92_vm5, %v121_v44, %v120_v0  ;;  %v39_v8 = vld [vmem:[%s6306_s0 + $0xe0] sm:$0x1]  ;;  %v40_v9 = vld [vmem:[%s6306_s0 + $0xe8] sm:$0x1]  ;;  %v597_v11 = vsel %vm83_vm2, %v596_v60, %v595_v7  ;;  %v41_v12 = vld [vmem:[%s6306_s0 + $0xf0] sm:$0x1] }
  0x1d   :  { %v124_v10 = vsel %vm95_vm6, %v123_v45, %v122_v6  ;;  %v42_v13 = vld [vmem:[%s6306_s0 + $0xf8] sm:$0x1]  ;;  %v127_v15 = vrot.slane %v37_v5, 6  ;;  %v599_v16 = vsel %vm86_vm3, %v598_v61, %v597_v11  ;;  %v129_v17 = vrot.slane %v38_v35, 5  ;;  %v522_v20 = vld [vmem:[%s6306_s0 + $0xc1] sm:$0x1] }
  0x1e   :  { %3939 = vmatprep.mubr.msk.f32.mxu0 %vm139_vm7, %v124_v10  ;;  %v131_v18 = vrot.slane %v39_v8, 4  ;;  %v133_v19 = vrot.slane %v40_v9, 3  ;;  %v601_v22 = vsel %vm89_vm4, %v600_v62, %v599_v16  ;;  %v126_v23 = vsel %vm77_vm0, %v125_v14, %v35_v63  ;;  %v523_v27 = vld [vmem:[%s6306_s0 + $0xc9] sm:$0x1]  ;;  %v524_v28 = vld [vmem:[%s6306_s0 + $0xd1] sm:$0x1] }
  0x1f   :  { %v135_v25 = vrot.slane %v41_v12, 2  ;;  %v137_v26 = vrot.slane %v42_v13, 1  ;;  %v603_v29 = vsel %vm92_vm5, %v602_v2, %v601_v22  ;;  %v128_v30 = vsel %vm80_vm1, %v127_v15, %v126_v23  ;;  %v525_v31 = vld [vmem:[%s6306_s0 + $0xd9] sm:$0x1]  ;;  %v526_v32 = vld [vmem:[%s6306_s0 + $0xe1] sm:$0x1] }
  0x20   :  { %v527_v33 = vld [vmem:[%s6306_s0 + $0xe9] sm:$0x1]  ;;  %v605_v34 = vsel %vm95_vm6, %v604_v3, %v603_v29  ;;  %v130_v36 = vsel %vm83_vm2, %v129_v17, %v128_v30  ;;  %v528_v37 = vld [vmem:[%s6306_s0 + $0xf1] sm:$0x1]  ;;  %v529_v38 = vld [vmem:[%s6306_s0 + $0xf9] sm:$0x1] }
  0x21   :  { %v606_v39 = vrot.slane %v523_v27, 7  ;;  %v608_v40 = vrot.slane %v524_v28, 6  ;;  %3947 = vmatprep.mubr.msk.f32.mxu1 %vm139_vm7, %v605_v34  ;;  %v132_v41 = vsel %vm86_vm3, %v131_v18, %v130_v36  ;;  %v610_v42 = vrot.slane %v525_v31, 5  ;;  %v977_v45 = vld [vmem:[%s6306_s0 + $0x2] sm:$0x1] }
  0x22   :  { %v612_v43 = vrot.slane %v526_v32, 4  ;;  %v614_v44 = vrot.slane %v527_v33, 3  ;;  %v134_v46 = vsel %vm89_vm4, %v133_v19, %v132_v41  ;;  %v616_v49 = vrot.slane %v528_v37, 2  ;;  %v978_v50 = vld [vmem:[%s6306_s0 + $0xa] sm:$0x1] }
  0x23   :  { %v607_v47 = vsel %vm77_vm0, %v606_v39, %v522_v20  ;;  %v618_v21 = vrot.slane %v529_v38, 1  ;;  %v979_v51 = vld [vmem:[%s6306_s0 + $0x12] sm:$0x1]  ;;  %v136_v52 = vsel %vm92_vm5, %v135_v25, %v134_v46  ;;  %v980_v54 = vld [vmem:[%s6306_s0 + $0x1a] sm:$0x1]  ;;  %v1043_v61 = vrot.slane %v978_v50, 7 }
  0x24   :  { %v609_v53 = vsel %vm80_vm1, %v608_v40, %v607_v47  ;;  %v981_v55 = vld [vmem:[%s6306_s0 + $0x22] sm:$0x1]  ;;  %v982_v56 = vld [vmem:[%s6306_s0 + $0x2a] sm:$0x1]  ;;  %v138_v57 = vsel %vm95_vm6, %v137_v26, %v136_v52  ;;  %v983_v59 = vld [vmem:[%s6306_s0 + $0x32] sm:$0x1] }
  0x25   :  { %v611_v58 = vsel %vm83_vm2, %v610_v42, %v609_v53  ;;  %v984_v60 = vld [vmem:[%s6306_s0 + $0x3a] sm:$0x1]  ;;  %v1045_v62 = vrot.slane %v979_v51, 6  ;;  %3940 = vmatmul.mubr.msk.f32.gmra.mrb[2].mxu0 %vm139_vm7, %v138_v57  ;;  %v1047_v0 = vrot.slane %v980_v54, 5  ;;  %v1049_v1 = vrot.slane %v981_v55, 4 }
  0x26   :  { %v613_v63 = vsel %vm86_vm3, %v612_v43, %v611_v58  ;;  %v1051_v2 = vrot.slane %v982_v56, 3  ;;  %v1456_v3 = vld [vmem:[%s6306_s0 + $0x3] sm:$0x1]  ;;  %v1044_v5 = vsel %vm77_vm0, %v1043_v61, %v977_v45  ;;  %v1053_v6 = vrot.slane %v983_v59, 2  ;;  %v1457_v35 = vld [vmem:[%s6306_s0 + $0xb] sm:$0x1] }
  0x27   :  { %v615_v4 = vsel %vm89_vm4, %v614_v44, %v613_v63  ;;  %v1055_v7 = vrot.slane %v984_v60, 1  ;;  %v1458_v8 = vld [vmem:[%s6306_s0 + $0x13] sm:$0x1]  ;;  %v1046_v10 = vsel %vm80_vm1, %v1045_v62, %v1044_v5  ;;  %v1459_v11 = vld [vmem:[%s6306_s0 + $0x1b] sm:$0x1]  ;;  %v1522_v18 = vrot.slane %v1457_v35, 7 }
  0x28   :  { %v617_v9 = vsel %vm92_vm5, %v616_v49, %v615_v4  ;;  %v1460_v12 = vld [vmem:[%s6306_s0 + $0x23] sm:$0x1]  ;;  %v1461_v13 = vld [vmem:[%s6306_s0 + $0x2b] sm:$0x1]  ;;  %v1048_v15 = vsel %vm83_vm2, %v1047_v0, %v1046_v10  ;;  %v1462_v16 = vld [vmem:[%s6306_s0 + $0x33] sm:$0x1] }
  0x29   :  { %v619_v14 = vsel %vm95_vm6, %v618_v21, %v617_v9  ;;  %v1463_v17 = vld [vmem:[%s6306_s0 + $0x3b] sm:$0x1]  ;;  %v1524_v19 = vrot.slane %v1458_v8, 6  ;;  %v1050_v20 = vsel %vm86_vm3, %v1049_v1, %v1048_v15  ;;  %v1526_v22 = vrot.slane %v1459_v11, 5  ;;  %v985_v26 = vld [vmem:[%s6306_s0 + $0x42] sm:$0x1] }
  0x2a   :  { %3948 = vmatmul.mubr.msk.f32.gmra.mrb[2].mxu1 %vm139_vm7, %v619_v14  ;;  %v1528_v23 = vrot.slane %v1460_v12, 4  ;;  %v1530_v25 = vrot.slane %v1461_v13, 3  ;;  %v1052_v27 = vsel %vm89_vm4, %v1051_v2, %v1050_v20  ;;  %v1523_v28 = vsel %vm77_vm0, %v1522_v18, %v1456_v3  ;;  %v986_v31 = vld [vmem:[%s6306_s0 + $0x4a] sm:$0x1]  ;;  %v987_v32 = vld [vmem:[%s6306_s0 + $0x52] sm:$0x1] }
  0x2b   :  { %v1532_v29 = vrot.slane %v1462_v16, 2  ;;  %v1534_v30 = vrot.slane %v1463_v17, 1  ;;  %v1054_v33 = vsel %vm92_vm5, %v1053_v6, %v1052_v27  ;;  %v1525_v34 = vsel %vm80_vm1, %v1524_v19, %v1523_v28  ;;  %v988_v36 = vld [vmem:[%s6306_s0 + $0x5a] sm:$0x1]  ;;  %v989_v37 = vld [vmem:[%s6306_s0 + $0x62] sm:$0x1] }
  0x2c   :  { %v990_v38 = vld [vmem:[%s6306_s0 + $0x6a] sm:$0x1]  ;;  %v1056_v39 = vsel %vm95_vm6, %v1055_v7, %v1054_v33  ;;  %v1527_v40 = vsel %vm83_vm2, %v1526_v22, %v1525_v34  ;;  %v991_v41 = vld [vmem:[%s6306_s0 + $0x72] sm:$0x1]  ;;  %v992_v42 = vld [vmem:[%s6306_s0 + $0x7a] sm:$0x1] }
  0x2d   :  { %v1057_v43 = vrot.slane %v986_v31, 7  ;;  %v1059_v44 = vrot.slane %v987_v32, 6  ;;  %3952 = vmatprep.mubr.msk.f32.mxu0 %vm139_vm7, %v1056_v39  ;;  %v1529_v45 = vsel %vm86_vm3, %v1528_v23, %v1527_v40  ;;  %v1061_v46 = vrot.slane %v988_v36, 5  ;;  %v1464_v21 = vld [vmem:[%s6306_s0 + $0x43] sm:$0x1]  ;;  %v4433_v13 = vld [vmem:[%s6305_s1 + $0x30] sm:$0xff] }
  0x2e   :  { %v1063_v47 = vrot.slane %v989_v37, 4  ;;  %v1065_v49 = vrot.slane %v990_v38, 3  ;;  %v1531_v50 = vsel %vm89_vm4, %v1530_v25, %v1529_v45  ;;  %v1067_v52 = vrot.slane %v991_v41, 2  ;;  %v1465_v54 = vld [vmem:[%s6306_s0 + $0x4b] sm:$0x1]  ;;  %v4471_v39 = vld [vmem:[%s6305_s1 + $0x38] sm:$0xff] }
  0x2f   :  { %v1058_v51 = vsel %vm77_vm0, %v1057_v43, %v985_v26  ;;  %v1069_v53 = vrot.slane %v992_v42, 1  ;;  %v1466_v55 = vld [vmem:[%s6306_s0 + $0x53] sm:$0x1]  ;;  %v1533_v56 = vsel %vm92_vm5, %v1532_v29, %v1531_v50  ;;  %v1467_v58 = vld [vmem:[%s6306_s0 + $0x5b] sm:$0x1]  ;;  %v1536_v1 = vrot.slane %v1465_v54, 7 }
  0x30   :  { %v1060_v57 = vsel %vm80_vm1, %v1059_v44, %v1058_v51  ;;  %v1468_v59 = vld [vmem:[%s6306_s0 + $0x63] sm:$0x1]  ;;  %v1469_v60 = vld [vmem:[%s6306_s0 + $0x6b] sm:$0x1]  ;;  %v1535_v61 = vsel %vm95_vm6, %v1534_v30, %v1533_v56  ;;  %v1470_v63 = vld [vmem:[%s6306_s0 + $0x73] sm:$0x1] }
  0x31   :  { %v1062_v62 = vsel %vm83_vm2, %v1061_v46, %v1060_v57  ;;  %v1471_v0 = vld [vmem:[%s6306_s0 + $0x7b] sm:$0x1]  ;;  %v1538_v2 = vrot.slane %v1466_v55, 6  ;;  %3960 = vmatprep.mubr.msk.f32.mxu1 %vm139_vm7, %v1535_v61  ;;  %v1540_v4 = vrot.slane %v1467_v58, 5  ;;  %v1542_v5 = vrot.slane %v1468_v59, 4 }
  0x32   :  { %v1064_v3 = vsel %vm86_vm3, %v1063_v47, %v1062_v62  ;;  %v1544_v6 = vrot.slane %v1469_v60, 3  ;;  %v993_v7 = vld [vmem:[%s6306_s0 + $0x82] sm:$0x1]  ;;  %v1537_v8 = vsel %vm77_vm0, %v1536_v1, %v1464_v21  ;;  %v1546_v9 = vrot.slane %v1470_v63, 2  ;;  %v994_v11 = vld [vmem:[%s6306_s0 + $0x8a] sm:$0x1] }
  0x33   :  { %v1066_v35 = vsel %vm89_vm4, %v1065_v49, %v1064_v3  ;;  %v1548_v10 = vrot.slane %v1471_v0, 1  ;;  %v995_v12 = vld [vmem:[%s6306_s0 + $0x92] sm:$0x1]  ;;  %v1539_v15 = vsel %vm80_vm1, %v1538_v2, %v1537_v8  ;;  %v996_v16 = vld [vmem:[%s6306_s0 + $0x9a] sm:$0x1]  ;;  %v1071_v25 = vrot.slane %v994_v11, 7 }
  0x34   :  { %v1068_v14 = vsel %vm92_vm5, %v1067_v52, %v1066_v35  ;;  %v997_v17 = vld [vmem:[%s6306_s0 + $0xa2] sm:$0x1]  ;;  %v998_v18 = vld [vmem:[%s6306_s0 + $0xaa] sm:$0x1]  ;;  %v1541_v20 = vsel %vm83_vm2, %v1540_v4, %v1539_v15  ;;  %v999_v22 = vld [vmem:[%s6306_s0 + $0xb2] sm:$0x1] }
  0x35   :  { %v1070_v19 = vsel %vm95_vm6, %v1069_v53, %v1068_v14  ;;  %v1000_v23 = vld [vmem:[%s6306_s0 + $0xba] sm:$0x1]  ;;  %v1073_v26 = vrot.slane %v995_v12, 6  ;;  %v1543_v27 = vsel %vm86_vm3, %v1542_v5, %v1541_v20  ;;  %v1075_v28 = vrot.slane %v996_v16, 5  ;;  %v1472_v31 = vld [vmem:[%s6306_s0 + $0x83] sm:$0x1] }
  0x36   :  { %3953 = vmatmul.mubr.msk.f32.vlgmr.msra.gmra.mrb[4].mxu0 %vm139_vm7, %v1070_v19  ;;  %v1077_v29 = vrot.slane %v997_v17, 4  ;;  %v1079_v30 = vrot.slane %v998_v18, 3  ;;  %v1545_v32 = vsel %vm89_vm4, %v1544_v6, %v1543_v27  ;;  %v1072_v33 = vsel %vm77_vm0, %v1071_v25, %v993_v7  ;;  %v1473_v37 = vld [vmem:[%s6306_s0 + $0x8b] sm:$0x1]  ;;  %v1474_v38 = vld [vmem:[%s6306_s0 + $0x93] sm:$0x1] }
  0x37   :  { %3967 = vmatpush3.msra.mxu0 %v4163_v24  ;;  %v1081_v34 = vrot.slane %v999_v22, 2  ;;  %v1083_v36 = vrot.slane %v1000_v23, 1  ;;  %v1547_v40 = vsel %vm92_vm5, %v1546_v9, %v1545_v32  ;;  %v1074_v24 = vsel %vm80_vm1, %v1073_v26, %v1072_v33  ;;  %v1475_v41 = vld [vmem:[%s6306_s0 + $0x9b] sm:$0x1]  ;;  %v1476_v42 = vld [vmem:[%s6306_s0 + $0xa3] sm:$0x1] }
  0x38   :  { %v1477_v43 = vld [vmem:[%s6306_s0 + $0xab] sm:$0x1]  ;;  %3982 = vmatprep.subr.mxu0 %v4433_v13  ;;  %v1549_v44 = vsel %vm95_vm6, %v1548_v10, %v1547_v40  ;;  %v1076_v45 = vsel %vm83_vm2, %v1075_v28, %v1074_v24  ;;  %v1478_v46 = vld [vmem:[%s6306_s0 + $0xb3] sm:$0x1]  ;;  %v1479_v47 = vld [vmem:[%s6306_s0 + $0xbb] sm:$0x1] }
  0x39   :  { %v1550_v49 = vrot.slane %v1473_v37, 7  ;;  %v1552_v21 = vrot.slane %v1474_v38, 6  ;;  %3961 = vmatmul.mubr.msk.f32.vlgmr.msra.gmra.mrb[4].mxu1 %vm139_vm7, %v1549_v44  ;;  %v1078_v50 = vsel %vm86_vm3, %v1077_v29, %v1076_v45  ;;  %v1554_v51 = vrot.slane %v1475_v41, 5  ;;  %v1001_v54 = vld [vmem:[%s6306_s0 + $0xc2] sm:$0x1] }
  0x3a   :  { %v1556_v52 = vrot.slane %v1476_v42, 4  ;;  %v1558_v53 = vrot.slane %v1477_v43, 3  ;;  %3975 = vmatpush3.msra.mxu1 %v4201_v48  ;;  %v1080_v55 = vsel %vm89_vm4, %v1079_v30, %v1078_v50  ;;  %v1560_v57 = vrot.slane %v1478_v46, 2  ;;  %v1002_v59 = vld [vmem:[%s6306_s0 + $0xca] sm:$0x1] }
  0x3b   :  { %v1551_v56 = vsel %vm77_vm0, %v1550_v49, %v1472_v31  ;;  %v1562_v58 = vrot.slane %v1479_v47, 1  ;;  %v1003_v60 = vld [vmem:[%s6306_s0 + $0xd2] sm:$0x1]  ;;  %v1082_v61 = vsel %vm92_vm5, %v1081_v34, %v1080_v55  ;;  %v1004_v48 = vld [vmem:[%s6306_s0 + $0xda] sm:$0x1]  ;;  %3990 = vmatprep.subr.mxu1 %v4471_v39  ;;  %v1085_v5 = vrot.slane %v1002_v59, 7 }
  0x3c   :  { %v1553_v62 = vsel %vm80_vm1, %v1552_v21, %v1551_v56  ;;  %v1005_v63 = vld [vmem:[%s6306_s0 + $0xe2] sm:$0x1]  ;;  %v1006_v0 = vld [vmem:[%s6306_s0 + $0xea] sm:$0x1]  ;;  %v1084_v1 = vsel %vm95_vm6, %v1083_v36, %v1082_v61  ;;  %v1007_v3 = vld [vmem:[%s6306_s0 + $0xf2] sm:$0x1] }
  0x3d   :  { %v1555_v2 = vsel %vm83_vm2, %v1554_v51, %v1553_v62  ;;  %v1008_v4 = vld [vmem:[%s6306_s0 + $0xfa] sm:$0x1]  ;;  %v1087_v6 = vrot.slane %v1003_v60, 6  ;;  %3955 = vmatprep.mubr.msk.f32.mxu0 %vm139_vm7, %v1084_v1  ;;  %v1089_v35 = vrot.slane %v1004_v48, 5  ;;  %v1091_v8 = vrot.slane %v1005_v63, 4 }
  0x3e   :  { %v1557_v7 = vsel %vm86_vm3, %v1556_v52, %v1555_v2  ;;  %v1093_v9 = vrot.slane %v1006_v0, 3  ;;  %v1480_v10 = vld [vmem:[%s6306_s0 + $0xc3] sm:$0x1]  ;;  %v1086_v12 = vsel %vm77_vm0, %v1085_v5, %v1001_v54  ;;  %v1095_v14 = vrot.slane %v1007_v3, 2  ;;  %v1481_v16 = vld [vmem:[%s6306_s0 + $0xcb] sm:$0x1] }
  0x3f   :  { %v1559_v11 = vsel %vm89_vm4, %v1558_v53, %v1557_v7  ;;  %v1097_v15 = vrot.slane %v1008_v4, 1  ;;  %v1482_v17 = vld [vmem:[%s6306_s0 + $0xd3] sm:$0x1]  ;;  %v1088_v19 = vsel %vm80_vm1, %v1087_v6, %v1086_v12  ;;  %v1483_v20 = vld [vmem:[%s6306_s0 + $0xdb] sm:$0x1]  ;;  %v1564_v29 = vrot.slane %v1481_v16, 7 }
  0x40   :  { %v1561_v18 = vsel %vm92_vm5, %v1560_v57, %v1559_v11  ;;  %v1484_v22 = vld [vmem:[%s6306_s0 + $0xe3] sm:$0x1]  ;;  %v1485_v23 = vld [vmem:[%s6306_s0 + $0xeb] sm:$0x1]  ;;  %v1090_v26 = vsel %vm83_vm2, %v1089_v35, %v1088_v19  ;;  %v1486_v27 = vld [vmem:[%s6306_s0 + $0xf3] sm:$0x1] }
  0x41   :  { %v1563_v25 = vsel %vm95_vm6, %v1562_v58, %v1561_v18  ;;  %v1487_v28 = vld [vmem:[%s6306_s0 + $0xfb] sm:$0x1]  ;;  %v1566_v30 = vrot.slane %v1482_v17, 6  ;;  %v1092_v31 = vsel %vm86_vm3, %v1091_v8, %v1090_v26  ;;  %v1568_v32 = vrot.slane %v1483_v20, 5  ;;  %v1935_v36 = vld [vmem:[%s6306_s0 + $0x4] sm:$0x1] }
  0x42   :  { %3963 = vmatprep.mubr.msk.f32.mxu1 %vm139_vm7, %v1563_v25  ;;  %v1570_v33 = vrot.slane %v1484_v22, 4  ;;  %v1572_v34 = vrot.slane %v1485_v23, 3  ;;  %v1094_v37 = vsel %vm89_vm4, %v1093_v9, %v1092_v31  ;;  %v1565_v38 = vsel %vm77_vm0, %v1564_v29, %v1480_v10  ;;  %v1936_v41 = vld [vmem:[%s6306_s0 + $0xc] sm:$0x1]  ;;  %v1937_v42 = vld [vmem:[%s6306_s0 + $0x14] sm:$0x1] }
  0x43   :  { %v1574_v40 = vrot.slane %v1486_v27, 2  ;;  %v1576_v24 = vrot.slane %v1487_v28, 1  ;;  %v1096_v43 = vsel %vm92_vm5, %v1095_v14, %v1094_v37  ;;  %v1567_v44 = vsel %vm80_vm1, %v1566_v30, %v1565_v38  ;;  %v1938_v45 = vld [vmem:[%s6306_s0 + $0x1c] sm:$0x1]  ;;  %v1939_v46 = vld [vmem:[%s6306_s0 + $0x24] sm:$0x1] }
  0x44   :  { %v1940_v47 = vld [vmem:[%s6306_s0 + $0x2c] sm:$0x1]  ;;  %v1098_v49 = vsel %vm95_vm6, %v1097_v15, %v1096_v43  ;;  %v1569_v21 = vsel %vm83_vm2, %v1568_v32, %v1567_v44  ;;  %v1941_v50 = vld [vmem:[%s6306_s0 + $0x34] sm:$0x1]  ;;  %v1942_v51 = vld [vmem:[%s6306_s0 + $0x3c] sm:$0x1] }
  0x45   :  { %v2001_v52 = vrot.slane %v1936_v41, 7  ;;  %v2003_v53 = vrot.slane %v1937_v42, 6  ;;  %3956 = vmatmul.mubr.msk.f32.gmra.mrb[6].mxu0 %vm139_vm7, %v1098_v49  ;;  %v1571_v54 = vsel %vm86_vm3, %v1570_v33, %v1569_v21  ;;  %v2005_v55 = vrot.slane %v1938_v45, 5  ;;  %v2414_v58 = vld [vmem:[%s6306_s0 + $0x5] sm:$0x1] }
  0x46   :  { %v2007_v56 = vrot.slane %v1939_v46, 4  ;;  %v2009_v57 = vrot.slane %v1940_v47, 3  ;;  %v1573_v59 = vsel %vm89_vm4, %v1572_v34, %v1571_v54  ;;  %v2011_v61 = vrot.slane %v1941_v50, 2  ;;  %v2415_v48 = vld [vmem:[%s6306_s0 + $0xd] sm:$0x1] }
  0x47   :  { %v2002_v60 = vsel %vm77_vm0, %v2001_v52, %v1935_v36  ;;  %v2013_v62 = vrot.slane %v1942_v51, 1  ;;  %v2416_v63 = vld [vmem:[%s6306_s0 + $0x15] sm:$0x1]  ;;  %v1575_v0 = vsel %vm92_vm5, %v1574_v40, %v1573_v59  ;;  %v2417_v2 = vld [vmem:[%s6306_s0 + $0x1d] sm:$0x1]  ;;  %v2480_v8 = vrot.slane %v2415_v48, 7 }
  0x48   :  { %v2004_v1 = vsel %vm80_vm1, %v2003_v53, %v2002_v60  ;;  %v2418_v3 = vld [vmem:[%s6306_s0 + $0x25] sm:$0x1]  ;;  %v2419_v4 = vld [vmem:[%s6306_s0 + $0x2d] sm:$0x1]  ;;  %v1577_v5 = vsel %vm95_vm6, %v1576_v24, %v1575_v0  ;;  %v2420_v7 = vld [vmem:[%s6306_s0 + $0x35] sm:$0x1] }
  0x49   :  { %v2006_v6 = vsel %vm83_vm2, %v2005_v55, %v2004_v1  ;;  %v2421_v35 = vld [vmem:[%s6306_s0 + $0x3d] sm:$0x1]  ;;  %v2482_v9 = vrot.slane %v2416_v63, 6  ;;  %3964 = vmatmul.mubr.msk.f32.gmra.mrb[6].mxu1 %vm139_vm7, %v1577_v5  ;;  %v2484_v11 = vrot.slane %v2417_v2, 5  ;;  %v2486_v12 = vrot.slane %v2418_v3, 4 }
  0x4a   :  { %v2008_v10 = vsel %vm86_vm3, %v2007_v56, %v2006_v6  ;;  %v2488_v14 = vrot.slane %v2419_v4, 3  ;;  %v1943_v15 = vld [vmem:[%s6306_s0 + $0x44] sm:$0x1]  ;;  %v2481_v17 = vsel %vm77_vm0, %v2480_v8, %v2414_v58  ;;  %v2490_v18 = vrot.slane %v2420_v7, 2  ;;  %v1944_v20 = vld [vmem:[%s6306_s0 + $0x4c] sm:$0x1] }
  0x4b   :  { %v2010_v16 = vsel %vm89_vm4, %v2009_v57, %v2008_v10  ;;  %v2492_v19 = vrot.slane %v2421_v35, 1  ;;  %v1945_v22 = vld [vmem:[%s6306_s0 + $0x54] sm:$0x1]  ;;  %v2483_v25 = vsel %vm80_vm1, %v2482_v9, %v2481_v17  ;;  %v1946_v26 = vld [vmem:[%s6306_s0 + $0x5c] sm:$0x1]  ;;  %v2015_v33 = vrot.slane %v1944_v20, 7 }
  0x4c   :  { %v2012_v23 = vsel %vm92_vm5, %v2011_v61, %v2010_v16  ;;  %v1947_v27 = vld [vmem:[%s6306_s0 + $0x64] sm:$0x1]  ;;  %v1948_v28 = vld [vmem:[%s6306_s0 + $0x6c] sm:$0x1]  ;;  %v2485_v30 = vsel %vm83_vm2, %v2484_v11, %v2483_v25  ;;  %v1949_v31 = vld [vmem:[%s6306_s0 + $0x74] sm:$0x1] }
  0x4d   :  { %v2014_v29 = vsel %vm95_vm6, %v2013_v62, %v2012_v23  ;;  %v1950_v32 = vld [vmem:[%s6306_s0 + $0x7c] sm:$0x1]  ;;  %v2017_v34 = vrot.slane %v1945_v22, 6  ;;  %v2487_v36 = vsel %vm86_vm3, %v2486_v12, %v2485_v30  ;;  %v2019_v37 = vrot.slane %v1946_v26, 5  ;;  %v2422_v24 = vld [vmem:[%s6306_s0 + $0x45] sm:$0x1] }
  0x4e   :  { %3968 = vmatprep.mubr.msk.f32.mxu0 %vm139_vm7, %v2014_v29  ;;  %v2021_v38 = vrot.slane %v1947_v27, 4  ;;  %v2023_v40 = vrot.slane %v1948_v28, 3  ;;  %v2489_v41 = vsel %vm89_vm4, %v2488_v14, %v2487_v36  ;;  %v2016_v42 = vsel %vm77_vm0, %v2015_v33, %v1943_v15  ;;  %v2423_v45 = vld [vmem:[%s6306_s0 + $0x4d] sm:$0x1]  ;;  %v2424_v46 = vld [vmem:[%s6306_s0 + $0x55] sm:$0x1] }
  0x4f   :  { %v2025_v43 = vrot.slane %v1949_v31, 2  ;;  %v2027_v44 = vrot.slane %v1950_v32, 1  ;;  %v2491_v47 = vsel %vm92_vm5, %v2490_v18, %v2489_v41  ;;  %v2018_v49 = vsel %vm80_vm1, %v2017_v34, %v2016_v42  ;;  %v2425_v21 = vld [vmem:[%s6306_s0 + $0x5d] sm:$0x1]  ;;  %v2426_v50 = vld [vmem:[%s6306_s0 + $0x65] sm:$0x1] }
  0x50   :  { %v2427_v51 = vld [vmem:[%s6306_s0 + $0x6d] sm:$0x1]  ;;  %v2493_v52 = vsel %vm95_vm6, %v2492_v19, %v2491_v47  ;;  %v2020_v53 = vsel %vm83_vm2, %v2019_v37, %v2018_v49  ;;  %v2428_v54 = vld [vmem:[%s6306_s0 + $0x75] sm:$0x1]  ;;  %v2429_v55 = vld [vmem:[%s6306_s0 + $0x7d] sm:$0x1] }
  0x51   :  { %v2494_v56 = vrot.slane %v2423_v45, 7  ;;  %v2496_v57 = vrot.slane %v2424_v46, 6  ;;  %3976 = vmatprep.mubr.msk.f32.mxu1 %vm139_vm7, %v2493_v52  ;;  %v2022_v58 = vsel %vm86_vm3, %v2021_v38, %v2020_v53  ;;  %v2498_v59 = vrot.slane %v2425_v21, 5  ;;  %v1951_v62 = vld [vmem:[%s6306_s0 + $0x84] sm:$0x1] }
  0x52   :  { %v2500_v60 = vrot.slane %v2426_v50, 4  ;;  %v2502_v61 = vrot.slane %v2427_v51, 3  ;;  %v2024_v48 = vsel %vm89_vm4, %v2023_v40, %v2022_v58  ;;  %v2504_v0 = vrot.slane %v2428_v54, 2  ;;  %v1952_v2 = vld [vmem:[%s6306_s0 + $0x8c] sm:$0x1] }
  0x53   :  { %v2495_v63 = vsel %vm77_vm0, %v2494_v56, %v2422_v24  ;;  %v2506_v1 = vrot.slane %v2429_v55, 1  ;;  %v1953_v3 = vld [vmem:[%s6306_s0 + $0x94] sm:$0x1]  ;;  %v2026_v4 = vsel %vm92_vm5, %v2025_v43, %v2024_v48  ;;  %v1954_v6 = vld [vmem:[%s6306_s0 + $0x9c] sm:$0x1]  ;;  %v2029_v12 = vrot.slane %v1952_v2, 7 }
  0x54   :  { %v2497_v5 = vsel %vm80_vm1, %v2496_v57, %v2495_v63  ;;  %v1955_v7 = vld [vmem:[%s6306_s0 + $0xa4] sm:$0x1]  ;;  %v1956_v35 = vld [vmem:[%s6306_s0 + $0xac] sm:$0x1]  ;;  %v2028_v8 = vsel %vm95_vm6, %v2027_v44, %v2026_v4  ;;  %v1957_v10 = vld [vmem:[%s6306_s0 + $0xb4] sm:$0x1] }
  0x55   :  { %v2499_v9 = vsel %vm83_vm2, %v2498_v59, %v2497_v5  ;;  %v1958_v11 = vld [vmem:[%s6306_s0 + $0xbc] sm:$0x1]  ;;  %v2031_v14 = vrot.slane %v1953_v3, 6  ;;  %3969 = vmatmul.mubr.msk.f32.vlgmr.msra.gmra.mrb[8].mxu0 %vm139_vm7, %v2028_v8  ;;  %v2033_v16 = vrot.slane %v1954_v6, 5  ;;  %v2035_v17 = vrot.slane %v1955_v7, 4 }
  0x56   :  { %v2501_v15 = vsel %vm86_vm3, %v2500_v60, %v2499_v9  ;;  %v2037_v18 = vrot.slane %v1956_v35, 3  ;;  %v2430_v19 = vld [vmem:[%s6306_s0 + $0x85] sm:$0x1]  ;;  %3983 = vmatpush3.msra.mxu0 %v4433_v13  ;;  %v2030_v22 = vsel %vm77_vm0, %v2029_v12, %v1951_v62  ;;  %v2039_v23 = vrot.slane %v1957_v10, 2  ;;  %v2431_v26 = vld [vmem:[%s6306_s0 + $0x8d] sm:$0x1] }
  0x57   :  { %v2503_v20 = vsel %vm89_vm4, %v2502_v61, %v2501_v15  ;;  %v2041_v25 = vrot.slane %v1958_v11, 1  ;;  %v2432_v27 = vld [vmem:[%s6306_s0 + $0x95] sm:$0x1]  ;;  %v2032_v29 = vsel %vm80_vm1, %v2031_v14, %v2030_v22  ;;  %v2433_v13 = vld [vmem:[%s6306_s0 + $0x9d] sm:$0x1]  ;;  %v2508_v37 = vrot.slane %v2431_v26, 7 }
  0x58   :  { %v2505_v28 = vsel %vm92_vm5, %v2504_v0, %v2503_v20  ;;  %v2434_v30 = vld [vmem:[%s6306_s0 + $0xa5] sm:$0x1]  ;;  %v2435_v31 = vld [vmem:[%s6306_s0 + $0xad] sm:$0x1]  ;;  %v2034_v33 = vsel %vm83_vm2, %v2033_v16, %v2032_v29  ;;  %v2436_v34 = vld [vmem:[%s6306_s0 + $0xb5] sm:$0x1] }
  0x59   :  { %v2507_v32 = vsel %vm95_vm6, %v2506_v1, %v2505_v28  ;;  %v2437_v36 = vld [vmem:[%s6306_s0 + $0xbd] sm:$0x1]  ;;  %v2510_v38 = vrot.slane %v2432_v27, 6  ;;  %v2036_v40 = vsel %vm86_vm3, %v2035_v17, %v2034_v33  ;;  %v2512_v24 = vrot.slane %v2433_v13, 5  ;;  %v1959_v43 = vld [vmem:[%s6306_s0 + $0xc4] sm:$0x1] }
  0x5a   :  { %3977 = vmatmul.mubr.msk.f32.vlgmr.msra.gmra.mrb[8].mxu1 %vm139_vm7, %v2507_v32  ;;  %v2514_v41 = vrot.slane %v2434_v30, 4  ;;  %v2516_v42 = vrot.slane %v2435_v31, 3  ;;  %v2038_v44 = vsel %vm89_vm4, %v2037_v18, %v2036_v40  ;;  %v2509_v45 = vsel %vm77_vm0, %v2508_v37, %v2430_v19  ;;  %v1960_v49 = vld [vmem:[%s6306_s0 + $0xcc] sm:$0x1]  ;;  %v1961_v21 = vld [vmem:[%s6306_s0 + $0xd4] sm:$0x1] }
  0x5b   :  { %3991 = vmatpush3.msra.mxu1 %v4471_v39  ;;  %v2518_v46 = vrot.slane %v2436_v34, 2  ;;  %v2520_v47 = vrot.slane %v2437_v36, 1  ;;  %v2040_v50 = vsel %vm92_vm5, %v2039_v23, %v2038_v44  ;;  %v2511_v51 = vsel %vm80_vm1, %v2510_v38, %v2509_v45  ;;  %v1962_v39 = vld [vmem:[%s6306_s0 + $0xdc] sm:$0x1]  ;;  %v1963_v52 = vld [vmem:[%s6306_s0 + $0xe4] sm:$0x1] }
  0x5c   :  { %v1964_v53 = vld [vmem:[%s6306_s0 + $0xec] sm:$0x1]  ;;  %v2042_v54 = vsel %vm95_vm6, %v2041_v25, %v2040_v50  ;;  %v2513_v55 = vsel %vm83_vm2, %v2512_v24, %v2511_v51  ;;  %v1965_v56 = vld [vmem:[%s6306_s0 + $0xf4] sm:$0x1]  ;;  %v1966_v57 = vld [vmem:[%s6306_s0 + $0xfc] sm:$0x1] }
  0x5d   :  { %v2043_v58 = vrot.slane %v1960_v49, 7  ;;  %v2045_v59 = vrot.slane %v1961_v21, 6  ;;  %3971 = vmatprep.mubr.msk.f32.mxu0 %vm139_vm7, %v2042_v54  ;;  %v2515_v60 = vsel %vm86_vm3, %v2514_v41, %v2513_v55  ;;  %v2047_v61 = vrot.slane %v1962_v39, 5  ;;  %v2438_v63 = vld [vmem:[%s6306_s0 + $0xc5] sm:$0x1] }
  0x5e   :  { %v2049_v62 = vrot.slane %v1963_v52, 4  ;;  %v2051_v48 = vrot.slane %v1964_v53, 3  ;;  %v2517_v0 = vsel %vm89_vm4, %v2516_v42, %v2515_v60  ;;  %v2053_v2 = vrot.slane %v1965_v56, 2  ;;  %v2439_v4 = vld [vmem:[%s6306_s0 + $0xcd] sm:$0x1] }
  0x5f   :  { %v2044_v1 = vsel %vm77_vm0, %v2043_v58, %v1959_v43  ;;  %v2055_v3 = vrot.slane %v1966_v57, 1  ;;  %v2440_v5 = vld [vmem:[%s6306_s0 + $0xd5] sm:$0x1]  ;;  %v2519_v6 = vsel %vm92_vm5, %v2518_v46, %v2517_v0  ;;  %v2441_v35 = vld [vmem:[%s6306_s0 + $0xdd] sm:$0x1]  ;;  %v2522_v15 = vrot.slane %v2439_v4, 7 }
  0x60   :  { %v2046_v7 = vsel %vm80_vm1, %v2045_v59, %v2044_v1  ;;  %v2442_v8 = vld [vmem:[%s6306_s0 + $0xe5] sm:$0x1]  ;;  %v2443_v9 = vld [vmem:[%s6306_s0 + $0xed] sm:$0x1]  ;;  %v2521_v10 = vsel %vm95_vm6, %v2520_v47, %v2519_v6  ;;  %v2444_v12 = vld [vmem:[%s6306_s0 + $0xf5] sm:$0x1] }
  0x61   :  { %v2048_v11 = vsel %vm83_vm2, %v2047_v61, %v2046_v7  ;;  %v2445_v14 = vld [vmem:[%s6306_s0 + $0xfd] sm:$0x1]  ;;  %v2524_v16 = vrot.slane %v2440_v5, 6  ;;  %3979 = vmatprep.mubr.msk.f32.mxu1 %vm139_vm7, %v2521_v10  ;;  %v2526_v18 = vrot.slane %v2441_v35, 5  ;;  %v2528_v19 = vrot.slane %v2442_v8, 4 }
  0x62   :  { %v2050_v17 = vsel %vm86_vm3, %v2049_v62, %v2048_v11  ;;  %v2530_v20 = vrot.slane %v2443_v9, 3  ;;  %v2893_v22 = vld [vmem:[%s6306_s0 + $0x6] sm:$0x1]  ;;  %v2523_v25 = vsel %vm77_vm0, %v2522_v15, %v2438_v63  ;;  %v2532_v26 = vrot.slane %v2444_v12, 2  ;;  %v2894_v28 = vld [vmem:[%s6306_s0 + $0xe] sm:$0x1] }
  0x63   :  { %v2052_v23 = vsel %vm89_vm4, %v2051_v48, %v2050_v17  ;;  %v2534_v27 = vrot.slane %v2445_v14, 1  ;;  %v2895_v29 = vld [vmem:[%s6306_s0 + $0x16] sm:$0x1]  ;;  %v2525_v30 = vsel %vm80_vm1, %v2524_v16, %v2523_v25  ;;  %v2896_v31 = vld [vmem:[%s6306_s0 + $0x1e] sm:$0x1]  ;;  %v2959_v40 = vrot.slane %v2894_v28, 7 }
  0x64   :  { %v2054_v13 = vsel %vm92_vm5, %v2053_v2, %v2052_v23  ;;  %v2897_v32 = vld [vmem:[%s6306_s0 + $0x26] sm:$0x1]  ;;  %v2898_v33 = vld [vmem:[%s6306_s0 + $0x2e] sm:$0x1]  ;;  %v2527_v36 = vsel %vm83_vm2, %v2526_v18, %v2525_v30  ;;  %v2899_v37 = vld [vmem:[%s6306_s0 + $0x36] sm:$0x1] }
  0x65   :  { %v2056_v34 = vsel %vm95_vm6, %v2055_v3, %v2054_v13  ;;  %v2900_v38 = vld [vmem:[%s6306_s0 + $0x3e] sm:$0x1]  ;;  %v2961_v24 = vrot.slane %v2895_v29, 6  ;;  %v2529_v41 = vsel %vm86_vm3, %v2528_v19, %v2527_v36  ;;  %v2963_v42 = vrot.slane %v2896_v31, 5  ;;  %v3372_v45 = vld [vmem:[%s6306_s0 + $0x7] sm:$0x1] }
  0x66   :  { %3972 = vmatmul.mubr.msk.f32.gmra.mrb[10].mxu0 %vm139_vm7, %v2056_v34  ;;  %v2965_v43 = vrot.slane %v2897_v32, 4  ;;  %v2967_v44 = vrot.slane %v2898_v33, 3  ;;  %v2531_v46 = vsel %vm89_vm4, %v2530_v20, %v2529_v41  ;;  %v2960_v47 = vsel %vm77_vm0, %v2959_v40, %v2893_v22  ;;  %v3373_v50 = vld [vmem:[%s6306_s0 + $0xf] sm:$0x1]  ;;  %v3374_v51 = vld [vmem:[%s6306_s0 + $0x17] sm:$0x1] }
  0x67   :  { %v2969_v49 = vrot.slane %v2899_v37, 2  ;;  %v2971_v21 = vrot.slane %v2900_v38, 1  ;;  %v2533_v39 = vsel %vm92_vm5, %v2532_v26, %v2531_v46  ;;  %v2962_v52 = vsel %vm80_vm1, %v2961_v24, %v2960_v47  ;;  %v3375_v53 = vld [vmem:[%s6306_s0 + $0x1f] sm:$0x1]  ;;  %v3376_v54 = vld [vmem:[%s6306_s0 + $0x27] sm:$0x1] }
  0x68   :  { %v3377_v55 = vld [vmem:[%s6306_s0 + $0x2f] sm:$0x1]  ;;  %v2535_v56 = vsel %vm95_vm6, %v2534_v27, %v2533_v39  ;;  %v2964_v57 = vsel %vm83_vm2, %v2963_v42, %v2962_v52  ;;  %v3378_v58 = vld [vmem:[%s6306_s0 + $0x37] sm:$0x1]  ;;  %v3379_v59 = vld [vmem:[%s6306_s0 + $0x3f] sm:$0x1] }
  0x69   :  { %v3438_v60 = vrot.slane %v3373_v50, 7  ;;  %v3440_v61 = vrot.slane %v3374_v51, 6  ;;  %3980 = vmatmul.mubr.msk.f32.gmra.mrb[10].mxu1 %vm139_vm7, %v2535_v56  ;;  %v2966_v62 = vsel %vm86_vm3, %v2965_v43, %v2964_v57  ;;  %v3442_v48 = vrot.slane %v3375_v53, 5  ;;  %v2901_v1 = vld [vmem:[%s6306_s0 + $0x46] sm:$0x1] }
  0x6a   :  { %v3444_v63 = vrot.slane %v3376_v54, 4  ;;  %v3446_v0 = vrot.slane %v3377_v55, 3  ;;  %v2968_v2 = vsel %vm89_vm4, %v2967_v44, %v2966_v62  ;;  %v3448_v4 = vrot.slane %v3378_v58, 2  ;;  %v2902_v6 = vld [vmem:[%s6306_s0 + $0x4e] sm:$0x1] }
  0x6b   :  { %v3439_v3 = vsel %vm77_vm0, %v3438_v60, %v3372_v45  ;;  %v3450_v5 = vrot.slane %v3379_v59, 1  ;;  %v2903_v7 = vld [vmem:[%s6306_s0 + $0x56] sm:$0x1]  ;;  %v2970_v35 = vsel %vm92_vm5, %v2969_v49, %v2968_v2  ;;  %v2904_v9 = vld [vmem:[%s6306_s0 + $0x5e] sm:$0x1]  ;;  %v2973_v17 = vrot.slane %v2902_v6, 7 }
  0x6c   :  { %v3441_v8 = vsel %vm80_vm1, %v3440_v61, %v3439_v3  ;;  %v2905_v10 = vld [vmem:[%s6306_s0 + $0x66] sm:$0x1]  ;;  %v2906_v11 = vld [vmem:[%s6306_s0 + $0x6e] sm:$0x1]  ;;  %v2972_v12 = vsel %vm95_vm6, %v2971_v21, %v2970_v35  ;;  %v2907_v15 = vld [vmem:[%s6306_s0 + $0x76] sm:$0x1] }
  0x6d   :  { %v3443_v14 = vsel %vm83_vm2, %v3442_v48, %v3441_v8  ;;  %v2908_v16 = vld [vmem:[%s6306_s0 + $0x7e] sm:$0x1]  ;;  %v2975_v18 = vrot.slane %v2903_v7, 6  ;;  %3984 = vmatprep.mubr.msk.f32.mxu0 %vm139_vm7, %v2972_v12  ;;  %v2977_v20 = vrot.slane %v2904_v9, 5  ;;  %v2979_v22 = vrot.slane %v2905_v10, 4 }
  0x6e   :  { %v3445_v19 = vsel %vm86_vm3, %v3444_v63, %v3443_v14  ;;  %v2981_v23 = vrot.slane %v2906_v11, 3  ;;  %v3380_v25 = vld [vmem:[%s6306_s0 + $0x47] sm:$0x1]  ;;  %v2974_v27 = vsel %vm77_vm0, %v2973_v17, %v2901_v1  ;;  %v2983_v28 = vrot.slane %v2907_v15, 2  ;;  %v3381_v13 = vld [vmem:[%s6306_s0 + $0x4f] sm:$0x1] }
  0x6f   :  { %v3447_v26 = vsel %vm89_vm4, %v3446_v0, %v3445_v19  ;;  %v2985_v29 = vrot.slane %v2908_v16, 1  ;;  %v3382_v30 = vld [vmem:[%s6306_s0 + $0x57] sm:$0x1]  ;;  %v2976_v32 = vsel %vm80_vm1, %v2975_v18, %v2974_v27  ;;  %v3383_v33 = vld [vmem:[%s6306_s0 + $0x5f] sm:$0x1]  ;;  %v3452_v41 = vrot.slane %v3381_v13, 7 }
  0x70   :  { %v3449_v31 = vsel %vm92_vm5, %v3448_v4, %v3447_v26  ;;  %v3384_v34 = vld [vmem:[%s6306_s0 + $0x67] sm:$0x1]  ;;  %v3385_v36 = vld [vmem:[%s6306_s0 + $0x6f] sm:$0x1]  ;;  %v2978_v38 = vsel %vm83_vm2, %v2977_v20, %v2976_v32  ;;  %v3386_v40 = vld [vmem:[%s6306_s0 + $0x77] sm:$0x1] }
  0x71   :  { %v3451_v37 = vsel %vm95_vm6, %v3450_v5, %v3449_v31  ;;  %v3387_v24 = vld [vmem:[%s6306_s0 + $0x7f] sm:$0x1]  ;;  %v3454_v42 = vrot.slane %v3382_v30, 6  ;;  %v2980_v43 = vsel %vm86_vm3, %v2979_v22, %v2978_v38  ;;  %v3456_v44 = vrot.slane %v3383_v33, 5  ;;  %v2909_v47 = vld [vmem:[%s6306_s0 + $0x86] sm:$0x1] }
  0x72   :  { %3992 = vmatprep.mubr.msk.f32.mxu1 %vm139_vm7, %v3451_v37  ;;  %v3458_v45 = vrot.slane %v3384_v34, 4  ;;  %v3460_v46 = vrot.slane %v3385_v36, 3  ;;  %v2982_v49 = vsel %vm89_vm4, %v2981_v23, %v2980_v43  ;;  %v3453_v21 = vsel %vm77_vm0, %v3452_v41, %v3380_v25  ;;  %v2910_v39 = vld [vmem:[%s6306_s0 + $0x8e] sm:$0x1]  ;;  %v2911_v52 = vld [vmem:[%s6306_s0 + $0x96] sm:$0x1] }
  0x73   :  { %v3462_v50 = vrot.slane %v3386_v40, 2  ;;  %v3464_v51 = vrot.slane %v3387_v24, 1  ;;  %v2984_v53 = vsel %vm92_vm5, %v2983_v28, %v2982_v49  ;;  %v3455_v54 = vsel %vm80_vm1, %v3454_v42, %v3453_v21  ;;  %v2912_v55 = vld [vmem:[%s6306_s0 + $0x9e] sm:$0x1]  ;;  %v2913_v56 = vld [vmem:[%s6306_s0 + $0xa6] sm:$0x1] }
  0x74   :  { %v2914_v57 = vld [vmem:[%s6306_s0 + $0xae] sm:$0x1]  ;;  %v2986_v58 = vsel %vm95_vm6, %v2985_v29, %v2984_v53  ;;  %v3457_v59 = vsel %vm83_vm2, %v3456_v44, %v3455_v54  ;;  %v2915_v60 = vld [vmem:[%s6306_s0 + $0xb6] sm:$0x1]  ;;  %v2916_v61 = vld [vmem:[%s6306_s0 + $0xbe] sm:$0x1] }
  0x75   :  { %v2987_v62 = vrot.slane %v2910_v39, 7  ;;  %v2989_v48 = vrot.slane %v2911_v52, 6  ;;  %3985 = vmatmul.mubr.msk.f32.vlgmr.msra.gmra.mrb[12].mxu0 %vm139_vm7, %v2986_v58  ;;  %v3459_v63 = vsel %vm86_vm3, %v3458_v45, %v3457_v59  ;;  %v2991_v0 = vrot.slane %v2912_v55, 5  ;;  %v3388_v3 = vld [vmem:[%s6306_s0 + $0x87] sm:$0x1] }
  0x76   :  { %v2993_v1 = vrot.slane %v2913_v56, 4  ;;  %v2995_v2 = vrot.slane %v2914_v57, 3  ;;  %v3461_v4 = vsel %vm89_vm4, %v3460_v46, %v3459_v63  ;;  %v2997_v6 = vrot.slane %v2915_v60, 2  ;;  %v3389_v35 = vld [vmem:[%s6306_s0 + $0x8f] sm:$0x1] }
  0x77   :  { %v2988_v5 = vsel %vm77_vm0, %v2987_v62, %v2909_v47  ;;  %v2999_v7 = vrot.slane %v2916_v61, 1  ;;  %v3390_v8 = vld [vmem:[%s6306_s0 + $0x97] sm:$0x1]  ;;  %v3463_v9 = vsel %vm92_vm5, %v3462_v50, %v3461_v4  ;;  %v3391_v11 = vld [vmem:[%s6306_s0 + $0x9f] sm:$0x1]  ;;  %v3466_v19 = vrot.slane %v3389_v35, 7 }
  0x78   :  { %v2990_v10 = vsel %vm80_vm1, %v2989_v48, %v2988_v5  ;;  %v3392_v12 = vld [vmem:[%s6306_s0 + $0xa7] sm:$0x1]  ;;  %v3393_v14 = vld [vmem:[%s6306_s0 + $0xaf] sm:$0x1]  ;;  %v3465_v15 = vsel %vm95_vm6, %v3464_v51, %v3463_v9  ;;  %v3394_v17 = vld [vmem:[%s6306_s0 + $0xb7] sm:$0x1] }
  0x79   :  { %v2992_v16 = vsel %vm83_vm2, %v2991_v0, %v2990_v10  ;;  %v3395_v18 = vld [vmem:[%s6306_s0 + $0xbf] sm:$0x1]  ;;  %v3468_v20 = vrot.slane %v3390_v8, 6  ;;  %3993 = vmatmul.mubr.msk.f32.vlgmr.msra.gmra.mrb[12].mxu1 %vm139_vm7, %v3465_v15  ;;  %v3470_v23 = vrot.slane %v3391_v11, 5  ;;  %v3472_v25 = vrot.slane %v3392_v12, 4 }
  0x7a   :  { %v2994_v22 = vsel %vm86_vm3, %v2993_v1, %v2992_v16  ;;  %v3474_v26 = vrot.slane %v3393_v14, 3  ;;  %v2917_v27 = vld [vmem:[%s6306_s0 + $0xc6] sm:$0x1]  ;;  %v3467_v29 = vsel %vm77_vm0, %v3466_v19, %v3388_v3  ;;  %v3476_v13 = vrot.slane %v3394_v17, 2  ;;  %v2918_v31 = vld [vmem:[%s6306_s0 + $0xce] sm:$0x1] }
  0x7b   :  { %v2996_v28 = vsel %vm89_vm4, %v2995_v2, %v2994_v22  ;;  %v3478_v30 = vrot.slane %v3395_v18, 1  ;;  %v2919_v32 = vld [vmem:[%s6306_s0 + $0xd6] sm:$0x1]  ;;  %v3469_v34 = vsel %vm80_vm1, %v3468_v20, %v3467_v29  ;;  %v2920_v36 = vld [vmem:[%s6306_s0 + $0xde] sm:$0x1]  ;;  %v3001_v43 = vrot.slane %v2918_v31, 7 }
  0x7c   :  { %v2998_v33 = vsel %vm92_vm5, %v2997_v6, %v2996_v28  ;;  %v2921_v37 = vld [vmem:[%s6306_s0 + $0xe6] sm:$0x1]  ;;  %v2922_v38 = vld [vmem:[%s6306_s0 + $0xee] sm:$0x1]  ;;  %v3471_v24 = vsel %vm83_vm2, %v3470_v23, %v3469_v34  ;;  %v2923_v41 = vld [vmem:[%s6306_s0 + $0xf6] sm:$0x1]  ;;  %v241_v19 = vlaneseq }
  0x7d   :  { %v3000_v40 = vsel %vm95_vm6, %v2999_v7, %v2998_v33  ;;  %v2924_v42 = vld [vmem:[%s6306_s0 + $0xfe] sm:$0x1]  ;;  %v3003_v44 = vrot.slane %v2919_v32, 6  ;;  %v3473_v45 = vsel %vm86_vm3, %v3472_v25, %v3471_v24  ;;  %v3005_v46 = vrot.slane %v2920_v36, 5  ;;  %v3396_v21 = vld [vmem:[%s6306_s0 + $0xc7] sm:$0x1] }
  0x7e   :  { %3987 = vmatprep.mubr.msk.f32.mxu0 %vm139_vm7, %v3000_v40  ;;  %v3007_v47 = vrot.slane %v2921_v37, 4  ;;  %v3009_v49 = vrot.slane %v2922_v38, 3  ;;  %v3475_v50 = vsel %vm89_vm4, %v3474_v26, %v3473_v45  ;;  %v3002_v51 = vsel %vm77_vm0, %v3001_v43, %v2917_v27  ;;  %v3397_v53 = vld [vmem:[%s6306_s0 + $0xcf] sm:$0x1]  ;;  %v3398_v54 = vld [vmem:[%s6306_s0 + $0xd7] sm:$0x1] }
  0x7f   :  { %v3011_v39 = vrot.slane %v2923_v41, 2  ;;  %v3013_v52 = vrot.slane %v2924_v42, 1  ;;  %v3477_v55 = vsel %vm92_vm5, %v3476_v13, %v3475_v50  ;;  %v3004_v56 = vsel %vm80_vm1, %v3003_v44, %v3002_v51  ;;  %v3399_v57 = vld [vmem:[%s6306_s0 + $0xdf] sm:$0x1]  ;;  %v3400_v58 = vld [vmem:[%s6306_s0 + $0xe7] sm:$0x1] }
  0x80   :  { %v3401_v59 = vld [vmem:[%s6306_s0 + $0xef] sm:$0x1]  ;;  %v3479_v60 = vsel %vm95_vm6, %v3478_v30, %v3477_v55  ;;  %v3006_v61 = vsel %vm83_vm2, %v3005_v46, %v3004_v56  ;;  %v3402_v62 = vld [vmem:[%s6306_s0 + $0xf7] sm:$0x1]  ;;  %v3480_v48 = vrot.slane %v3397_v53, 7  ;;  %v3482_v63 = vrot.slane %v3398_v54, 6 }
  0x81   :  { %3995 = vmatprep.mubr.msk.f32.mxu1 %vm139_vm7, %v3479_v60  ;;  %v3008_v0 = vsel %vm86_vm3, %v3007_v47, %v3006_v61  ;;  %v3403_v1 = vld [vmem:[%s6306_s0 + $0xff] sm:$0x1]  ;;  %v3484_v2 = vrot.slane %v3399_v57, 5  ;;  %v3486_v3 = vrot.slane %v3400_v58, 4  ;;  %v3488_v6 = vrot.slane %v3401_v59, 3 }
  0x82   :  { %v3010_v4 = vsel %vm89_vm4, %v3009_v49, %v3008_v0  ;;  %v3481_v5 = vsel %vm77_vm0, %v3480_v48, %v3396_v21  ;;  %v3490_v8 = vrot.slane %v3402_v62, 2  ;;  %v3492_v11 = vrot.slane %v3403_v1, 1 }
  0x83   :  { %v3012_v7 = vsel %vm92_vm5, %v3011_v39, %v3010_v4  ;;  %v3483_v35 = vsel %vm80_vm1, %v3482_v63, %v3481_v5  ;;  %v3999_v17 = vmov 1966171168   ;;  %v242_v22 = vshrl.u32 %v241_v19, 7 }
  0x84   :  { %v3014_v9 = vsel %vm95_vm6, %v3013_v52, %v3012_v7  ;;  %v3485_v10 = vsel %vm83_vm2, %v3484_v2, %v3483_v35  ;;  %v239_v18 = vunpack.c.l.s4 %v3999_v17  ;;  %vm465_vm8 = vcmask 57344  }
  0x85   :  { %3988 = vmatmul.mubr.msk.f32.gmra.mrb[14].mxu0 %vm139_vm7, %v3014_v9  ;;  %v3487_v12 = vsel %vm86_vm3, %v3486_v3, %v3485_v10 }
  0x86   :  { %v3489_v14 = vsel %vm89_vm4, %v3488_v6, %v3487_v12  ;;  %v240_v20 = vunpack.c.0.s8 %v239_v18 }
  0x87   :  { %v3491_v15 = vsel %vm92_vm5, %v3490_v8, %v3489_v14 }
  0x88   :  { %v3493_v16 = vsel %vm95_vm6, %v3492_v11, %v3491_v15  ;;  %v5087_v23 = vsub.s32 %v240_v20, %v242_v22 }
  0x89   :  { %3996 = vmatmul.mubr.msk.f32.gmra.mrb[14].mxu1 %vm139_vm7, %v3493_v16 }
  0xe8   :  { %v3938_v25 = vpop.f32.mrb[0].mxu0 }
  0xe9   :  { %v286_v26 = vcombine.high %v3938_v25, %v3938_v25  ;;  %v293_v27 = vrot.slane %v3938_v25, %v5087_v23  ;;  %v214_v28 = vpop.f32.mrb[1].mxu0 }
  0xea   :  { %v237_v29 = vcombine.high %v214_v28, %v214_v28  ;;  %v244_v13 = vrot.slane %v214_v28, %v5087_v23 }
  0xeb   :  { %v300_v30 = vrot.slane %v286_v26, %v5087_v23  ;;  %v301_v31 = vcombine.high %v293_v27, %v293_v27  ;;  %v309_v32 = vrot.slane %v293_v27, %v5087_v23 }
  0xec   :  { %v3946_v33 = vpop.f32.mrb[0].mxu1  ;;  %v251_v34 = vrot.slane %v237_v29, %v5087_v23  ;;  %v252_v36 = vcombine.high %v244_v13, %v244_v13  ;;  %v260_v37 = vrot.slane %v244_v13, %v5087_v23 }
  0xed   :  { %v302_v38 = vcombine.high %v300_v30, %v300_v30  ;;  %v316_v40 = vrot.slane %v300_v30, %v5087_v23  ;;  %v323_v24 = vrot.slane %v301_v31, %v5087_v23  ;;  %v331_v41 = vcombine.high %v309_v32, %v309_v32  ;;  %474 = vst.msk [vmem:[%s6307_s2 + $0x40] sm:$0x1] %vm465_vm8, %v309_v32  ;;  %v694_v42 = vpop.f32.mrb[1].mxu1 }
  0xee   :  { %v766_v43 = vcombine.high %v3946_v33, %v3946_v33  ;;  %v773_v44 = vrot.slane %v3946_v33, %v5087_v23  ;;  %v253_v45 = vcombine.high %v251_v34, %v251_v34  ;;  %v267_v46 = vrot.slane %v251_v34, %v5087_v23  ;;  %466 = vst.msk [vmem:[%s6307_s2] sm:$0x1] %vm465_vm8, %v260_v37 }
  0xef   :  { %v330_v47 = vrot.slane %v302_v38, %v5087_v23  ;;  %v332_v49 = vcombine.high %v316_v40, %v316_v40  ;;  %v333_v21 = vcombine.high %v323_v24, %v323_v24  ;;  %475 = vst.msk [vmem:[%s6307_s2 + $0x48] sm:$0x1] %vm465_vm8, %v323_v24  ;;  %476 = vst.msk [vmem:[%s6307_s2 + $0x50] sm:$0x1] %vm465_vm8, %v331_v41 }
  0xf0   :  { %478 = vst.msk [vmem:[%s6307_s2 + $0x60] sm:$0x1] %vm465_vm8, %v316_v40  ;;  %v274_v50 = vrot.slane %v252_v36, %v5087_v23  ;;  %v780_v51 = vrot.slane %v766_v43, %v5087_v23  ;;  %v781_v39 = vcombine.high %v773_v44, %v773_v44  ;;  %v789_v52 = vrot.slane %v773_v44, %v5087_v23 }
  0xf1   :  { %v281_v53 = vrot.slane %v253_v45, %v5087_v23  ;;  %470 = vst.msk [vmem:[%s6307_s2 + $0x20] sm:$0x1] %vm465_vm8, %v267_v46  ;;  %v334_v54 = vcombine.high %v330_v47, %v330_v47  ;;  %477 = vst.msk [vmem:[%s6307_s2 + $0x58] sm:$0x1] %vm465_vm8, %v333_v21  ;;  %v282_v55 = vcombine.high %v260_v37, %v260_v37 }
  0xf2   :  { %479 = vst.msk [vmem:[%s6307_s2 + $0x68] sm:$0x1] %vm465_vm8, %v330_v47  ;;  %480 = vst.msk [vmem:[%s6307_s2 + $0x70] sm:$0x1] %vm465_vm8, %v332_v49  ;;  %v283_v56 = vcombine.high %v267_v46, %v267_v46  ;;  %v284_v57 = vcombine.high %v274_v50, %v274_v50  ;;  %v782_v58 = vcombine.high %v780_v51, %v780_v51 }
  0xf3   :  { %467 = vst.msk [vmem:[%s6307_s2 + $0x8] sm:$0x1] %vm465_vm8, %v274_v50  ;;  %v796_v59 = vrot.slane %v780_v51, %v5087_v23  ;;  %v803_v60 = vrot.slane %v781_v39, %v5087_v23  ;;  %v811_v61 = vcombine.high %v789_v52, %v789_v52  ;;  %953 = vst.msk [vmem:[%s6307_s2 + $0x41] sm:$0x1] %vm465_vm8, %v789_v52 }
  0xf4   :  { %471 = vst.msk [vmem:[%s6307_s2 + $0x28] sm:$0x1] %vm465_vm8, %v281_v53  ;;  %481 = vst.msk [vmem:[%s6307_s2 + $0x78] sm:$0x1] %vm465_vm8, %v334_v54  ;;  %v285_v62 = vcombine.high %v281_v53, %v281_v53  ;;  %v717_v48 = vcombine.high %v694_v42, %v694_v42  ;;  %v724_v63 = vrot.slane %v694_v42, %v5087_v23 }
  0xf5   :  { %468 = vst.msk [vmem:[%s6307_s2 + $0x10] sm:$0x1] %vm465_vm8, %v282_v55  ;;  %469 = vst.msk [vmem:[%s6307_s2 + $0x18] sm:$0x1] %vm465_vm8, %v284_v57  ;;  %v810_v0 = vrot.slane %v782_v58, %v5087_v23  ;;  %v812_v1 = vcombine.high %v796_v59, %v796_v59  ;;  %v813_v2 = vcombine.high %v803_v60, %v803_v60 }
  0xf6   :  { %472 = vst.msk [vmem:[%s6307_s2 + $0x30] sm:$0x1] %vm465_vm8, %v283_v56  ;;  %954 = vst.msk [vmem:[%s6307_s2 + $0x49] sm:$0x1] %vm465_vm8, %v803_v60  ;;  %v731_v3 = vrot.slane %v717_v48, %v5087_v23  ;;  %v732_v4 = vcombine.high %v724_v63, %v724_v63  ;;  %v740_v5 = vrot.slane %v724_v63, %v5087_v23 }
  0xf7   :  { %955 = vst.msk [vmem:[%s6307_s2 + $0x51] sm:$0x1] %vm465_vm8, %v811_v61  ;;  %957 = vst.msk [vmem:[%s6307_s2 + $0x61] sm:$0x1] %vm465_vm8, %v796_v59  ;;  %v814_v6 = vcombine.high %v810_v0, %v810_v0 }
  0xf8   :  { %473 = vst.msk [vmem:[%s6307_s2 + $0x38] sm:$0x1] %vm465_vm8, %v285_v62  ;;  %956 = vst.msk [vmem:[%s6307_s2 + $0x59] sm:$0x1] %vm465_vm8, %v813_v2  ;;  %v733_v7 = vcombine.high %v731_v3, %v731_v3  ;;  %v747_v35 = vrot.slane %v731_v3, %v5087_v23  ;;  %v754_v8 = vrot.slane %v732_v4, %v5087_v23  ;;  %v3941_v10 = vpop.f32.mrb[2].mxu0 }
  0xf9   :  { %958 = vst.msk [vmem:[%s6307_s2 + $0x69] sm:$0x1] %vm465_vm8, %v810_v0  ;;  %959 = vst.msk [vmem:[%s6307_s2 + $0x71] sm:$0x1] %vm465_vm8, %v812_v1  ;;  %v762_v9 = vcombine.high %v740_v5, %v740_v5  ;;  %v384_v15 = vcombine.high %v3941_v10, %v3941_v10  ;;  %v224_v16 = vpop.f32.mrb[3].mxu0  ;;  %v391_v17 = vrot.slane %v3941_v10, %v5087_v23 }
  0xfa   :  { %945 = vst.msk [vmem:[%s6307_s2 + $0x1] sm:$0x1] %vm465_vm8, %v740_v5  ;;  %960 = vst.msk [vmem:[%s6307_s2 + $0x79] sm:$0x1] %vm465_vm8, %v814_v6  ;;  %v761_v11 = vrot.slane %v733_v7, %v5087_v23  ;;  %v763_v12 = vcombine.high %v747_v35, %v747_v35  ;;  %v764_v14 = vcombine.high %v754_v8, %v754_v8 }
  0xfb   :  { %946 = vst.msk [vmem:[%s6307_s2 + $0x9] sm:$0x1] %vm465_vm8, %v754_v8  ;;  %947 = vst.msk [vmem:[%s6307_s2 + $0x11] sm:$0x1] %vm465_vm8, %v762_v9  ;;  %v335_v18 = vcombine.high %v224_v16, %v224_v16  ;;  %v342_v19 = vrot.slane %v224_v16, %v5087_v23  ;;  %v398_v22 = vrot.slane %v384_v15, %v5087_v23 }
  0xfc   :  { %949 = vst.msk [vmem:[%s6307_s2 + $0x21] sm:$0x1] %vm465_vm8, %v747_v35  ;;  %v765_v20 = vcombine.high %v761_v11, %v761_v11  ;;  %948 = vst.msk [vmem:[%s6307_s2 + $0x19] sm:$0x1] %vm465_vm8, %v764_v14  ;;  %v399_v25 = vcombine.high %v391_v17, %v391_v17  ;;  %v407_v26 = vrot.slane %v391_v17, %v5087_v23 }
  0xfd   :  { %950 = vst.msk [vmem:[%s6307_s2 + $0x29] sm:$0x1] %vm465_vm8, %v761_v11  ;;  %951 = vst.msk [vmem:[%s6307_s2 + $0x31] sm:$0x1] %vm465_vm8, %v763_v12  ;;  %v3949_v27 = vpop.f32.mrb[2].mxu1  ;;  %v349_v28 = vrot.slane %v335_v18, %v5087_v23  ;;  %v350_v29 = vcombine.high %v342_v19, %v342_v19  ;;  %v400_v13 = vcombine.high %v398_v22, %v398_v22 }
  0xfe   :  { %952 = vst.msk [vmem:[%s6307_s2 + $0x39] sm:$0x1] %vm465_vm8, %v765_v20  ;;  %v414_v30 = vrot.slane %v398_v22, %v5087_v23  ;;  %v864_v31 = vcombine.high %v3949_v27, %v3949_v27  ;;  %v871_v32 = vrot.slane %v3949_v27, %v5087_v23  ;;  %v704_v33 = vpop.f32.mrb[3].mxu1  ;;  %v421_v34 = vrot.slane %v399_v25, %v5087_v23 }
  0xff   :  { %v429_v36 = vcombine.high %v407_v26, %v407_v26  ;;  %490 = vst.msk [vmem:[%s6307_s2 + $0xc0] sm:$0x1] %vm465_vm8, %v407_v26  ;;  %v351_v37 = vcombine.high %v349_v28, %v349_v28  ;;  %v358_v38 = vrot.slane %v342_v19, %v5087_v23  ;;  %v428_v40 = vrot.slane %v400_v13, %v5087_v23 }
 0x100   :  { %v430_v24 = vcombine.high %v414_v30, %v414_v30  ;;  %494 = vst.msk [vmem:[%s6307_s2 + $0xe0] sm:$0x1] %vm465_vm8, %v414_v30  ;;  %v878_v41 = vrot.slane %v864_v31, %v5087_v23  ;;  %v879_v42 = vcombine.high %v871_v32, %v871_v32  ;;  %v431_v43 = vcombine.high %v421_v34, %v421_v34 }
 0x101   :  { %491 = vst.msk [vmem:[%s6307_s2 + $0xc8] sm:$0x1] %vm465_vm8, %v421_v34  ;;  %492 = vst.msk [vmem:[%s6307_s2 + $0xd0] sm:$0x1] %vm465_vm8, %v429_v36  ;;  %v887_v44 = vrot.slane %v871_v32, %v5087_v23  ;;  %v365_v45 = vrot.slane %v349_v28, %v5087_v23  ;;  %v372_v46 = vrot.slane %v350_v29, %v5087_v23 }
 0x102   :  { %482 = vst.msk [vmem:[%s6307_s2 + $0x80] sm:$0x1] %vm465_vm8, %v358_v38  ;;  %v432_v47 = vcombine.high %v428_v40, %v428_v40  ;;  %495 = vst.msk [vmem:[%s6307_s2 + $0xe8] sm:$0x1] %vm465_vm8, %v428_v40  ;;  %v880_v49 = vcombine.high %v878_v41, %v878_v41  ;;  %v894_v21 = vrot.slane %v878_v41, %v5087_v23 }
 0x103   :  { %496 = vst.msk [vmem:[%s6307_s2 + $0xf0] sm:$0x1] %vm465_vm8, %v430_v24  ;;  %v901_v50 = vrot.slane %v879_v42, %v5087_v23  ;;  %493 = vst.msk [vmem:[%s6307_s2 + $0xd8] sm:$0x1] %vm465_vm8, %v431_v43  ;;  %v909_v51 = vcombine.high %v887_v44, %v887_v44  ;;  %v379_v39 = vrot.slane %v351_v37, %v5087_v23 }
 0x104   :  { %969 = vst.msk [vmem:[%s6307_s2 + $0xc1] sm:$0x1] %vm465_vm8, %v887_v44  ;;  %v380_v52 = vcombine.high %v358_v38, %v358_v38  ;;  %v381_v53 = vcombine.high %v365_v45, %v365_v45  ;;  %483 = vst.msk [vmem:[%s6307_s2 + $0x88] sm:$0x1] %vm465_vm8, %v372_v46  ;;  %v908_v54 = vrot.slane %v880_v49, %v5087_v23 }
 0x105   :  { %486 = vst.msk [vmem:[%s6307_s2 + $0xa0] sm:$0x1] %vm465_vm8, %v365_v45  ;;  %497 = vst.msk [vmem:[%s6307_s2 + $0xf8] sm:$0x1] %vm465_vm8, %v432_v47  ;;  %v910_v55 = vcombine.high %v894_v21, %v894_v21  ;;  %v911_v56 = vcombine.high %v901_v50, %v901_v50  ;;  %v382_v57 = vcombine.high %v372_v46, %v372_v46 }
 0x106   :  { %970 = vst.msk [vmem:[%s6307_s2 + $0xc9] sm:$0x1] %vm465_vm8, %v901_v50  ;;  %973 = vst.msk [vmem:[%s6307_s2 + $0xe1] sm:$0x1] %vm465_vm8, %v894_v21  ;;  %v383_v58 = vcombine.high %v379_v39, %v379_v39  ;;  %v815_v59 = vcombine.high %v704_v33, %v704_v33  ;;  %v822_v60 = vrot.slane %v704_v33, %v5087_v23 }
 0x107   :  { %971 = vst.msk [vmem:[%s6307_s2 + $0xd1] sm:$0x1] %vm465_vm8, %v909_v51  ;;  %484 = vst.msk [vmem:[%s6307_s2 + $0x90] sm:$0x1] %vm465_vm8, %v380_v52  ;;  %v912_v61 = vcombine.high %v908_v54, %v908_v54 }
 0x108   :  { %487 = vst.msk [vmem:[%s6307_s2 + $0xa8] sm:$0x1] %vm465_vm8, %v379_v39  ;;  %488 = vst.msk [vmem:[%s6307_s2 + $0xb0] sm:$0x1] %vm465_vm8, %v381_v53  ;;  %v829_v62 = vrot.slane %v815_v59, %v5087_v23  ;;  %v830_v48 = vcombine.high %v822_v60, %v822_v60  ;;  %v838_v63 = vrot.slane %v822_v60, %v5087_v23 }
 0x109   :  { %972 = vst.msk [vmem:[%s6307_s2 + $0xd9] sm:$0x1] %vm465_vm8, %v911_v56  ;;  %974 = vst.msk [vmem:[%s6307_s2 + $0xe9] sm:$0x1] %vm465_vm8, %v908_v54  ;;  %v3954_v4 = vpop.f32.mrb[4].mxu0 }
 0x10a   :  { %975 = vst.msk [vmem:[%s6307_s2 + $0xf1] sm:$0x1] %vm465_vm8, %v910_v55  ;;  %485 = vst.msk [vmem:[%s6307_s2 + $0x98] sm:$0x1] %vm465_vm8, %v382_v57  ;;  %v831_v0 = vcombine.high %v829_v62, %v829_v62  ;;  %v845_v1 = vrot.slane %v829_v62, %v5087_v23  ;;  %v852_v2 = vrot.slane %v830_v48, %v5087_v23  ;;  %v1173_v7 = vpop.f32.mrb[5].mxu0 }
 0x10b   :  { %489 = vst.msk [vmem:[%s6307_s2 + $0xb8] sm:$0x1] %vm465_vm8, %v383_v58  ;;  %976 = vst.msk [vmem:[%s6307_s2 + $0xf9] sm:$0x1] %vm465_vm8, %v912_v61  ;;  %v860_v3 = vcombine.high %v838_v63, %v838_v63  ;;  %v1245_v5 = vcombine.high %v3954_v4, %v3954_v4  ;;  %v1252_v6 = vrot.slane %v3954_v4, %v5087_v23 }
 0x10c   :  { %961 = vst.msk [vmem:[%s6307_s2 + $0x81] sm:$0x1] %vm465_vm8, %v838_v63  ;;  %v859_v35 = vrot.slane %v831_v0, %v5087_v23  ;;  %v861_v8 = vcombine.high %v845_v1, %v845_v1  ;;  %v862_v9 = vcombine.high %v852_v2, %v852_v2  ;;  %962 = vst.msk [vmem:[%s6307_s2 + $0x89] sm:$0x1] %vm465_vm8, %v852_v2  ;;  %v3962_v17 = vpop.f32.mrb[4].mxu1 }
 0x10d   :  { %963 = vst.msk [vmem:[%s6307_s2 + $0x91] sm:$0x1] %vm465_vm8, %v860_v3  ;;  %965 = vst.msk [vmem:[%s6307_s2 + $0xa1] sm:$0x1] %vm465_vm8, %v845_v1  ;;  %v1196_v10 = vcombine.high %v1173_v7, %v1173_v7  ;;  %v1259_v11 = vrot.slane %v1245_v5, %v5087_v23  ;;  %v1260_v12 = vcombine.high %v1252_v6, %v1252_v6  ;;  %v1652_v26 = vpop.f32.mrb[5].mxu1 }
 0x10e   :  { %v1268_v14 = vrot.slane %v1252_v6, %v5087_v23  ;;  %v1203_v15 = vrot.slane %v1173_v7, %v5087_v23  ;;  %v863_v16 = vcombine.high %v859_v35, %v859_v35  ;;  %964 = vst.msk [vmem:[%s6307_s2 + $0x99] sm:$0x1] %vm465_vm8, %v862_v9  ;;  %966 = vst.msk [vmem:[%s6307_s2 + $0xa9] sm:$0x1] %vm465_vm8, %v859_v35 }
 0x10f   :  { %967 = vst.msk [vmem:[%s6307_s2 + $0xb1] sm:$0x1] %vm465_vm8, %v861_v8  ;;  %v1210_v18 = vrot.slane %v1196_v10, %v5087_v23  ;;  %v1261_v19 = vcombine.high %v1259_v11, %v1259_v11  ;;  %v1275_v20 = vrot.slane %v1259_v11, %v5087_v23  ;;  %v1282_v22 = vrot.slane %v1260_v12, %v5087_v23 }
 0x110   :  { %v1290_v25 = vcombine.high %v1268_v14, %v1268_v14  ;;  %1432 = vst.msk [vmem:[%s6307_s2 + $0x42] sm:$0x1] %vm465_vm8, %v1268_v14  ;;  %968 = vst.msk [vmem:[%s6307_s2 + $0xb9] sm:$0x1] %vm465_vm8, %v863_v16  ;;  %v1724_v27 = vcombine.high %v3962_v17, %v3962_v17  ;;  %v1731_v28 = vrot.slane %v3962_v17, %v5087_v23 }
 0x111   :  { %v1211_v29 = vcombine.high %v1203_v15, %v1203_v15  ;;  %v1212_v13 = vcombine.high %v1210_v18, %v1210_v18  ;;  %v1289_v30 = vrot.slane %v1261_v19, %v5087_v23  ;;  %v1291_v31 = vcombine.high %v1275_v20, %v1275_v20  ;;  %1433 = vst.msk [vmem:[%s6307_s2 + $0x4a] sm:$0x1] %vm465_vm8, %v1282_v22 }
 0x112   :  { %v1292_v32 = vcombine.high %v1282_v22, %v1282_v22  ;;  %1434 = vst.msk [vmem:[%s6307_s2 + $0x52] sm:$0x1] %vm465_vm8, %v1290_v25  ;;  %1436 = vst.msk [vmem:[%s6307_s2 + $0x62] sm:$0x1] %vm465_vm8, %v1275_v20  ;;  %v1219_v33 = vrot.slane %v1203_v15, %v5087_v23  ;;  %v1738_v34 = vrot.slane %v1724_v27, %v5087_v23 }
 0x113   :  { %v1739_v36 = vcombine.high %v1731_v28, %v1731_v28  ;;  %v1747_v37 = vrot.slane %v1731_v28, %v5087_v23  ;;  %v1226_v38 = vrot.slane %v1210_v18, %v5087_v23  ;;  %v1293_v40 = vcombine.high %v1289_v30, %v1289_v30  ;;  %1437 = vst.msk [vmem:[%s6307_s2 + $0x6a] sm:$0x1] %vm465_vm8, %v1289_v30 }
 0x114   :  { %1435 = vst.msk [vmem:[%s6307_s2 + $0x5a] sm:$0x1] %vm465_vm8, %v1292_v32  ;;  %1438 = vst.msk [vmem:[%s6307_s2 + $0x72] sm:$0x1] %vm465_vm8, %v1291_v31  ;;  %v1233_v24 = vrot.slane %v1211_v29, %v5087_v23  ;;  %v1240_v41 = vrot.slane %v1212_v13, %v5087_v23  ;;  %v1241_v42 = vcombine.high %v1219_v33, %v1219_v33 }
 0x115   :  { %1424 = vst.msk [vmem:[%s6307_s2 + $0x2] sm:$0x1] %vm465_vm8, %v1219_v33  ;;  %v1740_v43 = vcombine.high %v1738_v34, %v1738_v34  ;;  %v1754_v44 = vrot.slane %v1738_v34, %v5087_v23  ;;  %v1761_v45 = vrot.slane %v1739_v36, %v5087_v23  ;;  %v1769_v46 = vcombine.high %v1747_v37, %v1747_v37 }
 0x116   :  { %1911 = vst.msk [vmem:[%s6307_s2 + $0x43] sm:$0x1] %vm465_vm8, %v1747_v37  ;;  %1428 = vst.msk [vmem:[%s6307_s2 + $0x22] sm:$0x1] %vm465_vm8, %v1226_v38  ;;  %v1242_v47 = vcombine.high %v1226_v38, %v1226_v38  ;;  %v1243_v49 = vcombine.high %v1233_v24, %v1233_v24  ;;  %v1244_v21 = vcombine.high %v1240_v41, %v1240_v41 }
 0x117   :  { %1439 = vst.msk [vmem:[%s6307_s2 + $0x7a] sm:$0x1] %vm465_vm8, %v1293_v40  ;;  %1425 = vst.msk [vmem:[%s6307_s2 + $0xa] sm:$0x1] %vm465_vm8, %v1233_v24  ;;  %v1675_v50 = vcombine.high %v1652_v26, %v1652_v26  ;;  %v1768_v51 = vrot.slane %v1740_v43, %v5087_v23  ;;  %v1770_v39 = vcombine.high %v1754_v44, %v1754_v44 }
 0x118   :  { %1426 = vst.msk [vmem:[%s6307_s2 + $0x12] sm:$0x1] %vm465_vm8, %v1241_v42  ;;  %1429 = vst.msk [vmem:[%s6307_s2 + $0x2a] sm:$0x1] %vm465_vm8, %v1240_v41  ;;  %v1771_v52 = vcombine.high %v1761_v45, %v1761_v45  ;;  %v1682_v53 = vrot.slane %v1652_v26, %v5087_v23  ;;  %v3957_v62 = vpop.f32.mrb[6].mxu0 }
 0x119   :  { %1912 = vst.msk [vmem:[%s6307_s2 + $0x4b] sm:$0x1] %vm465_vm8, %v1761_v45  ;;  %1913 = vst.msk [vmem:[%s6307_s2 + $0x53] sm:$0x1] %vm465_vm8, %v1769_v46  ;;  %v1689_v54 = vrot.slane %v1675_v50, %v5087_v23  ;;  %v1772_v55 = vcombine.high %v1768_v51, %v1768_v51  ;;  %v1343_v0 = vcombine.high %v3957_v62, %v3957_v62  ;;  %v1183_v2 = vpop.f32.mrb[7].mxu0 }
 0x11a   :  { %1915 = vst.msk [vmem:[%s6307_s2 + $0x63] sm:$0x1] %vm465_vm8, %v1754_v44  ;;  %1427 = vst.msk [vmem:[%s6307_s2 + $0x1a] sm:$0x1] %vm465_vm8, %v1243_v49  ;;  %v1690_v56 = vcombine.high %v1682_v53, %v1682_v53  ;;  %v1698_v57 = vrot.slane %v1682_v53, %v5087_v23  ;;  %v1350_v1 = vrot.slane %v3957_v62, %v5087_v23 }
 0x11b   :  { %1430 = vst.msk [vmem:[%s6307_s2 + $0x32] sm:$0x1] %vm465_vm8, %v1242_v47  ;;  %1431 = vst.msk [vmem:[%s6307_s2 + $0x3a] sm:$0x1] %vm465_vm8, %v1244_v21  ;;  %v1691_v58 = vcombine.high %v1689_v54, %v1689_v54  ;;  %v1705_v59 = vrot.slane %v1689_v54, %v5087_v23  ;;  %v1294_v4 = vcombine.high %v1183_v2, %v1183_v2 }
 0x11c   :  { %1914 = vst.msk [vmem:[%s6307_s2 + $0x5b] sm:$0x1] %vm465_vm8, %v1771_v52  ;;  %1916 = vst.msk [vmem:[%s6307_s2 + $0x6b] sm:$0x1] %vm465_vm8, %v1768_v51  ;;  %v1712_v60 = vrot.slane %v1690_v56, %v5087_v23  ;;  %v1720_v61 = vcombine.high %v1698_v57, %v1698_v57  ;;  %v1301_v5 = vrot.slane %v1183_v2, %v5087_v23  ;;  %v3965_v9 = vpop.f32.mrb[6].mxu1 }
 0x11d   :  { %1917 = vst.msk [vmem:[%s6307_s2 + $0x73] sm:$0x1] %vm465_vm8, %v1770_v39  ;;  %1918 = vst.msk [vmem:[%s6307_s2 + $0x7b] sm:$0x1] %vm465_vm8, %v1772_v55  ;;  %v1719_v48 = vrot.slane %v1691_v58, %v5087_v23  ;;  %v1721_v63 = vcombine.high %v1705_v59, %v1705_v59  ;;  %v1357_v7 = vrot.slane %v1343_v0, %v5087_v23  ;;  %v1662_v18 = vpop.f32.mrb[7].mxu1 }
 0x11e   :  { %1903 = vst.msk [vmem:[%s6307_s2 + $0x3] sm:$0x1] %vm465_vm8, %v1698_v57  ;;  %1907 = vst.msk [vmem:[%s6307_s2 + $0x23] sm:$0x1] %vm465_vm8, %v1705_v59  ;;  %v1722_v3 = vcombine.high %v1712_v60, %v1712_v60  ;;  %v1358_v35 = vcombine.high %v1350_v1, %v1350_v1  ;;  %v1366_v8 = vrot.slane %v1350_v1, %v5087_v23 }
 0x11f   :  { %1904 = vst.msk [vmem:[%s6307_s2 + $0xb] sm:$0x1] %vm465_vm8, %v1712_v60  ;;  %1905 = vst.msk [vmem:[%s6307_s2 + $0x13] sm:$0x1] %vm465_vm8, %v1720_v61  ;;  %v1723_v6 = vcombine.high %v1719_v48, %v1719_v48  ;;  %v1308_v10 = vrot.slane %v1294_v4, %v5087_v23  ;;  %v1309_v11 = vcombine.high %v1301_v5, %v1301_v5 }
 0x120   :  { %1908 = vst.msk [vmem:[%s6307_s2 + $0x2b] sm:$0x1] %vm465_vm8, %v1719_v48  ;;  %1909 = vst.msk [vmem:[%s6307_s2 + $0x33] sm:$0x1] %vm465_vm8, %v1721_v63  ;;  %v1317_v12 = vrot.slane %v1301_v5, %v5087_v23  ;;  %v1359_v14 = vcombine.high %v1357_v7, %v1357_v7  ;;  %v1373_v15 = vrot.slane %v1357_v7, %v5087_v23 }
 0x121   :  { %1906 = vst.msk [vmem:[%s6307_s2 + $0x1b] sm:$0x1] %vm465_vm8, %v1722_v3  ;;  %1910 = vst.msk [vmem:[%s6307_s2 + $0x3b] sm:$0x1] %vm465_vm8, %v1723_v6  ;;  %v1380_v16 = vrot.slane %v1358_v35, %v5087_v23  ;;  %v1388_v17 = vcombine.high %v1366_v8, %v1366_v8  ;;  %v1822_v19 = vcombine.high %v3965_v9, %v3965_v9 }
 0x122   :  { %1448 = vst.msk [vmem:[%s6307_s2 + $0xc2] sm:$0x1] %vm465_vm8, %v1366_v8  ;;  %v1829_v20 = vrot.slane %v3965_v9, %v5087_v23  ;;  %v1310_v22 = vcombine.high %v1308_v10, %v1308_v10  ;;  %v1324_v25 = vrot.slane %v1308_v10, %v5087_v23  ;;  %1440 = vst.msk [vmem:[%s6307_s2 + $0x82] sm:$0x1] %vm465_vm8, %v1317_v12 }
 0x123   :  { %v1387_v26 = vrot.slane %v1359_v14, %v5087_v23  ;;  %v1389_v27 = vcombine.high %v1373_v15, %v1373_v15  ;;  %v1390_v28 = vcombine.high %v1380_v16, %v1380_v16  ;;  %1449 = vst.msk [vmem:[%s6307_s2 + $0xca] sm:$0x1] %vm465_vm8, %v1380_v16  ;;  %1450 = vst.msk [vmem:[%s6307_s2 + $0xd2] sm:$0x1] %vm465_vm8, %v1388_v17 }
 0x124   :  { %1452 = vst.msk [vmem:[%s6307_s2 + $0xe2] sm:$0x1] %vm465_vm8, %v1373_v15  ;;  %v1331_v29 = vrot.slane %v1309_v11, %v5087_v23  ;;  %v1836_v13 = vrot.slane %v1822_v19, %v5087_v23  ;;  %v1837_v30 = vcombine.high %v1829_v20, %v1829_v20  ;;  %v1845_v31 = vrot.slane %v1829_v20, %v5087_v23 }
 0x125   :  { %v1338_v32 = vrot.slane %v1310_v22, %v5087_v23  ;;  %1444 = vst.msk [vmem:[%s6307_s2 + $0xa2] sm:$0x1] %vm465_vm8, %v1324_v25  ;;  %v1391_v33 = vcombine.high %v1387_v26, %v1387_v26  ;;  %1451 = vst.msk [vmem:[%s6307_s2 + $0xda] sm:$0x1] %vm465_vm8, %v1390_v28  ;;  %v1339_v34 = vcombine.high %v1317_v12, %v1317_v12 }
 0x126   :  { %1453 = vst.msk [vmem:[%s6307_s2 + $0xea] sm:$0x1] %vm465_vm8, %v1387_v26  ;;  %1454 = vst.msk [vmem:[%s6307_s2 + $0xf2] sm:$0x1] %vm465_vm8, %v1389_v27  ;;  %v1340_v36 = vcombine.high %v1324_v25, %v1324_v25  ;;  %v1341_v37 = vcombine.high %v1331_v29, %v1331_v29  ;;  %v1838_v38 = vcombine.high %v1836_v13, %v1836_v13 }
 0x127   :  { %1441 = vst.msk [vmem:[%s6307_s2 + $0x8a] sm:$0x1] %vm465_vm8, %v1331_v29  ;;  %v1852_v40 = vrot.slane %v1836_v13, %v5087_v23  ;;  %v1859_v24 = vrot.slane %v1837_v30, %v5087_v23  ;;  %v1867_v41 = vcombine.high %v1845_v31, %v1845_v31  ;;  %1927 = vst.msk [vmem:[%s6307_s2 + $0xc3] sm:$0x1] %vm465_vm8, %v1845_v31 }
 0x128   :  { %1445 = vst.msk [vmem:[%s6307_s2 + $0xaa] sm:$0x1] %vm465_vm8, %v1338_v32  ;;  %1455 = vst.msk [vmem:[%s6307_s2 + $0xfa] sm:$0x1] %vm465_vm8, %v1391_v33  ;;  %v1342_v42 = vcombine.high %v1338_v32, %v1338_v32  ;;  %v1773_v43 = vcombine.high %v1662_v18, %v1662_v18  ;;  %v1780_v44 = vrot.slane %v1662_v18, %v5087_v23  ;;  %v3970_v55 = vpop.f32.mrb[8].mxu0 }
 0x129   :  { %1442 = vst.msk [vmem:[%s6307_s2 + $0x92] sm:$0x1] %vm465_vm8, %v1339_v34  ;;  %1443 = vst.msk [vmem:[%s6307_s2 + $0x9a] sm:$0x1] %vm465_vm8, %v1341_v37  ;;  %v1866_v45 = vrot.slane %v1838_v38, %v5087_v23  ;;  %v1868_v46 = vcombine.high %v1852_v40, %v1852_v40  ;;  %v1869_v47 = vcombine.high %v1859_v24, %v1859_v24  ;;  %v2131_v60 = vpop.f32.mrb[9].mxu0 }
 0x12a   :  { %1446 = vst.msk [vmem:[%s6307_s2 + $0xb2] sm:$0x1] %vm465_vm8, %v1340_v36  ;;  %1928 = vst.msk [vmem:[%s6307_s2 + $0xcb] sm:$0x1] %vm465_vm8, %v1859_v24  ;;  %v1787_v49 = vrot.slane %v1773_v43, %v5087_v23  ;;  %v1788_v21 = vcombine.high %v1780_v44, %v1780_v44  ;;  %v1796_v50 = vrot.slane %v1780_v44, %v5087_v23 }
 0x12b   :  { %1929 = vst.msk [vmem:[%s6307_s2 + $0xd3] sm:$0x1] %vm465_vm8, %v1867_v41  ;;  %1931 = vst.msk [vmem:[%s6307_s2 + $0xe3] sm:$0x1] %vm465_vm8, %v1852_v40  ;;  %v1870_v51 = vcombine.high %v1866_v45, %v1866_v45  ;;  %v2203_v59 = vcombine.high %v3970_v55, %v3970_v55  ;;  %v2210_v61 = vrot.slane %v3970_v55, %v5087_v23 }
 0x12c   :  { %1447 = vst.msk [vmem:[%s6307_s2 + $0xba] sm:$0x1] %vm465_vm8, %v1342_v42  ;;  %1930 = vst.msk [vmem:[%s6307_s2 + $0xdb] sm:$0x1] %vm465_vm8, %v1869_v47  ;;  %v1789_v39 = vcombine.high %v1787_v49, %v1787_v49  ;;  %v1803_v52 = vrot.slane %v1787_v49, %v5087_v23  ;;  %v1810_v53 = vrot.slane %v1788_v21, %v5087_v23 }
 0x12d   :  { %1932 = vst.msk [vmem:[%s6307_s2 + $0xeb] sm:$0x1] %vm465_vm8, %v1866_v45  ;;  %1933 = vst.msk [vmem:[%s6307_s2 + $0xf3] sm:$0x1] %vm465_vm8, %v1868_v46  ;;  %v1818_v54 = vcombine.high %v1796_v50, %v1796_v50  ;;  %v2154_v62 = vcombine.high %v2131_v60, %v2131_v60  ;;  %v2161_v48 = vrot.slane %v2131_v60, %v5087_v23  ;;  %v3978_v3 = vpop.f32.mrb[8].mxu1 }
 0x12e   :  { %1919 = vst.msk [vmem:[%s6307_s2 + $0x83] sm:$0x1] %vm465_vm8, %v1796_v50  ;;  %1934 = vst.msk [vmem:[%s6307_s2 + $0xfb] sm:$0x1] %vm465_vm8, %v1870_v51  ;;  %v1817_v56 = vrot.slane %v1789_v39, %v5087_v23  ;;  %v1819_v57 = vcombine.high %v1803_v52, %v1803_v52  ;;  %v1820_v58 = vcombine.high %v1810_v53, %v1810_v53  ;;  %v2610_v9 = vpop.f32.mrb[9].mxu1 }
 0x12f   :  { %1920 = vst.msk [vmem:[%s6307_s2 + $0x8b] sm:$0x1] %vm465_vm8, %v1810_v53  ;;  %1921 = vst.msk [vmem:[%s6307_s2 + $0x93] sm:$0x1] %vm465_vm8, %v1818_v54  ;;  %v2217_v0 = vrot.slane %v2203_v59, %v5087_v23  ;;  %v2218_v1 = vcombine.high %v2210_v61, %v2210_v61  ;;  %v2226_v2 = vrot.slane %v2210_v61, %v5087_v23 }
 0x130   :  { %1923 = vst.msk [vmem:[%s6307_s2 + $0xa3] sm:$0x1] %vm465_vm8, %v1803_v52  ;;  %v1821_v63 = vcombine.high %v1817_v56, %v1817_v56  ;;  %1922 = vst.msk [vmem:[%s6307_s2 + $0x9b] sm:$0x1] %vm465_vm8, %v1820_v58  ;;  %v2168_v4 = vrot.slane %v2154_v62, %v5087_v23  ;;  %v2169_v5 = vcombine.high %v2161_v48, %v2161_v48 }
 0x131   :  { %1924 = vst.msk [vmem:[%s6307_s2 + $0xab] sm:$0x1] %vm465_vm8, %v1817_v56  ;;  %1925 = vst.msk [vmem:[%s6307_s2 + $0xb3] sm:$0x1] %vm465_vm8, %v1819_v57  ;;  %v2219_v6 = vcombine.high %v2217_v0, %v2217_v0  ;;  %v2233_v7 = vrot.slane %v2217_v0, %v5087_v23  ;;  %v2682_v35 = vcombine.high %v3978_v3, %v3978_v3 }
 0x132   :  { %1926 = vst.msk [vmem:[%s6307_s2 + $0xbb] sm:$0x1] %vm465_vm8, %v1821_v63  ;;  %v2689_v8 = vrot.slane %v3978_v3, %v5087_v23  ;;  %v2240_v10 = vrot.slane %v2218_v1, %v5087_v23  ;;  %v2248_v11 = vcombine.high %v2226_v2, %v2226_v2  ;;  %2390 = vst.msk [vmem:[%s6307_s2 + $0x44] sm:$0x1] %vm465_vm8, %v2226_v2 }
 0x133   :  { %v2170_v12 = vcombine.high %v2168_v4, %v2168_v4  ;;  %v2177_v14 = vrot.slane %v2161_v48, %v5087_v23  ;;  %v2247_v15 = vrot.slane %v2219_v6, %v5087_v23  ;;  %v2249_v16 = vcombine.high %v2233_v7, %v2233_v7  ;;  %2394 = vst.msk [vmem:[%s6307_s2 + $0x64] sm:$0x1] %vm465_vm8, %v2233_v7 }
 0x134   :  { %v2696_v17 = vrot.slane %v2682_v35, %v5087_v23  ;;  %v2697_v18 = vcombine.high %v2689_v8, %v2689_v8  ;;  %v2250_v19 = vcombine.high %v2240_v10, %v2240_v10  ;;  %2391 = vst.msk [vmem:[%s6307_s2 + $0x4c] sm:$0x1] %vm465_vm8, %v2240_v10  ;;  %2392 = vst.msk [vmem:[%s6307_s2 + $0x54] sm:$0x1] %vm465_vm8, %v2248_v11 }
 0x135   :  { %v2705_v20 = vrot.slane %v2689_v8, %v5087_v23  ;;  %v2184_v22 = vrot.slane %v2168_v4, %v5087_v23  ;;  %v2191_v25 = vrot.slane %v2169_v5, %v5087_v23  ;;  %2382 = vst.msk [vmem:[%s6307_s2 + $0x4] sm:$0x1] %vm465_vm8, %v2177_v14  ;;  %v2251_v26 = vcombine.high %v2247_v15, %v2247_v15 }
 0x136   :  { %2395 = vst.msk [vmem:[%s6307_s2 + $0x6c] sm:$0x1] %vm465_vm8, %v2247_v15  ;;  %2396 = vst.msk [vmem:[%s6307_s2 + $0x74] sm:$0x1] %vm465_vm8, %v2249_v16  ;;  %v2698_v27 = vcombine.high %v2696_v17, %v2696_v17  ;;  %v2712_v28 = vrot.slane %v2696_v17, %v5087_v23  ;;  %v2719_v29 = vrot.slane %v2697_v18, %v5087_v23 }
 0x137   :  { %2393 = vst.msk [vmem:[%s6307_s2 + $0x5c] sm:$0x1] %vm465_vm8, %v2250_v19  ;;  %v2727_v13 = vcombine.high %v2705_v20, %v2705_v20  ;;  %2869 = vst.msk [vmem:[%s6307_s2 + $0x45] sm:$0x1] %vm465_vm8, %v2705_v20  ;;  %v2198_v30 = vrot.slane %v2170_v12, %v5087_v23  ;;  %v2199_v31 = vcombine.high %v2177_v14, %v2177_v14 }
 0x138   :  { %v2200_v32 = vcombine.high %v2184_v22, %v2184_v22  ;;  %2383 = vst.msk [vmem:[%s6307_s2 + $0xc] sm:$0x1] %vm465_vm8, %v2191_v25  ;;  %2386 = vst.msk [vmem:[%s6307_s2 + $0x24] sm:$0x1] %vm465_vm8, %v2184_v22  ;;  %v2726_v33 = vrot.slane %v2698_v27, %v5087_v23  ;;  %v2728_v34 = vcombine.high %v2712_v28, %v2712_v28 }
 0x139   :  { %2397 = vst.msk [vmem:[%s6307_s2 + $0x7c] sm:$0x1] %vm465_vm8, %v2251_v26  ;;  %v2729_v36 = vcombine.high %v2719_v29, %v2719_v29  ;;  %2870 = vst.msk [vmem:[%s6307_s2 + $0x4d] sm:$0x1] %vm465_vm8, %v2719_v29  ;;  %v2201_v37 = vcombine.high %v2191_v25, %v2191_v25  ;;  %v2202_v38 = vcombine.high %v2198_v30, %v2198_v30  ;;  %v3973_v21 = vpop.f32.mrb[10].mxu0 }
 0x13a   :  { %2873 = vst.msk [vmem:[%s6307_s2 + $0x65] sm:$0x1] %vm465_vm8, %v2712_v28  ;;  %2871 = vst.msk [vmem:[%s6307_s2 + $0x55] sm:$0x1] %vm465_vm8, %v2727_v13  ;;  %v2633_v40 = vcombine.high %v2610_v9, %v2610_v9  ;;  %v2640_v24 = vrot.slane %v2610_v9, %v5087_v23  ;;  %v2730_v41 = vcombine.high %v2726_v33, %v2726_v33  ;;  %v2141_v39 = vpop.f32.mrb[11].mxu0 }
 0x13b   :  { %2384 = vst.msk [vmem:[%s6307_s2 + $0x14] sm:$0x1] %vm465_vm8, %v2199_v31  ;;  %2387 = vst.msk [vmem:[%s6307_s2 + $0x2c] sm:$0x1] %vm465_vm8, %v2198_v30  ;;  %v2301_v50 = vcombine.high %v3973_v21, %v3973_v21  ;;  %v2308_v51 = vrot.slane %v3973_v21, %v5087_v23  ;;  %v2252_v55 = vcombine.high %v2141_v39, %v2141_v39 }
 0x13c   :  { %2388 = vst.msk [vmem:[%s6307_s2 + $0x34] sm:$0x1] %vm465_vm8, %v2200_v32  ;;  %2872 = vst.msk [vmem:[%s6307_s2 + $0x5d] sm:$0x1] %vm465_vm8, %v2729_v36  ;;  %v2647_v42 = vrot.slane %v2633_v40, %v5087_v23  ;;  %v2648_v43 = vcombine.high %v2640_v24, %v2640_v24  ;;  %v2656_v44 = vrot.slane %v2640_v24, %v5087_v23  ;;  %v3981_v61 = vpop.f32.mrb[10].mxu1 }
 0x13d   :  { %2874 = vst.msk [vmem:[%s6307_s2 + $0x6d] sm:$0x1] %vm465_vm8, %v2726_v33  ;;  %2875 = vst.msk [vmem:[%s6307_s2 + $0x75] sm:$0x1] %vm465_vm8, %v2728_v34  ;;  %v2315_v56 = vrot.slane %v2301_v50, %v5087_v23  ;;  %v2316_v57 = vcombine.high %v2308_v51, %v2308_v51  ;;  %v2324_v58 = vrot.slane %v2308_v51, %v5087_v23  ;;  %v2620_v2 = vpop.f32.mrb[11].mxu1 }
 0x13e   :  { %2385 = vst.msk [vmem:[%s6307_s2 + $0x1c] sm:$0x1] %vm465_vm8, %v2201_v37  ;;  %2389 = vst.msk [vmem:[%s6307_s2 + $0x3c] sm:$0x1] %vm465_vm8, %v2202_v38  ;;  %v2649_v45 = vcombine.high %v2647_v42, %v2647_v42  ;;  %v2663_v46 = vrot.slane %v2647_v42, %v5087_v23  ;;  %v2670_v47 = vrot.slane %v2648_v43, %v5087_v23 }
 0x13f   :  { %2876 = vst.msk [vmem:[%s6307_s2 + $0x7d] sm:$0x1] %vm465_vm8, %v2730_v41  ;;  %v2678_v49 = vcombine.high %v2656_v44, %v2656_v44  ;;  %2861 = vst.msk [vmem:[%s6307_s2 + $0x5] sm:$0x1] %vm465_vm8, %v2656_v44  ;;  %v2259_v59 = vrot.slane %v2141_v39, %v5087_v23  ;;  %v2266_v62 = vrot.slane %v2252_v55, %v5087_v23 }
 0x140   :  { %v2677_v52 = vrot.slane %v2649_v45, %v5087_v23  ;;  %v2679_v53 = vcombine.high %v2663_v46, %v2663_v46  ;;  %v2680_v54 = vcombine.high %v2670_v47, %v2670_v47  ;;  %2862 = vst.msk [vmem:[%s6307_s2 + $0xd] sm:$0x1] %vm465_vm8, %v2670_v47  ;;  %2865 = vst.msk [vmem:[%s6307_s2 + $0x25] sm:$0x1] %vm465_vm8, %v2663_v46 }
 0x141   :  { %2863 = vst.msk [vmem:[%s6307_s2 + $0x15] sm:$0x1] %vm465_vm8, %v2678_v49  ;;  %v2317_v48 = vcombine.high %v2315_v56, %v2315_v56  ;;  %v2331_v63 = vrot.slane %v2315_v56, %v5087_v23  ;;  %v2338_v0 = vrot.slane %v2316_v57, %v5087_v23  ;;  %v2346_v1 = vcombine.high %v2324_v58, %v2324_v58 }
 0x142   :  { %v2681_v60 = vcombine.high %v2677_v52, %v2677_v52  ;;  %2864 = vst.msk [vmem:[%s6307_s2 + $0x1d] sm:$0x1] %vm465_vm8, %v2680_v54  ;;  %2866 = vst.msk [vmem:[%s6307_s2 + $0x2d] sm:$0x1] %vm465_vm8, %v2677_v52  ;;  %v2780_v3 = vcombine.high %v3981_v61, %v3981_v61  ;;  %v2787_v4 = vrot.slane %v3981_v61, %v5087_v23 }
 0x143   :  { %2867 = vst.msk [vmem:[%s6307_s2 + $0x35] sm:$0x1] %vm465_vm8, %v2679_v53  ;;  %2406 = vst.msk [vmem:[%s6307_s2 + $0xc4] sm:$0x1] %vm465_vm8, %v2324_v58  ;;  %v2267_v5 = vcombine.high %v2259_v59, %v2259_v59  ;;  %v2268_v6 = vcombine.high %v2266_v62, %v2266_v62  ;;  %v2345_v7 = vrot.slane %v2317_v48, %v5087_v23 }
 0x144   :  { %2868 = vst.msk [vmem:[%s6307_s2 + $0x3d] sm:$0x1] %vm465_vm8, %v2681_v60  ;;  %v2347_v35 = vcombine.high %v2331_v63, %v2331_v63  ;;  %v2348_v8 = vcombine.high %v2338_v0, %v2338_v0  ;;  %2407 = vst.msk [vmem:[%s6307_s2 + $0xcc] sm:$0x1] %vm465_vm8, %v2338_v0  ;;  %v2275_v9 = vrot.slane %v2259_v59, %v5087_v23 }
 0x145   :  { %2408 = vst.msk [vmem:[%s6307_s2 + $0xd4] sm:$0x1] %vm465_vm8, %v2346_v1  ;;  %2410 = vst.msk [vmem:[%s6307_s2 + $0xe4] sm:$0x1] %vm465_vm8, %v2331_v63  ;;  %v2794_v10 = vrot.slane %v2780_v3, %v5087_v23  ;;  %v2795_v11 = vcombine.high %v2787_v4, %v2787_v4  ;;  %v2803_v12 = vrot.slane %v2787_v4, %v5087_v23 }
 0x146   :  { %v2282_v14 = vrot.slane %v2266_v62, %v5087_v23  ;;  %v2349_v15 = vcombine.high %v2345_v7, %v2345_v7  ;;  %2409 = vst.msk [vmem:[%s6307_s2 + $0xdc] sm:$0x1] %vm465_vm8, %v2348_v8  ;;  %2411 = vst.msk [vmem:[%s6307_s2 + $0xec] sm:$0x1] %vm465_vm8, %v2345_v7  ;;  %v2289_v16 = vrot.slane %v2267_v5, %v5087_v23 }
 0x147   :  { %2412 = vst.msk [vmem:[%s6307_s2 + $0xf4] sm:$0x1] %vm465_vm8, %v2347_v35  ;;  %v2296_v17 = vrot.slane %v2268_v6, %v5087_v23  ;;  %v2297_v18 = vcombine.high %v2275_v9, %v2275_v9  ;;  %2398 = vst.msk [vmem:[%s6307_s2 + $0x84] sm:$0x1] %vm465_vm8, %v2275_v9  ;;  %v2796_v19 = vcombine.high %v2794_v10, %v2794_v10 }
 0x148   :  { %v2810_v20 = vrot.slane %v2794_v10, %v5087_v23  ;;  %v2817_v22 = vrot.slane %v2795_v11, %v5087_v23  ;;  %v2825_v25 = vcombine.high %v2803_v12, %v2803_v12  ;;  %2885 = vst.msk [vmem:[%s6307_s2 + $0xc5] sm:$0x1] %vm465_vm8, %v2803_v12  ;;  %2402 = vst.msk [vmem:[%s6307_s2 + $0xa4] sm:$0x1] %vm465_vm8, %v2282_v14  ;;  %v3986_v42 = vpop.f32.mrb[12].mxu0 }
 0x149   :  { %2413 = vst.msk [vmem:[%s6307_s2 + $0xfc] sm:$0x1] %vm465_vm8, %v2349_v15  ;;  %v2298_v26 = vcombine.high %v2282_v14, %v2282_v14  ;;  %v2299_v27 = vcombine.high %v2289_v16, %v2289_v16  ;;  %v2300_v28 = vcombine.high %v2296_v17, %v2296_v17  ;;  %2399 = vst.msk [vmem:[%s6307_s2 + $0x8c] sm:$0x1] %vm465_vm8, %v2289_v16  ;;  %v3089_v47 = vpop.f32.mrb[13].mxu0 }
 0x14a   :  { %2400 = vst.msk [vmem:[%s6307_s2 + $0x94] sm:$0x1] %vm465_vm8, %v2297_v18  ;;  %2403 = vst.msk [vmem:[%s6307_s2 + $0xac] sm:$0x1] %vm465_vm8, %v2296_v17  ;;  %v2731_v29 = vcombine.high %v2620_v2, %v2620_v2  ;;  %v2824_v13 = vrot.slane %v2796_v19, %v5087_v23  ;;  %v2826_v30 = vcombine.high %v2810_v20, %v2810_v20 }
 0x14b   :  { %v2827_v31 = vcombine.high %v2817_v22, %v2817_v22  ;;  %2886 = vst.msk [vmem:[%s6307_s2 + $0xcd] sm:$0x1] %vm465_vm8, %v2817_v22  ;;  %2887 = vst.msk [vmem:[%s6307_s2 + $0xd5] sm:$0x1] %vm465_vm8, %v2825_v25  ;;  %v2738_v32 = vrot.slane %v2620_v2, %v5087_v23  ;;  %v3161_v45 = vcombine.high %v3986_v42, %v3986_v42 }
 0x14c   :  { %2889 = vst.msk [vmem:[%s6307_s2 + $0xe5] sm:$0x1] %vm465_vm8, %v2810_v20  ;;  %2401 = vst.msk [vmem:[%s6307_s2 + $0x9c] sm:$0x1] %vm465_vm8, %v2299_v27  ;;  %v2745_v33 = vrot.slane %v2731_v29, %v5087_v23  ;;  %v2828_v34 = vcombine.high %v2824_v13, %v2824_v13  ;;  %v3168_v46 = vrot.slane %v3986_v42, %v5087_v23  ;;  %v3994_v54 = vpop.f32.mrb[12].mxu1 }
 0x14d   :  { %2404 = vst.msk [vmem:[%s6307_s2 + $0xb4] sm:$0x1] %vm465_vm8, %v2298_v26  ;;  %2405 = vst.msk [vmem:[%s6307_s2 + $0xbc] sm:$0x1] %vm465_vm8, %v2300_v28  ;;  %v2746_v36 = vcombine.high %v2738_v32, %v2738_v32  ;;  %v2754_v37 = vrot.slane %v2738_v32, %v5087_v23  ;;  %v3112_v21 = vcombine.high %v3089_v47, %v3089_v47  ;;  %v3568_v62 = vpop.f32.mrb[13].mxu1 }
 0x14e   :  { %2888 = vst.msk [vmem:[%s6307_s2 + $0xdd] sm:$0x1] %vm465_vm8, %v2827_v31  ;;  %2890 = vst.msk [vmem:[%s6307_s2 + $0xed] sm:$0x1] %vm465_vm8, %v2824_v13  ;;  %v2747_v38 = vcombine.high %v2745_v33, %v2745_v33  ;;  %v2761_v40 = vrot.slane %v2745_v33, %v5087_v23  ;;  %v3119_v50 = vrot.slane %v3089_v47, %v5087_v23 }
 0x14f   :  { %2891 = vst.msk [vmem:[%s6307_s2 + $0xf5] sm:$0x1] %vm465_vm8, %v2826_v30  ;;  %2892 = vst.msk [vmem:[%s6307_s2 + $0xfd] sm:$0x1] %vm465_vm8, %v2828_v34  ;;  %v2768_v24 = vrot.slane %v2746_v36, %v5087_v23  ;;  %v2776_v41 = vcombine.high %v2754_v37, %v2754_v37  ;;  %v3175_v39 = vrot.slane %v3161_v45, %v5087_v23 }
 0x150   :  { %2877 = vst.msk [vmem:[%s6307_s2 + $0x85] sm:$0x1] %vm465_vm8, %v2754_v37  ;;  %v2775_v43 = vrot.slane %v2747_v38, %v5087_v23  ;;  %v2777_v44 = vcombine.high %v2761_v40, %v2761_v40  ;;  %2881 = vst.msk [vmem:[%s6307_s2 + $0xa5] sm:$0x1] %vm465_vm8, %v2761_v40  ;;  %v3176_v52 = vcombine.high %v3168_v46, %v3168_v46 }
 0x151   :  { %v2778_v49 = vcombine.high %v2768_v24, %v2768_v24  ;;  %2878 = vst.msk [vmem:[%s6307_s2 + $0x8d] sm:$0x1] %vm465_vm8, %v2768_v24  ;;  %2879 = vst.msk [vmem:[%s6307_s2 + $0x95] sm:$0x1] %vm465_vm8, %v2776_v41  ;;  %v3184_v53 = vrot.slane %v3168_v46, %v5087_v23  ;;  %v3126_v55 = vrot.slane %v3112_v21, %v5087_v23 }
 0x152   :  { %v2779_v51 = vcombine.high %v2775_v43, %v2775_v43  ;;  %2882 = vst.msk [vmem:[%s6307_s2 + $0xad] sm:$0x1] %vm465_vm8, %v2775_v43  ;;  %2883 = vst.msk [vmem:[%s6307_s2 + $0xb5] sm:$0x1] %vm465_vm8, %v2777_v44  ;;  %v3127_v56 = vcombine.high %v3119_v50, %v3119_v50  ;;  %v3135_v57 = vrot.slane %v3119_v50, %v5087_v23 }
 0x153   :  { %2880 = vst.msk [vmem:[%s6307_s2 + $0x9d] sm:$0x1] %vm465_vm8, %v2778_v49  ;;  %v3177_v58 = vcombine.high %v3175_v39, %v3175_v39  ;;  %v3191_v59 = vrot.slane %v3175_v39, %v5087_v23  ;;  %v3198_v60 = vrot.slane %v3176_v52, %v5087_v23  ;;  %v3206_v61 = vcombine.high %v3184_v53, %v3184_v53 }
 0x154   :  { %2884 = vst.msk [vmem:[%s6307_s2 + $0xbd] sm:$0x1] %vm465_vm8, %v2779_v51  ;;  %3348 = vst.msk [vmem:[%s6307_s2 + $0x46] sm:$0x1] %vm465_vm8, %v3184_v53  ;;  %v3640_v48 = vcombine.high %v3994_v54, %v3994_v54  ;;  %v3647_v63 = vrot.slane %v3994_v54, %v5087_v23  ;;  %v3128_v0 = vcombine.high %v3126_v55, %v3126_v55 }
 0x155   :  { %v3142_v1 = vrot.slane %v3126_v55, %v5087_v23  ;;  %3340 = vst.msk [vmem:[%s6307_s2 + $0x6] sm:$0x1] %vm465_vm8, %v3135_v57  ;;  %v3205_v2 = vrot.slane %v3177_v58, %v5087_v23  ;;  %v3207_v3 = vcombine.high %v3191_v59, %v3191_v59  ;;  %v3208_v4 = vcombine.high %v3198_v60, %v3198_v60 }
 0x156   :  { %3349 = vst.msk [vmem:[%s6307_s2 + $0x4e] sm:$0x1] %vm465_vm8, %v3198_v60  ;;  %3350 = vst.msk [vmem:[%s6307_s2 + $0x56] sm:$0x1] %vm465_vm8, %v3206_v61  ;;  %v3149_v5 = vrot.slane %v3127_v56, %v5087_v23  ;;  %v3654_v6 = vrot.slane %v3640_v48, %v5087_v23  ;;  %v3655_v7 = vcombine.high %v3647_v63, %v3647_v63 }
 0x157   :  { %3352 = vst.msk [vmem:[%s6307_s2 + $0x66] sm:$0x1] %vm465_vm8, %v3191_v59  ;;  %v3663_v35 = vrot.slane %v3647_v63, %v5087_v23  ;;  %v3156_v8 = vrot.slane %v3128_v0, %v5087_v23  ;;  %3344 = vst.msk [vmem:[%s6307_s2 + $0x26] sm:$0x1] %vm465_vm8, %v3142_v1  ;;  %v3209_v9 = vcombine.high %v3205_v2, %v3205_v2 }
 0x158   :  { %3351 = vst.msk [vmem:[%s6307_s2 + $0x5e] sm:$0x1] %vm465_vm8, %v3208_v4  ;;  %3353 = vst.msk [vmem:[%s6307_s2 + $0x6e] sm:$0x1] %vm465_vm8, %v3205_v2  ;;  %v3157_v10 = vcombine.high %v3135_v57, %v3135_v57  ;;  %v3158_v11 = vcombine.high %v3142_v1, %v3142_v1  ;;  %v3159_v12 = vcombine.high %v3149_v5, %v3149_v5  ;;  %v3989_v34 = vpop.f32.mrb[14].mxu0 }
 0x159   :  { %3354 = vst.msk [vmem:[%s6307_s2 + $0x76] sm:$0x1] %vm465_vm8, %v3207_v3  ;;  %3341 = vst.msk [vmem:[%s6307_s2 + $0xe] sm:$0x1] %vm465_vm8, %v3149_v5  ;;  %v3656_v14 = vcombine.high %v3654_v6, %v3654_v6  ;;  %v3670_v15 = vrot.slane %v3654_v6, %v5087_v23  ;;  %v3677_v16 = vrot.slane %v3655_v7, %v5087_v23  ;;  %v3099_v24 = vpop.f32.mrb[15].mxu0 }
 0x15a   :  { %v3685_v17 = vcombine.high %v3663_v35, %v3663_v35  ;;  %3827 = vst.msk [vmem:[%s6307_s2 + $0x47] sm:$0x1] %vm465_vm8, %v3663_v35  ;;  %3345 = vst.msk [vmem:[%s6307_s2 + $0x2e] sm:$0x1] %vm465_vm8, %v3156_v8  ;;  %v3160_v18 = vcombine.high %v3156_v8, %v3156_v8  ;;  %v3591_v19 = vcombine.high %v3568_v62, %v3568_v62 }
 0x15b   :  { %3355 = vst.msk [vmem:[%s6307_s2 + $0x7e] sm:$0x1] %vm465_vm8, %v3209_v9  ;;  %3342 = vst.msk [vmem:[%s6307_s2 + $0x16] sm:$0x1] %vm465_vm8, %v3157_v10  ;;  %v3598_v20 = vrot.slane %v3568_v62, %v5087_v23  ;;  %v3684_v22 = vrot.slane %v3656_v14, %v5087_v23  ;;  %v3686_v25 = vcombine.high %v3670_v15, %v3670_v15 }
 0x15c   :  { %3343 = vst.msk [vmem:[%s6307_s2 + $0x1e] sm:$0x1] %vm465_vm8, %v3159_v12  ;;  %3346 = vst.msk [vmem:[%s6307_s2 + $0x36] sm:$0x1] %vm465_vm8, %v3158_v11  ;;  %v3687_v26 = vcombine.high %v3677_v16, %v3677_v16  ;;  %v3605_v27 = vrot.slane %v3591_v19, %v5087_v23  ;;  %v3259_v40 = vcombine.high %v3989_v34, %v3989_v34  ;;  %v3997_v49 = vpop.f32.mrb[14].mxu1 }
 0x15d   :  { %3828 = vst.msk [vmem:[%s6307_s2 + $0x4f] sm:$0x1] %vm465_vm8, %v3677_v16  ;;  %3829 = vst.msk [vmem:[%s6307_s2 + $0x57] sm:$0x1] %vm465_vm8, %v3685_v17  ;;  %v3606_v28 = vcombine.high %v3598_v20, %v3598_v20  ;;  %v3614_v29 = vrot.slane %v3598_v20, %v5087_v23  ;;  %v3688_v13 = vcombine.high %v3684_v22, %v3684_v22  ;;  %v3578_v54 = vpop.f32.mrb[15].mxu1 }
 0x15e   :  { %3831 = vst.msk [vmem:[%s6307_s2 + $0x67] sm:$0x1] %vm465_vm8, %v3670_v15  ;;  %3347 = vst.msk [vmem:[%s6307_s2 + $0x3e] sm:$0x1] %vm465_vm8, %v3160_v18  ;;  %v3607_v30 = vcombine.high %v3605_v27, %v3605_v27  ;;  %v3621_v31 = vrot.slane %v3605_v27, %v5087_v23  ;;  %v3266_v41 = vrot.slane %v3989_v34, %v5087_v23 }
 0x15f   :  { %3830 = vst.msk [vmem:[%s6307_s2 + $0x5f] sm:$0x1] %vm465_vm8, %v3687_v26  ;;  %3832 = vst.msk [vmem:[%s6307_s2 + $0x6f] sm:$0x1] %vm465_vm8, %v3684_v22  ;;  %v3628_v32 = vrot.slane %v3606_v28, %v5087_v23  ;;  %v3636_v33 = vcombine.high %v3614_v29, %v3614_v29  ;;  %v3210_v42 = vcombine.high %v3099_v24, %v3099_v24 }
 0x160   :  { %3833 = vst.msk [vmem:[%s6307_s2 + $0x77] sm:$0x1] %vm465_vm8, %v3686_v25  ;;  %3819 = vst.msk [vmem:[%s6307_s2 + $0x7] sm:$0x1] %vm465_vm8, %v3614_v29  ;;  %v3635_v36 = vrot.slane %v3607_v30, %v5087_v23  ;;  %v3637_v37 = vcombine.high %v3621_v31, %v3621_v31  ;;  %v3217_v43 = vrot.slane %v3099_v24, %v5087_v23 }
 0x161   :  { %3834 = vst.msk [vmem:[%s6307_s2 + $0x7f] sm:$0x1] %vm465_vm8, %v3688_v13  ;;  %v3638_v38 = vcombine.high %v3628_v32, %v3628_v32  ;;  %3820 = vst.msk [vmem:[%s6307_s2 + $0xf] sm:$0x1] %vm465_vm8, %v3628_v32  ;;  %v3273_v45 = vrot.slane %v3259_v40, %v5087_v23  ;;  %v3274_v46 = vcombine.high %v3266_v41, %v3266_v41 }
 0x162   :  { %3821 = vst.msk [vmem:[%s6307_s2 + $0x17] sm:$0x1] %vm465_vm8, %v3636_v33  ;;  %3823 = vst.msk [vmem:[%s6307_s2 + $0x27] sm:$0x1] %vm465_vm8, %v3621_v31  ;;  %v3639_v44 = vcombine.high %v3635_v36, %v3635_v36  ;;  %v3282_v47 = vrot.slane %v3266_v41, %v5087_v23  ;;  %v3224_v21 = vrot.slane %v3210_v42, %v5087_v23 }
 0x163   :  { %3822 = vst.msk [vmem:[%s6307_s2 + $0x1f] sm:$0x1] %vm465_vm8, %v3638_v38  ;;  %3824 = vst.msk [vmem:[%s6307_s2 + $0x2f] sm:$0x1] %vm465_vm8, %v3635_v36  ;;  %v3225_v50 = vcombine.high %v3217_v43, %v3217_v43  ;;  %v3275_v51 = vcombine.high %v3273_v45, %v3273_v45  ;;  %v3289_v39 = vrot.slane %v3273_v45, %v5087_v23 }
 0x164   :  { %3825 = vst.msk [vmem:[%s6307_s2 + $0x37] sm:$0x1] %vm465_vm8, %v3637_v37  ;;  %3826 = vst.msk [vmem:[%s6307_s2 + $0x3f] sm:$0x1] %vm465_vm8, %v3639_v44  ;;  %v3738_v52 = vcombine.high %v3997_v49, %v3997_v49  ;;  %v3745_v53 = vrot.slane %v3997_v49, %v5087_v23  ;;  %v3296_v55 = vrot.slane %v3274_v46, %v5087_v23 }
 0x165   :  { %v3304_v56 = vcombine.high %v3282_v47, %v3282_v47  ;;  %3364 = vst.msk [vmem:[%s6307_s2 + $0xc6] sm:$0x1] %vm465_vm8, %v3282_v47  ;;  %v3226_v57 = vcombine.high %v3224_v21, %v3224_v21  ;;  %v3233_v58 = vrot.slane %v3217_v43, %v5087_v23  ;;  %v3303_v59 = vrot.slane %v3275_v51, %v5087_v23 }
 0x166   :  { %v3305_v60 = vcombine.high %v3289_v39, %v3289_v39  ;;  %3368 = vst.msk [vmem:[%s6307_s2 + $0xe6] sm:$0x1] %vm465_vm8, %v3289_v39  ;;  %v3752_v61 = vrot.slane %v3738_v52, %v5087_v23  ;;  %v3753_v62 = vcombine.high %v3745_v53, %v3745_v53  ;;  %v3306_v48 = vcombine.high %v3296_v55, %v3296_v55 }
 0x167   :  { %3365 = vst.msk [vmem:[%s6307_s2 + $0xce] sm:$0x1] %vm465_vm8, %v3296_v55  ;;  %3366 = vst.msk [vmem:[%s6307_s2 + $0xd6] sm:$0x1] %vm465_vm8, %v3304_v56  ;;  %v3761_v63 = vrot.slane %v3745_v53, %v5087_v23  ;;  %v3240_v0 = vrot.slane %v3224_v21, %v5087_v23  ;;  %v3247_v1 = vrot.slane %v3225_v50, %v5087_v23 }
 0x168   :  { %3356 = vst.msk [vmem:[%s6307_s2 + $0x86] sm:$0x1] %vm465_vm8, %v3233_v58  ;;  %v3307_v2 = vcombine.high %v3303_v59, %v3303_v59  ;;  %3369 = vst.msk [vmem:[%s6307_s2 + $0xee] sm:$0x1] %vm465_vm8, %v3303_v59  ;;  %v3754_v3 = vcombine.high %v3752_v61, %v3752_v61  ;;  %v3768_v4 = vrot.slane %v3752_v61, %v5087_v23 }
 0x169   :  { %3370 = vst.msk [vmem:[%s6307_s2 + $0xf6] sm:$0x1] %vm465_vm8, %v3305_v60  ;;  %v3775_v5 = vrot.slane %v3753_v62, %v5087_v23  ;;  %3367 = vst.msk [vmem:[%s6307_s2 + $0xde] sm:$0x1] %vm465_vm8, %v3306_v48  ;;  %v3783_v6 = vcombine.high %v3761_v63, %v3761_v63  ;;  %v3254_v7 = vrot.slane %v3226_v57, %v5087_v23 }
 0x16a   :  { %3843 = vst.msk [vmem:[%s6307_s2 + $0xc7] sm:$0x1] %vm465_vm8, %v3761_v63  ;;  %v3255_v35 = vcombine.high %v3233_v58, %v3233_v58  ;;  %v3256_v8 = vcombine.high %v3240_v0, %v3240_v0  ;;  %3357 = vst.msk [vmem:[%s6307_s2 + $0x8e] sm:$0x1] %vm465_vm8, %v3247_v1  ;;  %v3782_v9 = vrot.slane %v3754_v3, %v5087_v23 }
 0x16b   :  { %3360 = vst.msk [vmem:[%s6307_s2 + $0xa6] sm:$0x1] %vm465_vm8, %v3240_v0  ;;  %3371 = vst.msk [vmem:[%s6307_s2 + $0xfe] sm:$0x1] %vm465_vm8, %v3307_v2  ;;  %v3784_v10 = vcombine.high %v3768_v4, %v3768_v4  ;;  %v3785_v11 = vcombine.high %v3775_v5, %v3775_v5  ;;  %v3257_v12 = vcombine.high %v3247_v1, %v3247_v1 }
 0x16c   :  { %3844 = vst.msk [vmem:[%s6307_s2 + $0xcf] sm:$0x1] %vm465_vm8, %v3775_v5  ;;  %3847 = vst.msk [vmem:[%s6307_s2 + $0xe7] sm:$0x1] %vm465_vm8, %v3768_v4  ;;  %v3258_v14 = vcombine.high %v3254_v7, %v3254_v7  ;;  %v3689_v15 = vcombine.high %v3578_v54, %v3578_v54  ;;  %v3696_v16 = vrot.slane %v3578_v54, %v5087_v23 }
 0x16d   :  { %3845 = vst.msk [vmem:[%s6307_s2 + $0xd7] sm:$0x1] %vm465_vm8, %v3783_v6  ;;  %3358 = vst.msk [vmem:[%s6307_s2 + $0x96] sm:$0x1] %vm465_vm8, %v3255_v35  ;;  %v3786_v17 = vcombine.high %v3782_v9, %v3782_v9 }
 0x16e   :  { %3361 = vst.msk [vmem:[%s6307_s2 + $0xae] sm:$0x1] %vm465_vm8, %v3254_v7  ;;  %3362 = vst.msk [vmem:[%s6307_s2 + $0xb6] sm:$0x1] %vm465_vm8, %v3256_v8  ;;  %v3703_v18 = vrot.slane %v3689_v15, %v5087_v23  ;;  %v3704_v19 = vcombine.high %v3696_v16, %v3696_v16  ;;  %v3712_v20 = vrot.slane %v3696_v16, %v5087_v23 }
 0x16f   :  { %3846 = vst.msk [vmem:[%s6307_s2 + $0xdf] sm:$0x1] %vm465_vm8, %v3785_v11  ;;  %3848 = vst.msk [vmem:[%s6307_s2 + $0xef] sm:$0x1] %vm465_vm8, %v3782_v9 }
 0x170   :  { %3849 = vst.msk [vmem:[%s6307_s2 + $0xf7] sm:$0x1] %vm465_vm8, %v3784_v10  ;;  %3359 = vst.msk [vmem:[%s6307_s2 + $0x9e] sm:$0x1] %vm465_vm8, %v3257_v12  ;;  %v3705_v22 = vcombine.high %v3703_v18, %v3703_v18  ;;  %v3719_v25 = vrot.slane %v3703_v18, %v5087_v23  ;;  %v3726_v26 = vrot.slane %v3704_v19, %v5087_v23 }
 0x171   :  { %3363 = vst.msk [vmem:[%s6307_s2 + $0xbe] sm:$0x1] %vm465_vm8, %v3258_v14  ;;  %3850 = vst.msk [vmem:[%s6307_s2 + $0xff] sm:$0x1] %vm465_vm8, %v3786_v17  ;;  %v3734_v27 = vcombine.high %v3712_v20, %v3712_v20 }
 0x172   :  { %3835 = vst.msk [vmem:[%s6307_s2 + $0x87] sm:$0x1] %vm465_vm8, %v3712_v20  ;;  %v3733_v28 = vrot.slane %v3705_v22, %v5087_v23  ;;  %v3735_v29 = vcombine.high %v3719_v25, %v3719_v25  ;;  %v3736_v13 = vcombine.high %v3726_v26, %v3726_v26  ;;  %3836 = vst.msk [vmem:[%s6307_s2 + $0x8f] sm:$0x1] %vm465_vm8, %v3726_v26 }
 0x173   :  { %3837 = vst.msk [vmem:[%s6307_s2 + $0x97] sm:$0x1] %vm465_vm8, %v3734_v27  ;;  %3839 = vst.msk [vmem:[%s6307_s2 + $0xa7] sm:$0x1] %vm465_vm8, %v3719_v25 }
 0x174   :  { %v3737_v30 = vcombine.high %v3733_v28, %v3733_v28  ;;  %3838 = vst.msk [vmem:[%s6307_s2 + $0x9f] sm:$0x1] %vm465_vm8, %v3736_v13  ;;  %3840 = vst.msk [vmem:[%s6307_s2 + $0xaf] sm:$0x1] %vm465_vm8, %v3733_v28 }
 0x175   :  { %3841 = vst.msk [vmem:[%s6307_s2 + $0xb7] sm:$0x1] %vm465_vm8, %v3735_v29 }
 0x176   :  { %3842 = vst.msk [vmem:[%s6307_s2 + $0xbf] sm:$0x1] %vm465_vm8, %v3737_v30 }

</bundles_post_ra>
